<compile_context>
chip_gen: v7x
topology: tpu7x:2x2x1
jax: 0.10.0
libtpu: 0.0.40
codegen_flags: <defaults>
</compile_context>

<pallas_src>
import numpy as np
import jax
import jax.numpy as jnp
from jax.experimental import pallas as pl
from jax.experimental.pallas import tpu as pltpu


# ----------------------------------------------------------------------------
# Helpers
# ----------------------------------------------------------------------------
def _choose_batch_block(n, hw, target_rows=512):
    """Largest divisor of n so the fused matmul has NB*H*W rows <= target."""
    nb = 1
    for d in range(1, n + 1):
        if n % d == 0 and d * hw <= max(target_rows, hw):
            nb = d
    return nb


# ----------------------------------------------------------------------------
# Fused kernel: pad + 3x3 conv + GroupNorm + ReLU + (optional) 2x bilinear up
# ----------------------------------------------------------------------------
def _make_level_kernel(*, NB, H, W, Cin, Cout, groups, eps, upsample,
                       compute_dtype):
    HW = H * W
    M = NB * HW
    cpg = Cout // groups

    def kernel(x_ref, w_ref, g_ref, b_ref, mem_ref, memt_ref, *rest):
        if upsample:
            o_ref, xpad_ref, yrow_ref, yup_ref = rest
        else:
            o_ref, xpad_ref, yrow_ref = rest
        f32 = jnp.float32

        # ---- zero-padded halo built in VMEM (no wrapper-side HBM pad) ------
        xpad_ref[...] = jnp.zeros(xpad_ref.shape, xpad_ref.dtype)
        xpad_ref[:, 1:H + 1, 1:W + 1, :] = x_ref[...]

        # ---- 3x3 conv as ONE big-K MXU matmul (im2col, K = 9*Cin) ----------
        taps = []
        for kh in range(3):
            for kw in range(3):
                taps.append(
                    xpad_ref[:, kh:kh + H, kw:kw + W, :].reshape(M, Cin))
        patches = jnp.concatenate(taps, axis=1).astype(compute_dtype)
        acc = jnp.dot(patches, w_ref[...],
                      preferred_element_type=f32)             # (M, Cout) f32

        # ---- GroupNorm stats (f32) + folded affine + ReLU ------------------
        acc_r = acc.reshape(NB, HW, Cout)
        sum_nc = jnp.sum(acc_r, axis=1)                       # (NB, Cout)
        sumsq_nc = jnp.sum(acc_r * acc_r, axis=1)             # (NB, Cout)
        if cpg == 1:   # groups == Cout: per-channel stats, skip group mixing
            cnt = float(HW)
            mean_nc = sum_nc / cnt
            var_nc = jnp.maximum(sumsq_nc / cnt - mean_nc * mean_nc, 0.0)
            inv_nc = jax.lax.rsqrt(var_nc + eps)
        else:          # general case: group reduce via tiny constant matmuls
            cnt = float(HW * cpg)
            sum_ng = jnp.dot(sum_nc, mem_ref[...], preferred_element_type=f32)
            sumsq_ng = jnp.dot(sumsq_nc, mem_ref[...],
                               preferred_element_type=f32)
            mean_ng = sum_ng / cnt
            var_ng = jnp.maximum(sumsq_ng / cnt - mean_ng * mean_ng, 0.0)
            inv_ng = jax.lax.rsqrt(var_ng + eps)
            mean_nc = jnp.dot(mean_ng, memt_ref[...],
                              preferred_element_type=f32)
            inv_nc = jnp.dot(inv_ng, memt_ref[...],
                             preferred_element_type=f32)
        scale_nc = inv_nc * g_ref[...]                        # (NB, Cout)
        shift_nc = b_ref[...] - mean_nc * scale_nc
        y = acc_r * scale_nc[:, None, :] + shift_nc[:, None, :]
        y = jnp.maximum(y, 0.0)                               # ReLU

        # ---- fold W into lanes (+ fused W-direction 2x bilinear) -----------
        yrow_ref[...] = y.reshape(NB * H, W, Cout)
        col = [yrow_ref[:, w, :] for w in range(W)]           # (NB*H, Cout)
        if upsample:
            cols = []
            for w in range(W):
                cur = col[w]
                lft = col[max(w - 1, 0)]
                rgt = col[min(w + 1, W - 1)]
                cols.append(0.75 * cur + 0.25 * lft)          # even col 2w
                cols.append(0.75 * cur + 0.25 * rgt)          # odd  col 2w+1
            y3 = jnp.concatenate(cols, axis=-1)               # (NB*H, 2W*C)
            yup_ref[...] = y3.reshape(NB, H, 2 * W * Cout)

            # ---- H-direction 2x bilinear, rows written straight to out -----
            for i in range(H):
                cur = yup_ref[:, i, :]                        # (NB, 2W*C)
                up = yup_ref[:, max(i - 1, 0), :]
                dn = yup_ref[:, min(i + 1, H - 1), :]
                o_ref[:, 2 * i, :] = (0.75 * cur + 0.25 * up).astype(o_ref.dtype)
                o_ref[:, 2 * i + 1, :] = (0.75 * cur + 0.25 * dn).astype(o_ref.dtype)
        else:
            y3 = jnp.concatenate(col, axis=-1)                # (NB*H, W*Cout)
            o_ref[...] = y3.reshape(NB, H, W * Cout).astype(o_ref.dtype)

    return kernel


def conv_gn_relu_upsample_level(x_nhwc, w_oihw, gamma, beta, *, groups=32,
                                eps=1e-5, upsample=True, use_bf16=True):
    N, H, W, Cin = x_nhwc.shape
    Cout = int(w_oihw.shape[0])
    assert Cout % groups == 0, "GroupNorm requires Cout % groups == 0"
    G = groups
    cpg = Cout // G
    NB = _choose_batch_block(N, H * W)
    compute_dtype = jnp.bfloat16 if use_bf16 else x_nhwc.dtype

    # conv weights: (Cout, Cin, 3, 3) -> (9*Cin, Cout), tap-major (kh*3 + kw)
    w_mat = jnp.transpose(w_oihw, (2, 3, 1, 0)).reshape(9 * Cin, Cout)
    w_mat = w_mat.astype(compute_dtype)

    # group-membership matrices (constants; only read in-kernel when cpg > 1)
    ch = np.arange(Cout)
    member = (ch[:, None] // cpg == np.arange(G)[None, :]).astype(np.float32)
    member_t = member.T.copy()

    args = [x_nhwc, w_mat,
            gamma.reshape(1, Cout).astype(jnp.float32),
            beta.reshape(1, Cout).astype(jnp.float32),
            jnp.asarray(member), jnp.asarray(member_t)]
    in_specs = [
        pl.BlockSpec((NB, H, W, Cin), lambda g: (g, 0, 0, 0)),
        pl.BlockSpec((9 * Cin, Cout), lambda g: (0, 0)),
        pl.BlockSpec((1, Cout), lambda g: (0, 0)),
        pl.BlockSpec((1, Cout), lambda g: (0, 0)),
        pl.BlockSpec((Cout, G), lambda g: (0, 0)),
        pl.BlockSpec((G, Cout), lambda g: (0, 0)),
    ]

    scratch_shapes = [
        pltpu.VMEM((NB, H + 2, W + 2, Cin), x_nhwc.dtype),   # conv halo
        pltpu.VMEM((NB * H, W, Cout), jnp.float32),          # W-fold staging
    ]
    if upsample:
        scratch_shapes.append(
            pltpu.VMEM((NB, H, 2 * W * Cout), jnp.float32))  # W-upsampled rows
        out_shape = jax.ShapeDtypeStruct((N, 2 * H, 2 * W * Cout),
                                         x_nhwc.dtype)
        out_spec = pl.BlockSpec((NB, 2 * H, 2 * W * Cout), lambda g: (g, 0, 0))
    else:
        out_shape = jax.ShapeDtypeStruct((N, H, W * Cout), x_nhwc.dtype)
        out_spec = pl.BlockSpec((NB, H, W * Cout), lambda g: (g, 0, 0))

    kernel = _make_level_kernel(NB=NB, H=H, W=W, Cin=Cin, Cout=Cout,
                                groups=G, eps=eps, upsample=upsample,
                                compute_dtype=compute_dtype)
    out = pl.pallas_call(
        kernel,
        out_shape=out_shape,
        grid_spec=pltpu.PrefetchScalarGridSpec(
            num_scalar_prefetch=0,
            grid=(N // NB,),
            in_specs=in_specs,
            out_specs=out_spec,
            scratch_shapes=scratch_shapes),
        compiler_params=pltpu.CompilerParams(
            dimension_semantics=("parallel",)),
    )(*args)

    # contiguous (free) reshapes back to NHWC — no transpose, no extra HBM pass
    if upsample:
        return out.reshape(N, 2 * H, 2 * W, Cout)
    return out.reshape(N, H, W, Cout)


# ----------------------------------------------------------------------------
# ConvUpsample forward (Pallas path) — NCHW in, NCHW out, like the nn.Module.
# ----------------------------------------------------------------------------
def conv_upsample_forward(x_nchw, params, *, groups=32, eps=1e-5,
                          upsample=True, use_bf16=True):
    y = jnp.transpose(x_nchw, (0, 2, 3, 1))                     # NCHW -> NHWC
    for (w_oihw, gamma, beta) in params:
        y = conv_gn_relu_upsample_level(y, w_oihw, gamma, beta, groups=groups,
                                        eps=eps, upsample=upsample,
                                        use_bf16=use_bf16)
    return jnp.transpose(y, (0, 3, 1, 2))                       # NHWC -> NCHW


# ----------------------------------------------------------------------------
# Pure-JAX reference (independent path) used only for a sanity check.
# ----------------------------------------------------------------------------
def _bilinear_up2_ref(y_nchw):
    N, C, H, W = y_nchw.shape

    def src_idx(out_size, in_size):
        d = jnp.arange(out_size, dtype=jnp.float32)
        s = jnp.maximum((d + 0.5) / 2.0 - 0.5, 0.0)
        i0 = jnp.clip(jnp.floor(s).astype(jnp.int32), 0, in_size - 1)
        i1 = jnp.clip(i0 + 1, 0, in_size - 1)
        return i0, i1, s - i0.astype(jnp.float32)

    h0, h1, fh = src_idx(2 * H, H)
    w0, w1, fw = src_idx(2 * W, W)
    yh = (y_nchw[:, :, h0, :] * (1.0 - fh)[None, None, :, None]
          + y_nchw[:, :, h1, :] * fh[None, None, :, None])
    return yh[:, :, :, w0] * (1.0 - fw) + yh[:, :, :, w1] * fw


def reference_forward(x_nchw, params, *, groups=32, eps=1e-5, upsample=True):
    y = x_nchw
    for (w, gamma, beta) in params:
        y = jax.lax.conv_general_dilated(
            y, w, window_strides=(1, 1), padding=((1, 1), (1, 1)),
            dimension_numbers=('NCHW', 'OIHW', 'NCHW'),
            precision=jax.lax.Precision.HIGHEST)
        N, C, H, W = y.shape
        yr = y.reshape(N, groups, C // groups, H, W)
        mean = yr.mean(axis=(2, 3, 4), keepdims=True)
        var = yr.var(axis=(2, 3, 4), keepdims=True)
        yr = (yr - mean) * jax.lax.rsqrt(var + eps)
        y = yr.reshape(N, C, H, W) * gamma[None, :, None, None] \
            + beta[None, :, None, None]
        y = jnp.maximum(y, 0.0)
        if upsample:
            y = _bilinear_up2_ref(y)
    return y


if __name__ == "__main__":
    # Two decoder levels: in_chans=64, out_chans=[64, 32] (each divisible by 32
    # for GroupNorm(32, out_ch)); spatial 8x8 -> 16x16 -> 32x32, batch 2.
    key = jax.random.PRNGKey(0)
    N, Cin, H, W = 2, 64, 8, 8
    out_chans = [64, 32]
    groups, eps = 32, 1e-5

    k_x, key = jax.random.split(key)
    x = jax.random.normal(k_x, (N, Cin, H, W), dtype=jnp.float32)

    params = []
    cin = Cin
    for cout in out_chans:
        kw_, kg_, kb_, key = jax.random.split(key, 4)
        w = 0.1 * jax.random.normal(kw_, (cout, cin, 3, 3), dtype=jnp.float32)
        gamma = 1.0 + 0.1 * jax.random.normal(kg_, (cout,), dtype=jnp.float32)
        beta = 0.1 * jax.random.normal(kb_, (cout,), dtype=jnp.float32)
        params.append((w, gamma, beta))
        cin = cout

    ref = jax.block_until_ready(
        reference_forward(x, params, groups=groups, eps=eps, upsample=True))

    # f32 matmul path (tighter numerical check of the fused kernel).
    out32 = jax.block_until_ready(
        conv_upsample_forward(x, params, groups=groups, eps=eps,
                              upsample=True, use_bf16=False))
    assert out32.shape == (N, out_chans[-1], 4 * H, 4 * W), out32.shape
    err32 = float(jnp.max(jnp.abs(out32 - ref)))
    assert err32 < 5e-2, f"f32 path max abs err too large: {err32}"

    # bf16-MXU path (default): f32 accumulation, looser tolerance accounts
    # only for bf16 input rounding.
    out16 = jax.block_until_ready(
        conv_upsample_forward(x, params, groups=groups, eps=eps,
                              upsample=True, use_bf16=True))
    assert out16.shape == (N, out_chans[-1], 4 * H, 4 * W), out16.shape
    err16 = float(jnp.max(jnp.abs(out16 - ref)))
    mae16 = float(jnp.mean(jnp.abs(out16 - ref)))
    assert err16 < 1e-1 and mae16 < 2e-2, (err16, mae16)

    print("KERNEL_OK")
</pallas_src>

<mosaic_0001>
module attributes {stable_mosaic.version = 11 : i64} {
  func.func @kernel(%arg0: i32, %arg1: memref<2x8x8x64xf32, #tpu.memory_space<vmem>>, %arg2: memref<576x64xf32, #tpu.memory_space<vmem>>, %arg3: memref<1x64xf32, #tpu.memory_space<vmem>>, %arg4: memref<1x64xf32, #tpu.memory_space<vmem>>, %arg5: memref<64x32xf32, #tpu.memory_space<vmem>>, %arg6: memref<32x64xf32, #tpu.memory_space<vmem>>, %arg7: memref<2x16x1024xf32, #tpu.memory_space<vmem>>, %arg8: memref<2x10x10x64xf32, #tpu.memory_space<vmem>>, %arg9: memref<16x8x64xf32, #tpu.memory_space<vmem>>, %arg10: memref<2x8x1024xf32, #tpu.memory_space<vmem>>) attributes {dimension_semantics = [#tpu.dimension_semantics<parallel>], iteration_bounds = array<i64: 1>, scalar_prefetch = 0 : i64, scratch_operands = 3 : i64, tpu.core_type = #tpu.core_type<tc>, window_params = [{transform_indices = @transform_0, window_bounds = array<i64: 2, 8, 8, 64>}, {pipeline_mode = #tpu.pipeline_mode<synchronous>, transform_indices = @transform_1, window_bounds = array<i64: 576, 64>}, {pipeline_mode = #tpu.pipeline_mode<synchronous>, transform_indices = @transform_2, window_bounds = array<i64: 1, 64>}, {pipeline_mode = #tpu.pipeline_mode<synchronous>, transform_indices = @transform_3, window_bounds = array<i64: 1, 64>}, {pipeline_mode = #tpu.pipeline_mode<synchronous>, transform_indices = @transform_4, window_bounds = array<i64: 64, 32>}, {pipeline_mode = #tpu.pipeline_mode<synchronous>, transform_indices = @transform_5, window_bounds = array<i64: 32, 64>}, {transform_indices = @transform_6, window_bounds = array<i64: 2, 16, 1024>}]} {
    %cst = arith.constant 0.000000e+00 : f32
    %0 = vector.broadcast %cst : f32 to vector<2x10x10x64xf32>
    %c0 = arith.constant 0 : index
    %c0_0 = arith.constant 0 : index
    %c0_1 = arith.constant 0 : index
    %c0_2 = arith.constant 0 : index
    %1 = vector.load %arg8[%c0, %c0_0, %c0_1, %c0_2] : memref<2x10x10x64xf32, #tpu.memory_space<vmem>>, vector<2x10x10x64xf32>
    tpu.vector_store %arg8[%c0, %c0_0, %c0_1, %c0_2], %0 {strides = array<i32>} : memref<2x10x10x64xf32, #tpu.memory_space<vmem>>, vector<2x10x10x64xf32>,
    %c0_3 = arith.constant 0 : index
    %c0_4 = arith.constant 0 : index
    %c0_5 = arith.constant 0 : index
    %c0_6 = arith.constant 0 : index
    %2 = vector.load %arg1[%c0_3, %c0_4, %c0_5, %c0_6] : memref<2x8x8x64xf32, #tpu.memory_space<vmem>>, vector<2x8x8x64xf32>
    %c0_7 = arith.constant 0 : index
    %c1 = arith.constant 1 : index
    %c1_8 = arith.constant 1 : index
    %c0_9 = arith.constant 0 : index
    %3 = vector.load %arg8[%c0_7, %c1, %c1_8, %c0_9] : memref<2x10x10x64xf32, #tpu.memory_space<vmem>>, vector<2x8x8x64xf32>
    tpu.vector_store %arg8[%c0_7, %c1, %c1_8, %c0_9], %2 {strides = array<i32>} : memref<2x10x10x64xf32, #tpu.memory_space<vmem>>, vector<2x8x8x64xf32>,
    %c0_10 = arith.constant 0 : index
    %c0_11 = arith.constant 0 : index
    %c0_12 = arith.constant 0 : index
    %c0_13 = arith.constant 0 : index
    %4 = vector.load %arg8[%c0_10, %c0_11, %c0_12, %c0_13] : memref<2x10x10x64xf32, #tpu.memory_space<vmem>>, vector<2x8x8x64xf32>
    %5 = vector.shape_cast %4 : vector<2x8x8x64xf32> to vector<128x64xf32>
    %c0_14 = arith.constant 0 : index
    %c0_15 = arith.constant 0 : index
    %c1_16 = arith.constant 1 : index
    %c0_17 = arith.constant 0 : index
    %6 = vector.load %arg8[%c0_14, %c0_15, %c1_16, %c0_17] : memref<2x10x10x64xf32, #tpu.memory_space<vmem>>, vector<2x8x8x64xf32>
    %7 = vector.shape_cast %6 : vector<2x8x8x64xf32> to vector<128x64xf32>
    %c0_18 = arith.constant 0 : index
    %c0_19 = arith.constant 0 : index
    %c2 = arith.constant 2 : index
    %c0_20 = arith.constant 0 : index
    %8 = vector.load %arg8[%c0_18, %c0_19, %c2, %c0_20] : memref<2x10x10x64xf32, #tpu.memory_space<vmem>>, vector<2x8x8x64xf32>
    %9 = vector.shape_cast %8 : vector<2x8x8x64xf32> to vector<128x64xf32>
    %c0_21 = arith.constant 0 : index
    %c1_22 = arith.constant 1 : index
    %c0_23 = arith.constant 0 : index
    %c0_24 = arith.constant 0 : index
    %10 = vector.load %arg8[%c0_21, %c1_22, %c0_23, %c0_24] : memref<2x10x10x64xf32, #tpu.memory_space<vmem>>, vector<2x8x8x64xf32>
    %11 = vector.shape_cast %10 : vector<2x8x8x64xf32> to vector<128x64xf32>
    %c0_25 = arith.constant 0 : index
    %c1_26 = arith.constant 1 : index
    %c1_27 = arith.constant 1 : index
    %c0_28 = arith.constant 0 : index
    %12 = vector.load %arg8[%c0_25, %c1_26, %c1_27, %c0_28] : memref<2x10x10x64xf32, #tpu.memory_space<vmem>>, vector<2x8x8x64xf32>
    %13 = vector.shape_cast %12 : vector<2x8x8x64xf32> to vector<128x64xf32>
    %c0_29 = arith.constant 0 : index
    %c1_30 = arith.constant 1 : index
    %c2_31 = arith.constant 2 : index
    %c0_32 = arith.constant 0 : index
    %14 = vector.load %arg8[%c0_29, %c1_30, %c2_31, %c0_32] : memref<2x10x10x64xf32, #tpu.memory_space<vmem>>, vector<2x8x8x64xf32>
    %15 = vector.shape_cast %14 : vector<2x8x8x64xf32> to vector<128x64xf32>
    %c0_33 = arith.constant 0 : index
    %c2_34 = arith.constant 2 : index
    %c0_35 = arith.constant 0 : index
    %c0_36 = arith.constant 0 : index
    %16 = vector.load %arg8[%c0_33, %c2_34, %c0_35, %c0_36] : memref<2x10x10x64xf32, #tpu.memory_space<vmem>>, vector<2x8x8x64xf32>
    %17 = vector.shape_cast %16 : vector<2x8x8x64xf32> to vector<128x64xf32>
    %c0_37 = arith.constant 0 : index
    %c2_38 = arith.constant 2 : index
    %c1_39 = arith.constant 1 : index
    %c0_40 = arith.constant 0 : index
    %18 = vector.load %arg8[%c0_37, %c2_38, %c1_39, %c0_40] : memref<2x10x10x64xf32, #tpu.memory_space<vmem>>, vector<2x8x8x64xf32>
    %19 = vector.shape_cast %18 : vector<2x8x8x64xf32> to vector<128x64xf32>
    %c0_41 = arith.constant 0 : index
    %c2_42 = arith.constant 2 : index
    %c2_43 = arith.constant 2 : index
    %c0_44 = arith.constant 0 : index
    %20 = vector.load %arg8[%c0_41, %c2_42, %c2_43, %c0_44] : memref<2x10x10x64xf32, #tpu.memory_space<vmem>>, vector<2x8x8x64xf32>
    %21 = vector.shape_cast %20 : vector<2x8x8x64xf32> to vector<128x64xf32>
    %22 = tpu.concatenate %5, %7, %9, %11, %13, %15, %17, %19, %21 in 1 : vector<128x64xf32>, vector<128x64xf32>, vector<128x64xf32>, vector<128x64xf32>, vector<128x64xf32>, vector<128x64xf32>, vector<128x64xf32>, vector<128x64xf32>, vector<128x64xf32> -> vector<128x576xf32>
    %c0_45 = arith.constant 0 : index
    %c0_46 = arith.constant 0 : index
    %23 = vector.load %arg2[%c0_45, %c0_46] : memref<576x64xf32, #tpu.memory_space<vmem>>, vector<576x64xf32>
    %cst_47 = arith.constant dense<0.000000e+00> : vector<128x64xf32>
    %24 = tpu.matmul %22, %23, %cst_47 {dimension_numbers = #tpu.dot_dimension_numbers<[1], [0], [0], [1], [0, 0, 1, 1], [], []>} : vector<128x576xf32>, vector<576x64xf32>, vector<128x64xf32> -> vector<128x64xf32>
    %25 = vector.shape_cast %24 : vector<128x64xf32> to vector<2x64x64xf32>
    %cst_48 = arith.constant dense<0.000000e+00> : vector<2x64xf32>
    %26 = vector.multi_reduction <add>, %25, %cst_48 [1] : vector<2x64x64xf32> to vector<2x64xf32>
    %27 = arith.mulf %25, %25 : vector<2x64x64xf32>
    %cst_49 = arith.constant dense<0.000000e+00> : vector<2x64xf32>
    %28 = vector.multi_reduction <add>, %27, %cst_49 [1] : vector<2x64x64xf32> to vector<2x64xf32>
    %c0_50 = arith.constant 0 : index
    %c0_51 = arith.constant 0 : index
    %29 = vector.load %arg5[%c0_50, %c0_51] : memref<64x32xf32, #tpu.memory_space<vmem>>, vector<64x32xf32>
    %cst_52 = arith.constant dense<0.000000e+00> : vector<2x32xf32>
    %30 = tpu.matmul %26, %29, %cst_52 {dimension_numbers = #tpu.dot_dimension_numbers<[1], [0], [0], [1], [0, 0, 1, 1], [], []>} : vector<2x64xf32>, vector<64x32xf32>, vector<2x32xf32> -> vector<2x32xf32>
    %c0_53 = arith.constant 0 : index
    %c0_54 = arith.constant 0 : index
    %31 = vector.load %arg5[%c0_53, %c0_54] : memref<64x32xf32, #tpu.memory_space<vmem>>, vector<64x32xf32>
    %cst_55 = arith.constant dense<0.000000e+00> : vector<2x32xf32>
    %32 = tpu.matmul %28, %31, %cst_55 {dimension_numbers = #tpu.dot_dimension_numbers<[1], [0], [0], [1], [0, 0, 1, 1], [], []>} : vector<2x64xf32>, vector<64x32xf32>, vector<2x32xf32> -> vector<2x32xf32>
    %cst_56 = arith.constant 1.280000e+02 : f32
    %33 = vector.broadcast %cst_56 : f32 to vector<2x32xf32>
    %34 = arith.divf %30, %33 : vector<2x32xf32>
    %cst_57 = arith.constant 1.280000e+02 : f32
    %35 = vector.broadcast %cst_57 : f32 to vector<2x32xf32>
    %36 = arith.divf %32, %35 : vector<2x32xf32>
    %37 = arith.mulf %34, %34 : vector<2x32xf32>
    %38 = arith.subf %36, %37 : vector<2x32xf32>
    %cst_58 = arith.constant 0.000000e+00 : f32
    %39 = vector.broadcast %cst_58 : f32 to vector<2x32xf32>
    %40 = arith.maximumf %38, %39 : vector<2x32xf32>
    %cst_59 = arith.constant 9.99999974E-6 : f32
    %41 = vector.broadcast %cst_59 : f32 to vector<2x32xf32>
    %42 = arith.addf %40, %41 : vector<2x32xf32>
    %43 = math.rsqrt %42 : vector<2x32xf32>
    %c0_60 = arith.constant 0 : index
    %c0_61 = arith.constant 0 : index
    %44 = vector.load %arg6[%c0_60, %c0_61] : memref<32x64xf32, #tpu.memory_space<vmem>>, vector<32x64xf32>
    %cst_62 = arith.constant dense<0.000000e+00> : vector<2x64xf32>
    %45 = tpu.matmul %34, %44, %cst_62 {dimension_numbers = #tpu.dot_dimension_numbers<[1], [0], [0], [1], [0, 0, 1, 1], [], []>} : vector<2x32xf32>, vector<32x64xf32>, vector<2x64xf32> -> vector<2x64xf32>
    %c0_63 = arith.constant 0 : index
    %c0_64 = arith.constant 0 : index
    %46 = vector.load %arg6[%c0_63, %c0_64] : memref<32x64xf32, #tpu.memory_space<vmem>>, vector<32x64xf32>
    %cst_65 = arith.constant dense<0.000000e+00> : vector<2x64xf32>
    %47 = tpu.matmul %43, %46, %cst_65 {dimension_numbers = #tpu.dot_dimension_numbers<[1], [0], [0], [1], [0, 0, 1, 1], [], []>} : vector<2x32xf32>, vector<32x64xf32>, vector<2x64xf32> -> vector<2x64xf32>
    %c0_66 = arith.constant 0 : index
    %c0_67 = arith.constant 0 : index
    %48 = vector.load %arg3[%c0_66, %c0_67] : memref<1x64xf32, #tpu.memory_space<vmem>>, vector<1x64xf32>
    %49 = vector.broadcast %48 : vector<1x64xf32> to vector<2x64xf32>
    %50 = arith.mulf %47, %49 : vector<2x64xf32>
    %c0_68 = arith.constant 0 : index
    %c0_69 = arith.constant 0 : index
    %51 = vector.load %arg4[%c0_68, %c0_69] : memref<1x64xf32, #tpu.memory_space<vmem>>, vector<1x64xf32>
    %52 = arith.mulf %45, %50 : vector<2x64xf32>
    %53 = vector.broadcast %51 : vector<1x64xf32> to vector<2x64xf32>
    %54 = arith.subf %53, %52 : vector<2x64xf32>
    %55 = vector.shape_cast %50 : vector<2x64xf32> to vector<2x1x64xf32>
    %56 = vector.broadcast %55 : vector<2x1x64xf32> to vector<2x64x64xf32>
    %57 = arith.mulf %25, %56 : vector<2x64x64xf32>
    %58 = vector.shape_cast %54 : vector<2x64xf32> to vector<2x1x64xf32>
    %59 = vector.broadcast %58 : vector<2x1x64xf32> to vector<2x64x64xf32>
    %60 = arith.addf %57, %59 : vector<2x64x64xf32>
    %cst_70 = arith.constant 0.000000e+00 : f32
    %61 = vector.broadcast %cst_70 : f32 to vector<2x64x64xf32>
    %62 = arith.maximumf %60, %61 : vector<2x64x64xf32>
    %63 = vector.shape_cast %62 : vector<2x64x64xf32> to vector<16x8x64xf32>
    %c0_71 = arith.constant 0 : index
    %c0_72 = arith.constant 0 : index
    %c0_73 = arith.constant 0 : index
    %64 = vector.load %arg9[%c0_71, %c0_72, %c0_73] : memref<16x8x64xf32, #tpu.memory_space<vmem>>, vector<16x8x64xf32>
    tpu.vector_store %arg9[%c0_71, %c0_72, %c0_73], %63 {strides = array<i32>} : memref<16x8x64xf32, #tpu.memory_space<vmem>>, vector<16x8x64xf32>,
    %c0_74 = arith.constant 0 : index
    %c0_75 = arith.constant 0 : index
    %c0_76 = arith.constant 0 : index
    %65 = vector.load %arg9[%c0_74, %c0_75, %c0_76] : memref<16x8x64xf32, #tpu.memory_space<vmem>>, vector<16x1x64xf32>
    %66 = vector.shape_cast %65 : vector<16x1x64xf32> to vector<16x64xf32>
    %c0_77 = arith.constant 0 : index
    %c1_78 = arith.constant 1 : index
    %c0_79 = arith.constant 0 : index
    %67 = vector.load %arg9[%c0_77, %c1_78, %c0_79] : memref<16x8x64xf32, #tpu.memory_space<vmem>>, vector<16x1x64xf32>
    %68 = vector.shape_cast %67 : vector<16x1x64xf32> to vector<16x64xf32>
    %c0_80 = arith.constant 0 : index
    %c2_81 = arith.constant 2 : index
    %c0_82 = arith.constant 0 : index
    %69 = vector.load %arg9[%c0_80, %c2_81, %c0_82] : memref<16x8x64xf32, #tpu.memory_space<vmem>>, vector<16x1x64xf32>
    %70 = vector.shape_cast %69 : vector<16x1x64xf32> to vector<16x64xf32>
    %c0_83 = arith.constant 0 : index
    %c3 = arith.constant 3 : index
    %c0_84 = arith.constant 0 : index
    %71 = vector.load %arg9[%c0_83, %c3, %c0_84] : memref<16x8x64xf32, #tpu.memory_space<vmem>>, vector<16x1x64xf32>
    %72 = vector.shape_cast %71 : vector<16x1x64xf32> to vector<16x64xf32>
    %c0_85 = arith.constant 0 : index
    %c4 = arith.constant 4 : index
    %c0_86 = arith.constant 0 : index
    %73 = vector.load %arg9[%c0_85, %c4, %c0_86] : memref<16x8x64xf32, #tpu.memory_space<vmem>>, vector<16x1x64xf32>
    %74 = vector.shape_cast %73 : vector<16x1x64xf32> to vector<16x64xf32>
    %c0_87 = arith.constant 0 : index
    %c5 = arith.constant 5 : index
    %c0_88 = arith.constant 0 : index
    %75 = vector.load %arg9[%c0_87, %c5, %c0_88] : memref<16x8x64xf32, #tpu.memory_space<vmem>>, vector<16x1x64xf32>
    %76 = vector.shape_cast %75 : vector<16x1x64xf32> to vector<16x64xf32>
    %c0_89 = arith.constant 0 : index
    %c6 = arith.constant 6 : index
    %c0_90 = arith.constant 0 : index
    %77 = vector.load %arg9[%c0_89, %c6, %c0_90] : memref<16x8x64xf32, #tpu.memory_space<vmem>>, vector<16x1x64xf32>
    %78 = vector.shape_cast %77 : vector<16x1x64xf32> to vector<16x64xf32>
    %c0_91 = arith.constant 0 : index
    %c7 = arith.constant 7 : index
    %c0_92 = arith.constant 0 : index
    %79 = vector.load %arg9[%c0_91, %c7, %c0_92] : memref<16x8x64xf32, #tpu.memory_space<vmem>>, vector<16x1x64xf32>
    %80 = vector.shape_cast %79 : vector<16x1x64xf32> to vector<16x64xf32>
    %cst_93 = arith.constant 7.500000e-01 : f32
    %81 = vector.broadcast %cst_93 : f32 to vector<16x64xf32>
    %82 = arith.mulf %81, %66 : vector<16x64xf32>
    %cst_94 = arith.constant 2.500000e-01 : f32
    %83 = vector.broadcast %cst_94 : f32 to vector<16x64xf32>
    %84 = arith.mulf %83, %66 : vector<16x64xf32>
    %85 = arith.addf %82, %84 : vector<16x64xf32>
    %cst_95 = arith.constant 7.500000e-01 : f32
    %86 = vector.broadcast %cst_95 : f32 to vector<16x64xf32>
    %87 = arith.mulf %86, %66 : vector<16x64xf32>
    %cst_96 = arith.constant 2.500000e-01 : f32
    %88 = vector.broadcast %cst_96 : f32 to vector<16x64xf32>
    %89 = arith.mulf %88, %68 : vector<16x64xf32>
    %90 = arith.addf %87, %89 : vector<16x64xf32>
    %cst_97 = arith.constant 7.500000e-01 : f32
    %91 = vector.broadcast %cst_97 : f32 to vector<16x64xf32>
    %92 = arith.mulf %91, %68 : vector<16x64xf32>
    %cst_98 = arith.constant 2.500000e-01 : f32
    %93 = vector.broadcast %cst_98 : f32 to vector<16x64xf32>
    %94 = arith.mulf %93, %66 : vector<16x64xf32>
    %95 = arith.addf %92, %94 : vector<16x64xf32>
    %cst_99 = arith.constant 7.500000e-01 : f32
    %96 = vector.broadcast %cst_99 : f32 to vector<16x64xf32>
    %97 = arith.mulf %96, %68 : vector<16x64xf32>
    %cst_100 = arith.constant 2.500000e-01 : f32
    %98 = vector.broadcast %cst_100 : f32 to vector<16x64xf32>
    %99 = arith.mulf %98, %70 : vector<16x64xf32>
    %100 = arith.addf %97, %99 : vector<16x64xf32>
    %cst_101 = arith.constant 7.500000e-01 : f32
    %101 = vector.broadcast %cst_101 : f32 to vector<16x64xf32>
    %102 = arith.mulf %101, %70 : vector<16x64xf32>
    %cst_102 = arith.constant 2.500000e-01 : f32
    %103 = vector.broadcast %cst_102 : f32 to vector<16x64xf32>
    %104 = arith.mulf %103, %68 : vector<16x64xf32>
    %105 = arith.addf %102, %104 : vector<16x64xf32>
    %cst_103 = arith.constant 7.500000e-01 : f32
    %106 = vector.broadcast %cst_103 : f32 to vector<16x64xf32>
    %107 = arith.mulf %106, %70 : vector<16x64xf32>
    %cst_104 = arith.constant 2.500000e-01 : f32
    %108 = vector.broadcast %cst_104 : f32 to vector<16x64xf32>
    %109 = arith.mulf %108, %72 : vector<16x64xf32>
    %110 = arith.addf %107, %109 : vector<16x64xf32>
    %cst_105 = arith.constant 7.500000e-01 : f32
    %111 = vector.broadcast %cst_105 : f32 to vector<16x64xf32>
    %112 = arith.mulf %111, %72 : vector<16x64xf32>
    %cst_106 = arith.constant 2.500000e-01 : f32
    %113 = vector.broadcast %cst_106 : f32 to vector<16x64xf32>
    %114 = arith.mulf %113, %70 : vector<16x64xf32>
    %115 = arith.addf %112, %114 : vector<16x64xf32>
    %cst_107 = arith.constant 7.500000e-01 : f32
    %116 = vector.broadcast %cst_107 : f32 to vector<16x64xf32>
    %117 = arith.mulf %116, %72 : vector<16x64xf32>
    %cst_108 = arith.constant 2.500000e-01 : f32
    %118 = vector.broadcast %cst_108 : f32 to vector<16x64xf32>
    %119 = arith.mulf %118, %74 : vector<16x64xf32>
    %120 = arith.addf %117, %119 : vector<16x64xf32>
    %cst_109 = arith.constant 7.500000e-01 : f32
    %121 = vector.broadcast %cst_109 : f32 to vector<16x64xf32>
    %122 = arith.mulf %121, %74 : vector<16x64xf32>
    %cst_110 = arith.constant 2.500000e-01 : f32
    %123 = vector.broadcast %cst_110 : f32 to vector<16x64xf32>
    %124 = arith.mulf %123, %72 : vector<16x64xf32>
    %125 = arith.addf %122, %124 : vector<16x64xf32>
    %cst_111 = arith.constant 7.500000e-01 : f32
    %126 = vector.broadcast %cst_111 : f32 to vector<16x64xf32>
    %127 = arith.mulf %126, %74 : vector<16x64xf32>
    %cst_112 = arith.constant 2.500000e-01 : f32
    %128 = vector.broadcast %cst_112 : f32 to vector<16x64xf32>
    %129 = arith.mulf %128, %76 : vector<16x64xf32>
    %130 = arith.addf %127, %129 : vector<16x64xf32>
    %cst_113 = arith.constant 7.500000e-01 : f32
    %131 = vector.broadcast %cst_113 : f32 to vector<16x64xf32>
    %132 = arith.mulf %131, %76 : vector<16x64xf32>
    %cst_114 = arith.constant 2.500000e-01 : f32
    %133 = vector.broadcast %cst_114 : f32 to vector<16x64xf32>
    %134 = arith.mulf %133, %74 : vector<16x64xf32>
    %135 = arith.addf %132, %134 : vector<16x64xf32>
    %cst_115 = arith.constant 7.500000e-01 : f32
    %136 = vector.broadcast %cst_115 : f32 to vector<16x64xf32>
    %137 = arith.mulf %136, %76 : vector<16x64xf32>
    %cst_116 = arith.constant 2.500000e-01 : f32
    %138 = vector.broadcast %cst_116 : f32 to vector<16x64xf32>
    %139 = arith.mulf %138, %78 : vector<16x64xf32>
    %140 = arith.addf %137, %139 : vector<16x64xf32>
    %cst_117 = arith.constant 7.500000e-01 : f32
    %141 = vector.broadcast %cst_117 : f32 to vector<16x64xf32>
    %142 = arith.mulf %141, %78 : vector<16x64xf32>
    %cst_118 = arith.constant 2.500000e-01 : f32
    %143 = vector.broadcast %cst_118 : f32 to vector<16x64xf32>
    %144 = arith.mulf %143, %76 : vector<16x64xf32>
    %145 = arith.addf %142, %144 : vector<16x64xf32>
    %cst_119 = arith.constant 7.500000e-01 : f32
    %146 = vector.broadcast %cst_119 : f32 to vector<16x64xf32>
    %147 = arith.mulf %146, %78 : vector<16x64xf32>
    %cst_120 = arith.constant 2.500000e-01 : f32
    %148 = vector.broadcast %cst_120 : f32 to vector<16x64xf32>
    %149 = arith.mulf %148, %80 : vector<16x64xf32>
    %150 = arith.addf %147, %149 : vector<16x64xf32>
    %cst_121 = arith.constant 7.500000e-01 : f32
    %151 = vector.broadcast %cst_121 : f32 to vector<16x64xf32>
    %152 = arith.mulf %151, %80 : vector<16x64xf32>
    %cst_122 = arith.constant 2.500000e-01 : f32
    %153 = vector.broadcast %cst_122 : f32 to vector<16x64xf32>
    %154 = arith.mulf %153, %78 : vector<16x64xf32>
    %155 = arith.addf %152, %154 : vector<16x64xf32>
    %cst_123 = arith.constant 7.500000e-01 : f32
    %156 = vector.broadcast %cst_123 : f32 to vector<16x64xf32>
    %157 = arith.mulf %156, %80 : vector<16x64xf32>
    %cst_124 = arith.constant 2.500000e-01 : f32
    %158 = vector.broadcast %cst_124 : f32 to vector<16x64xf32>
    %159 = arith.mulf %158, %80 : vector<16x64xf32>
    %160 = arith.addf %157, %159 : vector<16x64xf32>
    %161 = tpu.concatenate %85, %90, %95, %100, %105, %110, %115, %120, %125, %130, %135, %140, %145, %150, %155, %160 in 1 : vector<16x64xf32>, vector<16x64xf32>, vector<16x64xf32>, vector<16x64xf32>, vector<16x64xf32>, vector<16x64xf32>, vector<16x64xf32>, vector<16x64xf32>, vector<16x64xf32>, vector<16x64xf32>, vector<16x64xf32>, vector<16x64xf32>, vector<16x64xf32>, vector<16x64xf32>, vector<16x64xf32>, vector<16x64xf32> -> vector<16x1024xf32>
    %162 = vector.shape_cast %161 : vector<16x1024xf32> to vector<2x8x1024xf32>
    %c0_125 = arith.constant 0 : index
    %c0_126 = arith.constant 0 : index
    %c0_127 = arith.constant 0 : index
    %163 = vector.load %arg10[%c0_125, %c0_126, %c0_127] : memref<2x8x1024xf32, #tpu.memory_space<vmem>>, vector<2x8x1024xf32>
    tpu.vector_store %arg10[%c0_125, %c0_126, %c0_127], %162 {strides = array<i32>} : memref<2x8x1024xf32, #tpu.memory_space<vmem>>, vector<2x8x1024xf32>,
    %c0_128 = arith.constant 0 : index
    %c0_129 = arith.constant 0 : index
    %c0_130 = arith.constant 0 : index
    %164 = vector.load %arg10[%c0_128, %c0_129, %c0_130] : memref<2x8x1024xf32, #tpu.memory_space<vmem>>, vector<2x1x1024xf32>
    %165 = vector.shape_cast %164 : vector<2x1x1024xf32> to vector<2x1024xf32>
    %c0_131 = arith.constant 0 : index
    %c0_132 = arith.constant 0 : index
    %c0_133 = arith.constant 0 : index
    %166 = vector.load %arg10[%c0_131, %c0_132, %c0_133] : memref<2x8x1024xf32, #tpu.memory_space<vmem>>, vector<2x1x1024xf32>
    %167 = vector.shape_cast %166 : vector<2x1x1024xf32> to vector<2x1024xf32>
    %c0_134 = arith.constant 0 : index
    %c1_135 = arith.constant 1 : index
    %c0_136 = arith.constant 0 : index
    %168 = vector.load %arg10[%c0_134, %c1_135, %c0_136] : memref<2x8x1024xf32, #tpu.memory_space<vmem>>, vector<2x1x1024xf32>
    %169 = vector.shape_cast %168 : vector<2x1x1024xf32> to vector<2x1024xf32>
    %cst_137 = arith.constant 7.500000e-01 : f32
    %170 = vector.broadcast %cst_137 : f32 to vector<2x1024xf32>
    %171 = arith.mulf %170, %165 : vector<2x1024xf32>
    %cst_138 = arith.constant 2.500000e-01 : f32
    %172 = vector.broadcast %cst_138 : f32 to vector<2x1024xf32>
    %173 = arith.mulf %172, %167 : vector<2x1024xf32>
    %174 = arith.addf %171, %173 : vector<2x1024xf32>
    %c0_139 = arith.constant 0 : index
    %c0_140 = arith.constant 0 : index
    %c0_141 = arith.constant 0 : index
    %175 = vector.load %arg7[%c0_139, %c0_140, %c0_141] : memref<2x16x1024xf32, #tpu.memory_space<vmem>>, vector<2x1x1024xf32>
    %176 = vector.shape_cast %175 : vector<2x1x1024xf32> to vector<2x1024xf32>
    %177 = vector.shape_cast %174 : vector<2x1024xf32> to vector<2x1x1024xf32>
    tpu.vector_store %arg7[%c0_139, %c0_140, %c0_141], %177 {strides = array<i32>} : memref<2x16x1024xf32, #tpu.memory_space<vmem>>, vector<2x1x1024xf32>,
    %cst_142 = arith.constant 7.500000e-01 : f32
    %178 = vector.broadcast %cst_142 : f32 to vector<2x1024xf32>
    %179 = arith.mulf %178, %165 : vector<2x1024xf32>
    %cst_143 = arith.constant 2.500000e-01 : f32
    %180 = vector.broadcast %cst_143 : f32 to vector<2x1024xf32>
    %181 = arith.mulf %180, %169 : vector<2x1024xf32>
    %182 = arith.addf %179, %181 : vector<2x1024xf32>
    %c0_144 = arith.constant 0 : index
    %c1_145 = arith.constant 1 : index
    %c0_146 = arith.constant 0 : index
    %183 = vector.load %arg7[%c0_144, %c1_145, %c0_146] : memref<2x16x1024xf32, #tpu.memory_space<vmem>>, vector<2x1x1024xf32>
    %184 = vector.shape_cast %183 : vector<2x1x1024xf32> to vector<2x1024xf32>
    %185 = vector.shape_cast %182 : vector<2x1024xf32> to vector<2x1x1024xf32>
    tpu.vector_store %arg7[%c0_144, %c1_145, %c0_146], %185 {strides = array<i32>} : memref<2x16x1024xf32, #tpu.memory_space<vmem>>, vector<2x1x1024xf32>,
    %c0_147 = arith.constant 0 : index
    %c1_148 = arith.constant 1 : index
    %c0_149 = arith.constant 0 : index
    %186 = vector.load %arg10[%c0_147, %c1_148, %c0_149] : memref<2x8x1024xf32, #tpu.memory_space<vmem>>, vector<2x1x1024xf32>
    %187 = vector.shape_cast %186 : vector<2x1x1024xf32> to vector<2x1024xf32>
    %c0_150 = arith.constant 0 : index
    %c0_151 = arith.constant 0 : index
    %c0_152 = arith.constant 0 : index
    %188 = vector.load %arg10[%c0_150, %c0_151, %c0_152] : memref<2x8x1024xf32, #tpu.memory_space<vmem>>, vector<2x1x1024xf32>
    %189 = vector.shape_cast %188 : vector<2x1x1024xf32> to vector<2x1024xf32>
    %c0_153 = arith.constant 0 : index
    %c2_154 = arith.constant 2 : index
    %c0_155 = arith.constant 0 : index
    %190 = vector.load %arg10[%c0_153, %c2_154, %c0_155] : memref<2x8x1024xf32, #tpu.memory_space<vmem>>, vector<2x1x1024xf32>
    %191 = vector.shape_cast %190 : vector<2x1x1024xf32> to vector<2x1024xf32>
    %cst_156 = arith.constant 7.500000e-01 : f32
    %192 = vector.broadcast %cst_156 : f32 to vector<2x1024xf32>
    %193 = arith.mulf %192, %187 : vector<2x1024xf32>
    %cst_157 = arith.constant 2.500000e-01 : f32
    %194 = vector.broadcast %cst_157 : f32 to vector<2x1024xf32>
    %195 = arith.mulf %194, %189 : vector<2x1024xf32>
    %196 = arith.addf %193, %195 : vector<2x1024xf32>
    %c0_158 = arith.constant 0 : index
    %c2_159 = arith.constant 2 : index
    %c0_160 = arith.constant 0 : index
    %197 = vector.load %arg7[%c0_158, %c2_159, %c0_160] : memref<2x16x1024xf32, #tpu.memory_space<vmem>>, vector<2x1x1024xf32>
    %198 = vector.shape_cast %197 : vector<2x1x1024xf32> to vector<2x1024xf32>
    %199 = vector.shape_cast %196 : vector<2x1024xf32> to vector<2x1x1024xf32>
    tpu.vector_store %arg7[%c0_158, %c2_159, %c0_160], %199 {strides = array<i32>} : memref<2x16x1024xf32, #tpu.memory_space<vmem>>, vector<2x1x1024xf32>,
    %cst_161 = arith.constant 7.500000e-01 : f32
    %200 = vector.broadcast %cst_161 : f32 to vector<2x1024xf32>
    %201 = arith.mulf %200, %187 : vector<2x1024xf32>
    %cst_162 = arith.constant 2.500000e-01 : f32
    %202 = vector.broadcast %cst_162 : f32 to vector<2x1024xf32>
    %203 = arith.mulf %202, %191 : vector<2x1024xf32>
    %204 = arith.addf %201, %203 : vector<2x1024xf32>
    %c0_163 = arith.constant 0 : index
    %c3_164 = arith.constant 3 : index
    %c0_165 = arith.constant 0 : index
    %205 = vector.load %arg7[%c0_163, %c3_164, %c0_165] : memref<2x16x1024xf32, #tpu.memory_space<vmem>>, vector<2x1x1024xf32>
    %206 = vector.shape_cast %205 : vector<2x1x1024xf32> to vector<2x1024xf32>
    %207 = vector.shape_cast %204 : vector<2x1024xf32> to vector<2x1x1024xf32>
    tpu.vector_store %arg7[%c0_163, %c3_164, %c0_165], %207 {strides = array<i32>} : memref<2x16x1024xf32, #tpu.memory_space<vmem>>, vector<2x1x1024xf32>,
    %c0_166 = arith.constant 0 : index
    %c2_167 = arith.constant 2 : index
    %c0_168 = arith.constant 0 : index
    %208 = vector.load %arg10[%c0_166, %c2_167, %c0_168] : memref<2x8x1024xf32, #tpu.memory_space<vmem>>, vector<2x1x1024xf32>
    %209 = vector.shape_cast %208 : vector<2x1x1024xf32> to vector<2x1024xf32>
    %c0_169 = arith.constant 0 : index
    %c1_170 = arith.constant 1 : index
    %c0_171 = arith.constant 0 : index
    %210 = vector.load %arg10[%c0_169, %c1_170, %c0_171] : memref<2x8x1024xf32, #tpu.memory_space<vmem>>, vector<2x1x1024xf32>
    %211 = vector.shape_cast %210 : vector<2x1x1024xf32> to vector<2x1024xf32>
    %c0_172 = arith.constant 0 : index
    %c3_173 = arith.constant 3 : index
    %c0_174 = arith.constant 0 : index
    %212 = vector.load %arg10[%c0_172, %c3_173, %c0_174] : memref<2x8x1024xf32, #tpu.memory_space<vmem>>, vector<2x1x1024xf32>
    %213 = vector.shape_cast %212 : vector<2x1x1024xf32> to vector<2x1024xf32>
    %cst_175 = arith.constant 7.500000e-01 : f32
    %214 = vector.broadcast %cst_175 : f32 to vector<2x1024xf32>
    %215 = arith.mulf %214, %209 : vector<2x1024xf32>
    %cst_176 = arith.constant 2.500000e-01 : f32
    %216 = vector.broadcast %cst_176 : f32 to vector<2x1024xf32>
    %217 = arith.mulf %216, %211 : vector<2x1024xf32>
    %218 = arith.addf %215, %217 : vector<2x1024xf32>
    %c0_177 = arith.constant 0 : index
    %c4_178 = arith.constant 4 : index
    %c0_179 = arith.constant 0 : index
    %219 = vector.load %arg7[%c0_177, %c4_178, %c0_179] : memref<2x16x1024xf32, #tpu.memory_space<vmem>>, vector<2x1x1024xf32>
    %220 = vector.shape_cast %219 : vector<2x1x1024xf32> to vector<2x1024xf32>
    %221 = vector.shape_cast %218 : vector<2x1024xf32> to vector<2x1x1024xf32>
    tpu.vector_store %arg7[%c0_177, %c4_178, %c0_179], %221 {strides = array<i32>} : memref<2x16x1024xf32, #tpu.memory_space<vmem>>, vector<2x1x1024xf32>,
    %cst_180 = arith.constant 7.500000e-01 : f32
    %222 = vector.broadcast %cst_180 : f32 to vector<2x1024xf32>
    %223 = arith.mulf %222, %209 : vector<2x1024xf32>
    %cst_181 = arith.constant 2.500000e-01 : f32
    %224 = vector.broadcast %cst_181 : f32 to vector<2x1024xf32>
    %225 = arith.mulf %224, %213 : vector<2x1024xf32>
    %226 = arith.addf %223, %225 : vector<2x1024xf32>
    %c0_182 = arith.constant 0 : index
    %c5_183 = arith.constant 5 : index
    %c0_184 = arith.constant 0 : index
    %227 = vector.load %arg7[%c0_182, %c5_183, %c0_184] : memref<2x16x1024xf32, #tpu.memory_space<vmem>>, vector<2x1x1024xf32>
    %228 = vector.shape_cast %227 : vector<2x1x1024xf32> to vector<2x1024xf32>
    %229 = vector.shape_cast %226 : vector<2x1024xf32> to vector<2x1x1024xf32>
    tpu.vector_store %arg7[%c0_182, %c5_183, %c0_184], %229 {strides = array<i32>} : memref<2x16x1024xf32, #tpu.memory_space<vmem>>, vector<2x1x1024xf32>,
    %c0_185 = arith.constant 0 : index
    %c3_186 = arith.constant 3 : index
    %c0_187 = arith.constant 0 : index
    %230 = vector.load %arg10[%c0_185, %c3_186, %c0_187] : memref<2x8x1024xf32, #tpu.memory_space<vmem>>, vector<2x1x1024xf32>
    %231 = vector.shape_cast %230 : vector<2x1x1024xf32> to vector<2x1024xf32>
    %c0_188 = arith.constant 0 : index
    %c2_189 = arith.constant 2 : index
    %c0_190 = arith.constant 0 : index
    %232 = vector.load %arg10[%c0_188, %c2_189, %c0_190] : memref<2x8x1024xf32, #tpu.memory_space<vmem>>, vector<2x1x1024xf32>
    %233 = vector.shape_cast %232 : vector<2x1x1024xf32> to vector<2x1024xf32>
    %c0_191 = arith.constant 0 : index
    %c4_192 = arith.constant 4 : index
    %c0_193 = arith.constant 0 : index
    %234 = vector.load %arg10[%c0_191, %c4_192, %c0_193] : memref<2x8x1024xf32, #tpu.memory_space<vmem>>, vector<2x1x1024xf32>
    %235 = vector.shape_cast %234 : vector<2x1x1024xf32> to vector<2x1024xf32>
    %cst_194 = arith.constant 7.500000e-01 : f32
    %236 = vector.broadcast %cst_194 : f32 to vector<2x1024xf32>
    %237 = arith.mulf %236, %231 : vector<2x1024xf32>
    %cst_195 = arith.constant 2.500000e-01 : f32
    %238 = vector.broadcast %cst_195 : f32 to vector<2x1024xf32>
    %239 = arith.mulf %238, %233 : vector<2x1024xf32>
    %240 = arith.addf %237, %239 : vector<2x1024xf32>
    %c0_196 = arith.constant 0 : index
    %c6_197 = arith.constant 6 : index
    %c0_198 = arith.constant 0 : index
    %241 = vector.load %arg7[%c0_196, %c6_197, %c0_198] : memref<2x16x1024xf32, #tpu.memory_space<vmem>>, vector<2x1x1024xf32>
    %242 = vector.shape_cast %241 : vector<2x1x1024xf32> to vector<2x1024xf32>
    %243 = vector.shape_cast %240 : vector<2x1024xf32> to vector<2x1x1024xf32>
    tpu.vector_store %arg7[%c0_196, %c6_197, %c0_198], %243 {strides = array<i32>} : memref<2x16x1024xf32, #tpu.memory_space<vmem>>, vector<2x1x1024xf32>,
    %cst_199 = arith.constant 7.500000e-01 : f32
    %244 = vector.broadcast %cst_199 : f32 to vector<2x1024xf32>
    %245 = arith.mulf %244, %231 : vector<2x1024xf32>
    %cst_200 = arith.constant 2.500000e-01 : f32
    %246 = vector.broadcast %cst_200 : f32 to vector<2x1024xf32>
    %247 = arith.mulf %246, %235 : vector<2x1024xf32>
    %248 = arith.addf %245, %247 : vector<2x1024xf32>
    %c0_201 = arith.constant 0 : index
    %c7_202 = arith.constant 7 : index
    %c0_203 = arith.constant 0 : index
    %249 = vector.load %arg7[%c0_201, %c7_202, %c0_203] : memref<2x16x1024xf32, #tpu.memory_space<vmem>>, vector<2x1x1024xf32>
    %250 = vector.shape_cast %249 : vector<2x1x1024xf32> to vector<2x1024xf32>
    %251 = vector.shape_cast %248 : vector<2x1024xf32> to vector<2x1x1024xf32>
    tpu.vector_store %arg7[%c0_201, %c7_202, %c0_203], %251 {strides = array<i32>} : memref<2x16x1024xf32, #tpu.memory_space<vmem>>, vector<2x1x1024xf32>,
    %c0_204 = arith.constant 0 : index
    %c4_205 = arith.constant 4 : index
    %c0_206 = arith.constant 0 : index
    %252 = vector.load %arg10[%c0_204, %c4_205, %c0_206] : memref<2x8x1024xf32, #tpu.memory_space<vmem>>, vector<2x1x1024xf32>
    %253 = vector.shape_cast %252 : vector<2x1x1024xf32> to vector<2x1024xf32>
    %c0_207 = arith.constant 0 : index
    %c3_208 = arith.constant 3 : index
    %c0_209 = arith.constant 0 : index
    %254 = vector.load %arg10[%c0_207, %c3_208, %c0_209] : memref<2x8x1024xf32, #tpu.memory_space<vmem>>, vector<2x1x1024xf32>
    %255 = vector.shape_cast %254 : vector<2x1x1024xf32> to vector<2x1024xf32>
    %c0_210 = arith.constant 0 : index
    %c5_211 = arith.constant 5 : index
    %c0_212 = arith.constant 0 : index
    %256 = vector.load %arg10[%c0_210, %c5_211, %c0_212] : memref<2x8x1024xf32, #tpu.memory_space<vmem>>, vector<2x1x1024xf32>
    %257 = vector.shape_cast %256 : vector<2x1x1024xf32> to vector<2x1024xf32>
    %cst_213 = arith.constant 7.500000e-01 : f32
    %258 = vector.broadcast %cst_213 : f32 to vector<2x1024xf32>
    %259 = arith.mulf %258, %253 : vector<2x1024xf32>
    %cst_214 = arith.constant 2.500000e-01 : f32
    %260 = vector.broadcast %cst_214 : f32 to vector<2x1024xf32>
    %261 = arith.mulf %260, %255 : vector<2x1024xf32>
    %262 = arith.addf %259, %261 : vector<2x1024xf32>
    %c0_215 = arith.constant 0 : index
    %c8 = arith.constant 8 : index
    %c0_216 = arith.constant 0 : index
    %263 = vector.load %arg7[%c0_215, %c8, %c0_216] : memref<2x16x1024xf32, #tpu.memory_space<vmem>>, vector<2x1x1024xf32>
    %264 = vector.shape_cast %263 : vector<2x1x1024xf32> to vector<2x1024xf32>
    %265 = vector.shape_cast %262 : vector<2x1024xf32> to vector<2x1x1024xf32>
    tpu.vector_store %arg7[%c0_215, %c8, %c0_216], %265 {strides = array<i32>} : memref<2x16x1024xf32, #tpu.memory_space<vmem>>, vector<2x1x1024xf32>,
    %cst_217 = arith.constant 7.500000e-01 : f32
    %266 = vector.broadcast %cst_217 : f32 to vector<2x1024xf32>
    %267 = arith.mulf %266, %253 : vector<2x1024xf32>
    %cst_218 = arith.constant 2.500000e-01 : f32
    %268 = vector.broadcast %cst_218 : f32 to vector<2x1024xf32>
    %269 = arith.mulf %268, %257 : vector<2x1024xf32>
    %270 = arith.addf %267, %269 : vector<2x1024xf32>
    %c0_219 = arith.constant 0 : index
    %c9 = arith.constant 9 : index
    %c0_220 = arith.constant 0 : index
    %271 = vector.load %arg7[%c0_219, %c9, %c0_220] : memref<2x16x1024xf32, #tpu.memory_space<vmem>>, vector<2x1x1024xf32>
    %272 = vector.shape_cast %271 : vector<2x1x1024xf32> to vector<2x1024xf32>
    %273 = vector.shape_cast %270 : vector<2x1024xf32> to vector<2x1x1024xf32>
    tpu.vector_store %arg7[%c0_219, %c9, %c0_220], %273 {strides = array<i32>} : memref<2x16x1024xf32, #tpu.memory_space<vmem>>, vector<2x1x1024xf32>,
    %c0_221 = arith.constant 0 : index
    %c5_222 = arith.constant 5 : index
    %c0_223 = arith.constant 0 : index
    %274 = vector.load %arg10[%c0_221, %c5_222, %c0_223] : memref<2x8x1024xf32, #tpu.memory_space<vmem>>, vector<2x1x1024xf32>
    %275 = vector.shape_cast %274 : vector<2x1x1024xf32> to vector<2x1024xf32>
    %c0_224 = arith.constant 0 : index
    %c4_225 = arith.constant 4 : index
    %c0_226 = arith.constant 0 : index
    %276 = vector.load %arg10[%c0_224, %c4_225, %c0_226] : memref<2x8x1024xf32, #tpu.memory_space<vmem>>, vector<2x1x1024xf32>
    %277 = vector.shape_cast %276 : vector<2x1x1024xf32> to vector<2x1024xf32>
    %c0_227 = arith.constant 0 : index
    %c6_228 = arith.constant 6 : index
    %c0_229 = arith.constant 0 : index
    %278 = vector.load %arg10[%c0_227, %c6_228, %c0_229] : memref<2x8x1024xf32, #tpu.memory_space<vmem>>, vector<2x1x1024xf32>
    %279 = vector.shape_cast %278 : vector<2x1x1024xf32> to vector<2x1024xf32>
    %cst_230 = arith.constant 7.500000e-01 : f32
    %280 = vector.broadcast %cst_230 : f32 to vector<2x1024xf32>
    %281 = arith.mulf %280, %275 : vector<2x1024xf32>
    %cst_231 = arith.constant 2.500000e-01 : f32
    %282 = vector.broadcast %cst_231 : f32 to vector<2x1024xf32>
    %283 = arith.mulf %282, %277 : vector<2x1024xf32>
    %284 = arith.addf %281, %283 : vector<2x1024xf32>
    %c0_232 = arith.constant 0 : index
    %c10 = arith.constant 10 : index
    %c0_233 = arith.constant 0 : index
    %285 = vector.load %arg7[%c0_232, %c10, %c0_233] : memref<2x16x1024xf32, #tpu.memory_space<vmem>>, vector<2x1x1024xf32>
    %286 = vector.shape_cast %285 : vector<2x1x1024xf32> to vector<2x1024xf32>
    %287 = vector.shape_cast %284 : vector<2x1024xf32> to vector<2x1x1024xf32>
    tpu.vector_store %arg7[%c0_232, %c10, %c0_233], %287 {strides = array<i32>} : memref<2x16x1024xf32, #tpu.memory_space<vmem>>, vector<2x1x1024xf32>,
    %cst_234 = arith.constant 7.500000e-01 : f32
    %288 = vector.broadcast %cst_234 : f32 to vector<2x1024xf32>
    %289 = arith.mulf %288, %275 : vector<2x1024xf32>
    %cst_235 = arith.constant 2.500000e-01 : f32
    %290 = vector.broadcast %cst_235 : f32 to vector<2x1024xf32>
    %291 = arith.mulf %290, %279 : vector<2x1024xf32>
    %292 = arith.addf %289, %291 : vector<2x1024xf32>
    %c0_236 = arith.constant 0 : index
    %c11 = arith.constant 11 : index
    %c0_237 = arith.constant 0 : index
    %293 = vector.load %arg7[%c0_236, %c11, %c0_237] : memref<2x16x1024xf32, #tpu.memory_space<vmem>>, vector<2x1x1024xf32>
    %294 = vector.shape_cast %293 : vector<2x1x1024xf32> to vector<2x1024xf32>
    %295 = vector.shape_cast %292 : vector<2x1024xf32> to vector<2x1x1024xf32>
    tpu.vector_store %arg7[%c0_236, %c11, %c0_237], %295 {strides = array<i32>} : memref<2x16x1024xf32, #tpu.memory_space<vmem>>, vector<2x1x1024xf32>,
    %c0_238 = arith.constant 0 : index
    %c6_239 = arith.constant 6 : index
    %c0_240 = arith.constant 0 : index
    %296 = vector.load %arg10[%c0_238, %c6_239, %c0_240] : memref<2x8x1024xf32, #tpu.memory_space<vmem>>, vector<2x1x1024xf32>
    %297 = vector.shape_cast %296 : vector<2x1x1024xf32> to vector<2x1024xf32>
    %c0_241 = arith.constant 0 : index
    %c5_242 = arith.constant 5 : index
    %c0_243 = arith.constant 0 : index
    %298 = vector.load %arg10[%c0_241, %c5_242, %c0_243] : memref<2x8x1024xf32, #tpu.memory_space<vmem>>, vector<2x1x1024xf32>
    %299 = vector.shape_cast %298 : vector<2x1x1024xf32> to vector<2x1024xf32>
    %c0_244 = arith.constant 0 : index
    %c7_245 = arith.constant 7 : index
    %c0_246 = arith.constant 0 : index
    %300 = vector.load %arg10[%c0_244, %c7_245, %c0_246] : memref<2x8x1024xf32, #tpu.memory_space<vmem>>, vector<2x1x1024xf32>
    %301 = vector.shape_cast %300 : vector<2x1x1024xf32> to vector<2x1024xf32>
    %cst_247 = arith.constant 7.500000e-01 : f32
    %302 = vector.broadcast %cst_247 : f32 to vector<2x1024xf32>
    %303 = arith.mulf %302, %297 : vector<2x1024xf32>
    %cst_248 = arith.constant 2.500000e-01 : f32
    %304 = vector.broadcast %cst_248 : f32 to vector<2x1024xf32>
    %305 = arith.mulf %304, %299 : vector<2x1024xf32>
    %306 = arith.addf %303, %305 : vector<2x1024xf32>
    %c0_249 = arith.constant 0 : index
    %c12 = arith.constant 12 : index
    %c0_250 = arith.constant 0 : index
    %307 = vector.load %arg7[%c0_249, %c12, %c0_250] : memref<2x16x1024xf32, #tpu.memory_space<vmem>>, vector<2x1x1024xf32>
    %308 = vector.shape_cast %307 : vector<2x1x1024xf32> to vector<2x1024xf32>
    %309 = vector.shape_cast %306 : vector<2x1024xf32> to vector<2x1x1024xf32>
    tpu.vector_store %arg7[%c0_249, %c12, %c0_250], %309 {strides = array<i32>} : memref<2x16x1024xf32, #tpu.memory_space<vmem>>, vector<2x1x1024xf32>,
    %cst_251 = arith.constant 7.500000e-01 : f32
    %310 = vector.broadcast %cst_251 : f32 to vector<2x1024xf32>
    %311 = arith.mulf %310, %297 : vector<2x1024xf32>
    %cst_252 = arith.constant 2.500000e-01 : f32
    %312 = vector.broadcast %cst_252 : f32 to vector<2x1024xf32>
    %313 = arith.mulf %312, %301 : vector<2x1024xf32>
    %314 = arith.addf %311, %313 : vector<2x1024xf32>
    %c0_253 = arith.constant 0 : index
    %c13 = arith.constant 13 : index
    %c0_254 = arith.constant 0 : index
    %315 = vector.load %arg7[%c0_253, %c13, %c0_254] : memref<2x16x1024xf32, #tpu.memory_space<vmem>>, vector<2x1x1024xf32>
    %316 = vector.shape_cast %315 : vector<2x1x1024xf32> to vector<2x1024xf32>
    %317 = vector.shape_cast %314 : vector<2x1024xf32> to vector<2x1x1024xf32>
    tpu.vector_store %arg7[%c0_253, %c13, %c0_254], %317 {strides = array<i32>} : memref<2x16x1024xf32, #tpu.memory_space<vmem>>, vector<2x1x1024xf32>,
    %c0_255 = arith.constant 0 : index
    %c7_256 = arith.constant 7 : index
    %c0_257 = arith.constant 0 : index
    %318 = vector.load %arg10[%c0_255, %c7_256, %c0_257] : memref<2x8x1024xf32, #tpu.memory_space<vmem>>, vector<2x1x1024xf32>
    %319 = vector.shape_cast %318 : vector<2x1x1024xf32> to vector<2x1024xf32>
    %c0_258 = arith.constant 0 : index
    %c6_259 = arith.constant 6 : index
    %c0_260 = arith.constant 0 : index
    %320 = vector.load %arg10[%c0_258, %c6_259, %c0_260] : memref<2x8x1024xf32, #tpu.memory_space<vmem>>, vector<2x1x1024xf32>
    %321 = vector.shape_cast %320 : vector<2x1x1024xf32> to vector<2x1024xf32>
    %c0_261 = arith.constant 0 : index
    %c7_262 = arith.constant 7 : index
    %c0_263 = arith.constant 0 : index
    %322 = vector.load %arg10[%c0_261, %c7_262, %c0_263] : memref<2x8x1024xf32, #tpu.memory_space<vmem>>, vector<2x1x1024xf32>
    %323 = vector.shape_cast %322 : vector<2x1x1024xf32> to vector<2x1024xf32>
    %cst_264 = arith.constant 7.500000e-01 : f32
    %324 = vector.broadcast %cst_264 : f32 to vector<2x1024xf32>
    %325 = arith.mulf %324, %319 : vector<2x1024xf32>
    %cst_265 = arith.constant 2.500000e-01 : f32
    %326 = vector.broadcast %cst_265 : f32 to vector<2x1024xf32>
    %327 = arith.mulf %326, %321 : vector<2x1024xf32>
    %328 = arith.addf %325, %327 : vector<2x1024xf32>
    %c0_266 = arith.constant 0 : index
    %c14 = arith.constant 14 : index
    %c0_267 = arith.constant 0 : index
    %329 = vector.load %arg7[%c0_266, %c14, %c0_267] : memref<2x16x1024xf32, #tpu.memory_space<vmem>>, vector<2x1x1024xf32>
    %330 = vector.shape_cast %329 : vector<2x1x1024xf32> to vector<2x1024xf32>
    %331 = vector.shape_cast %328 : vector<2x1024xf32> to vector<2x1x1024xf32>
    tpu.vector_store %arg7[%c0_266, %c14, %c0_267], %331 {strides = array<i32>} : memref<2x16x1024xf32, #tpu.memory_space<vmem>>, vector<2x1x1024xf32>,
    %cst_268 = arith.constant 7.500000e-01 : f32
    %332 = vector.broadcast %cst_268 : f32 to vector<2x1024xf32>
    %333 = arith.mulf %332, %319 : vector<2x1024xf32>
    %cst_269 = arith.constant 2.500000e-01 : f32
    %334 = vector.broadcast %cst_269 : f32 to vector<2x1024xf32>
    %335 = arith.mulf %334, %323 : vector<2x1024xf32>
    %336 = arith.addf %333, %335 : vector<2x1024xf32>
    %c0_270 = arith.constant 0 : index
    %c15 = arith.constant 15 : index
    %c0_271 = arith.constant 0 : index
    %337 = vector.load %arg7[%c0_270, %c15, %c0_271] : memref<2x16x1024xf32, #tpu.memory_space<vmem>>, vector<2x1x1024xf32>
    %338 = vector.shape_cast %337 : vector<2x1x1024xf32> to vector<2x1024xf32>
    %339 = vector.shape_cast %336 : vector<2x1024xf32> to vector<2x1x1024xf32>
    tpu.vector_store %arg7[%c0_270, %c15, %c0_271], %339 {strides = array<i32>} : memref<2x16x1024xf32, #tpu.memory_space<vmem>>, vector<2x1x1024xf32>,
    return
  }
  func.func @transform_0(%arg0: i32) -> (i32, i32, i32, i32) {
    %c0_i32 = arith.constant 0 : i32
    %c0_i32_0 = arith.constant 0 : i32
    %c0_i32_1 = arith.constant 0 : i32
    %c0_i32_2 = arith.constant 0 : i32
    return %arg0, %c0_i32, %c0_i32_0, %c0_i32_1 : i32, i32, i32, i32
  }
  func.func @transform_1(%arg0: i32) -> (i32, i32) {
    %c0_i32 = arith.constant 0 : i32
    %c0_i32_0 = arith.constant 0 : i32
    %c0_i32_1 = arith.constant 0 : i32
    return %c0_i32, %c0_i32_0 : i32, i32
  }
  func.func @transform_2(%arg0: i32) -> (i32, i32) {
    %c0_i32 = arith.constant 0 : i32
    %c0_i32_0 = arith.constant 0 : i32
    %c0_i32_1 = arith.constant 0 : i32
    return %c0_i32, %c0_i32_0 : i32, i32
  }
  func.func @transform_3(%arg0: i32) -> (i32, i32) {
    %c0_i32 = arith.constant 0 : i32
    %c0_i32_0 = arith.constant 0 : i32
    %c0_i32_1 = arith.constant 0 : i32
    return %c0_i32, %c0_i32_0 : i32, i32
  }
  func.func @transform_4(%arg0: i32) -> (i32, i32) {
    %c0_i32 = arith.constant 0 : i32
    %c0_i32_0 = arith.constant 0 : i32
    %c0_i32_1 = arith.constant 0 : i32
    return %c0_i32, %c0_i32_0 : i32, i32
  }
  func.func @transform_5(%arg0: i32) -> (i32, i32) {
    %c0_i32 = arith.constant 0 : i32
    %c0_i32_0 = arith.constant 0 : i32
    %c0_i32_1 = arith.constant 0 : i32
    return %c0_i32, %c0_i32_0 : i32, i32
  }
  func.func @transform_6(%arg0: i32) -> (i32, i32, i32) {
    %c0_i32 = arith.constant 0 : i32
    %c0_i32_0 = arith.constant 0 : i32
    %c0_i32_1 = arith.constant 0 : i32
    return %arg0, %c0_i32, %c0_i32_0 : i32, i32, i32
  }
}

</mosaic_0001>

<bundles_post_ra>
// kernel: tpu_custom_call.1
= control target key start
LH: loop header
LB: loop body
LE: loop exit
PB: predicated region body
PF: predicated region fallthrough
CT: control target
= control target key end

     0   :  { %vm24_vm0 = vcmask 523264   ;;  %vm26_vm1 = vcmask 517120   ;;  %v6939_v2 = vmov 0.0   ;;  %s4112_s16 = smov 64   ;;  %s6932_s0 = inlined_call_operand.vmem [shape: f32[2,8,8,64], index: 0, kind: input, shape index: {}]   ;;  %s6933_s1 = inlined_call_operand.vmem [shape: f32[576,64], index: 1, kind: input, shape index: {}]   ;;  %s6934_s2 = inlined_call_operand.vmem [shape: f32[1,64], index: 2, kind: input, shape index: {}]   ;;  %s6935_s3 = inlined_call_operand.vmem [shape: f32[1,64], index: 3, kind: input, shape index: {}]   ;;  %s6936_s4 = inlined_call_operand.vmem [shape: f32[64,32], index: 4, kind: input, shape index: {}]   ;;  %s6937_s5 = inlined_call_operand.vmem [shape: f32[32,64], index: 5, kind: input, shape index: {}]   ;;  %s6938_s6 = inlined_call_operand.hbm [shape: f32[2,16,1024], index: 6, kind: output, shape index: {}]  }
   0x1   :  { %v66_v0 = vld [vmem:[%s6932_s0] sm:$0xff]  ;;  %v67_v1 = vld [vmem:[%s6932_s0 + $0x8] sm:$0xff]  ;;  %25 = vst.msk [vmem:[#allocation2] sm:$0xff] %vm24_vm0, %v6939_v2  ;;  %28 = vst.msk [vmem:[#allocation2 + $0x10] sm:$0xff] %vm24_vm0, %v6939_v2 }
   0x2   :  { %27 = vst.msk [vmem:[#allocation2 + $0x8] sm:$0x3] %vm26_vm1, %v6939_v2  ;;  %29 = vst.msk [vmem:[#allocation2 + $0x18] sm:$0x3] %vm26_vm1, %v6939_v2  ;;  %v68_v3 = vld [vmem:[%s6932_s0 + $0x10] sm:$0xff]  ;;  %v69_v4 = vld [vmem:[%s6932_s0 + $0x18] sm:$0xff] }
   0x3   :  { %30 = vst.msk [vmem:[#allocation2 + $0x20] sm:$0xff] %vm24_vm0, %v6939_v2  ;;  %32 = vst.msk [vmem:[#allocation2 + $0x30] sm:$0xff] %vm24_vm0, %v6939_v2  ;;  %v70_v5 = vld [vmem:[%s6932_s0 + $0x20] sm:$0xff]  ;;  %v71_v6 = vld [vmem:[%s6932_s0 + $0x28] sm:$0xff] }
   0x4   :  { %31 = vst.msk [vmem:[#allocation2 + $0x28] sm:$0x3] %vm26_vm1, %v6939_v2  ;;  %33 = vst.msk [vmem:[#allocation2 + $0x38] sm:$0x3] %vm26_vm1, %v6939_v2  ;;  %v72_v7 = vld [vmem:[%s6932_s0 + $0x30] sm:$0xff]  ;;  %v73_v8 = vld [vmem:[%s6932_s0 + $0x38] sm:$0xff] }
   0x5   :  { %34 = vst.msk [vmem:[#allocation2 + $0x40] sm:$0xff] %vm24_vm0, %v6939_v2  ;;  %36 = vst.msk [vmem:[#allocation2 + $0x50] sm:$0xff] %vm24_vm0, %v6939_v2  ;;  %v74_v9 = vld [vmem:[%s6932_s0 + $0x40] sm:$0xff]  ;;  %v75_v10 = vld [vmem:[%s6932_s0 + $0x48] sm:$0xff] }
   0x6   :  { %35 = vst.msk [vmem:[#allocation2 + $0x48] sm:$0x3] %vm26_vm1, %v6939_v2  ;;  %37 = vst.msk [vmem:[#allocation2 + $0x58] sm:$0x3] %vm26_vm1, %v6939_v2  ;;  %v76_v11 = vld [vmem:[%s6932_s0 + $0x50] sm:$0xff]  ;;  %v77_v12 = vld [vmem:[%s6932_s0 + $0x58] sm:$0xff] }
   0x7   :  { %38 = vst.msk [vmem:[#allocation2 + $0x60] sm:$0xff] %vm24_vm0, %v6939_v2  ;;  %40 = vst.msk [vmem:[#allocation2 + $0x70] sm:$0xff] %vm24_vm0, %v6939_v2  ;;  %v78_v13 = vld [vmem:[%s6932_s0 + $0x60] sm:$0xff]  ;;  %v79_v14 = vld [vmem:[%s6932_s0 + $0x68] sm:$0xff] }
   0x8   :  { %39 = vst.msk [vmem:[#allocation2 + $0x68] sm:$0x3] %vm26_vm1, %v6939_v2  ;;  %41 = vst.msk [vmem:[#allocation2 + $0x78] sm:$0x3] %vm26_vm1, %v6939_v2  ;;  %v80_v15 = vld [vmem:[%s6932_s0 + $0x70] sm:$0xff]  ;;  %v81_v16 = vld [vmem:[%s6932_s0 + $0x78] sm:$0xff] }
   0x9   :  { %42 = vst.msk [vmem:[#allocation2 + $0x80] sm:$0xff] %vm24_vm0, %v6939_v2  ;;  %44 = vst.msk [vmem:[#allocation2 + $0x90] sm:$0xff] %vm24_vm0, %v6939_v2  ;;  %v580_v17 = vld [vmem:[%s6933_s1 + $0x80] sm:$0xff]  ;;  %v581_v18 = vld [vmem:[%s6933_s1 + $0x88] sm:$0xff] }
   0xa   :  { %43 = vst.msk [vmem:[#allocation2 + $0x88] sm:$0x3] %vm26_vm1, %v6939_v2  ;;  %45 = vst.msk [vmem:[#allocation2 + $0x98] sm:$0x3] %vm26_vm1, %v6939_v2  ;;  %v564_v19 = vld [vmem:[%s6933_s1] sm:$0xff]  ;;  %v565_v20 = vld [vmem:[%s6933_s1 + $0x8] sm:$0xff]  ;;  %v3802_v21 = vpack.c.bf16 %v581_v18, %v580_v17 }
   0xb   :  { %46 = vst.msk [vmem:[#allocation2 + $0xa0] sm:$0xff] %vm24_vm0, %v6939_v2  ;;  %48 = vst.msk [vmem:[#allocation2 + $0xb0] sm:$0xff] %vm24_vm0, %v6939_v2  ;;  %v3804_v22 = vpack.c.bf16 %v565_v20, %v564_v19  ;;  %v582_v23 = vld [vmem:[%s6933_s1 + $0x90] sm:$0xff]  ;;  %v583_v24 = vld [vmem:[%s6933_s1 + $0x98] sm:$0xff] }
   0xc   :  { %47 = vst.msk [vmem:[#allocation2 + $0xa8] sm:$0x3] %vm26_vm1, %v6939_v2  ;;  %49 = vst.msk [vmem:[#allocation2 + $0xb8] sm:$0x3] %vm26_vm1, %v6939_v2  ;;  %v115_v25 = vld [vmem:[#allocation2 + $0x1] sm:$0xff]  ;;  %v3806_v26 = vpack.c.bf16 %v583_v24, %v582_v23  ;;  %3803 = vmatprep.subr.bf16.mxu0 %v3802_v21  ;;  %v566_v53 = vld [vmem:[%s6933_s1 + $0x10] sm:$0xff] }
   0xd   :  { %50 = vst.msk [vmem:[#allocation2 + $0xc0] sm:$0xff] %vm24_vm0, %v6939_v2  ;;  %52 = vst.msk [vmem:[#allocation2 + $0xd0] sm:$0xff] %vm24_vm0, %v6939_v2  ;;  %3805 = vmatpush3.bf16.msra.mxu0 %v3804_v22  ;;  %v567_v59 = vld [vmem:[%s6933_s1 + $0x18] sm:$0xff]  ;;  %v584_v60 = vld [vmem:[%s6933_s1 + $0xa0] sm:$0xff] }
   0xe   :  { %51 = vst.msk [vmem:[#allocation2 + $0xc8] sm:$0x3] %vm26_vm1, %v6939_v2  ;;  %53 = vst.msk [vmem:[#allocation2 + $0xd8] sm:$0x3] %vm26_vm1, %v6939_v2  ;;  %3807 = vmatprep.subr.bf16.mxu0 %v3806_v26  ;;  %v3808_v61 = vpack.c.bf16 %v567_v59, %v566_v53  ;;  %v585_v62 = vld [vmem:[%s6933_s1 + $0xa8] sm:$0xff]  ;;  %v568_v63 = vld [vmem:[%s6933_s1 + $0x20] sm:$0xff] }
   0xf   :  { %54 = vst.msk [vmem:[#allocation2 + $0xe0] sm:$0xff] %vm24_vm0, %v6939_v2  ;;  %56 = vst.msk [vmem:[#allocation2 + $0xf0] sm:$0xff] %vm24_vm0, %v6939_v2  ;;  %v588_v17 = vld [vmem:[%s6933_s1 + $0xc0] sm:$0xff]  ;;  %v589_v18 = vld [vmem:[%s6933_s1 + $0xc8] sm:$0xff] }
  0x10   :  { %55 = vst.msk [vmem:[#allocation2 + $0xe8] sm:$0x3] %vm26_vm1, %v6939_v2  ;;  %57 = vst.msk [vmem:[#allocation2 + $0xf8] sm:$0x3] %vm26_vm1, %v6939_v2  ;;  %v597_v20 = vld [vmem:[%s6933_s1 + $0x108] sm:$0xff]  ;;  %v591_v59 = vld [vmem:[%s6933_s1 + $0xd8] sm:$0xff] }
  0x11   :  { %58 = vst.msk [vmem:[#allocation2 + $0x100] sm:$0xff] %vm24_vm0, %v6939_v2  ;;  %60 = vst.msk [vmem:[#allocation2 + $0x110] sm:$0xff] %vm24_vm0, %v6939_v2  ;;  %3809 = vmatpush3.bf16.msra.mxu0 %v3808_v61  ;;  %v616_v61 = vld [vmem:[%s6933_s1 + $0x1a0] sm:$0xff] }
  0x12   :  { %59 = vst.msk [vmem:[#allocation2 + $0x108] sm:$0x3] %vm26_vm1, %v6939_v2  ;;  %61 = vst.msk [vmem:[#allocation2 + $0x118] sm:$0x3] %vm26_vm1, %v6939_v2 }
  0x13   :  { %62 = vst.msk [vmem:[#allocation2 + $0x120] sm:$0xff] %vm24_vm0, %v6939_v2  ;;  %64 = vst.msk [vmem:[#allocation2 + $0x130] sm:$0xff] %vm24_vm0, %v6939_v2  ;;  %v123_v51 = vld [vmem:[#allocation2 + $0xa1] sm:$0xff] }
  0x14   :  { %63 = vst.msk [vmem:[#allocation2 + $0x128] sm:$0x3] %vm26_vm1, %v6939_v2  ;;  %65 = vst.msk [vmem:[#allocation2 + $0x138] sm:$0x3] %vm26_vm1, %v6939_v2 }
  0x15   :  { %83 = vst.msk [vmem:[#allocation2 + $0x11] sm:$0xff] %vm24_vm0, %v66_v0  ;;  %84 = vst.msk [vmem:[#allocation2 + $0x21] sm:$0xff] %vm24_vm0, %v67_v1  ;;  %v569_v0 = vld [vmem:[%s6933_s1 + $0x28] sm:$0xff]  ;;  %v3810_v1 = vpack.c.bf16 %v585_v62, %v584_v60 }
  0x16   :  { %85 = vst.msk [vmem:[#allocation2 + $0x31] sm:$0xff] %vm24_vm0, %v68_v3  ;;  %86 = vst.msk [vmem:[#allocation2 + $0x41] sm:$0xff] %vm24_vm0, %v69_v4  ;;  %v586_v3 = vld [vmem:[%s6933_s1 + $0xb0] sm:$0xff]  ;;  %v587_v4 = vld [vmem:[%s6933_s1 + $0xb8] sm:$0xff] }
  0x17   :  { %87 = vst.msk [vmem:[#allocation2 + $0x51] sm:$0xff] %vm24_vm0, %v70_v5  ;;  %88 = vst.msk [vmem:[#allocation2 + $0x61] sm:$0xff] %vm24_vm0, %v71_v6  ;;  %3811 = vmatprep.subr.bf16.mxu0 %v3810_v1  ;;  %v617_v1 = vld [vmem:[%s6933_s1 + $0x1a8] sm:$0xff] }
  0x18   :  { %89 = vst.msk [vmem:[#allocation2 + $0x71] sm:$0xff] %vm24_vm0, %v72_v7  ;;  %90 = vst.msk [vmem:[#allocation2 + $0x81] sm:$0xff] %vm24_vm0, %v73_v8 }
  0x19   :  { %91 = vst.msk [vmem:[#allocation2 + $0xb1] sm:$0xff] %vm24_vm0, %v74_v9  ;;  %92 = vst.msk [vmem:[#allocation2 + $0xc1] sm:$0xff] %vm24_vm0, %v75_v10  ;;  %v3812_v10 = vpack.c.bf16 %v569_v0, %v568_v63 }
  0x1a   :  { %93 = vst.msk [vmem:[#allocation2 + $0xd1] sm:$0xff] %vm24_vm0, %v76_v11  ;;  %94 = vst.msk [vmem:[#allocation2 + $0xe1] sm:$0xff] %vm24_vm0, %v77_v12  ;;  %v570_v11 = vld [vmem:[%s6933_s1 + $0x30] sm:$0xff]  ;;  %v571_v12 = vld [vmem:[%s6933_s1 + $0x38] sm:$0xff] }
  0x1b   :  { %95 = vst.msk [vmem:[#allocation2 + $0xf1] sm:$0xff] %vm24_vm0, %v78_v13  ;;  %96 = vst.msk [vmem:[#allocation2 + $0x101] sm:$0xff] %vm24_vm0, %v79_v14  ;;  %v3814_v13 = vpack.c.bf16 %v587_v4, %v586_v3  ;;  %v612_v14 = vld [vmem:[%s6933_s1 + $0x180] sm:$0xff]  ;;  %3813 = vmatpush3.bf16.msra.mxu0 %v3812_v10  ;;  %v3842_v10 = vpack.c.bf16 %v617_v1, %v616_v61 }
  0x1c   :  { %97 = vst.msk [vmem:[#allocation2 + $0x111] sm:$0xff] %vm24_vm0, %v80_v15  ;;  %98 = vst.msk [vmem:[#allocation2 + $0x121] sm:$0xff] %vm24_vm0, %v81_v16  ;;  %v4315_v27 = vld [vmem:[#allocation2 + $0x10] sm:$0xff]  ;;  %v4317_v28 = vld [vmem:[#allocation2 + $0x21] sm:$0xff] }
  0x1d   :  { %v4319_v29 = vld [vmem:[#allocation2 + $0x30] sm:$0xff]  ;;  %v3925_v30 = vpack.i.bf16 %v115_v25, %v4315_v27  ;;  %v4326_v33 = vld [vmem:[#allocation2 + $0x20] sm:$0xff]  ;;  %v613_v15 = vld [vmem:[%s6933_s1 + $0x188] sm:$0xff]  ;;  %3815 = vmatprep.subr.bf16.mxu0 %v3814_v13 }
  0x1e   :  { %v3935_v31 = vpack.i.bf16 %v4317_v28, %v4319_v29  ;;  %v4324_v32 = vld [vmem:[#allocation2 + $0x11] sm:$0xff]  ;;  %v4330_v35 = vld [vmem:[#allocation2 + $0x40] sm:$0xff]  ;;  %v3834_v19 = vpack.c.bf16 %v613_v15, %v612_v14  ;;  %v593_v14 = vld [vmem:[%s6933_s1 + $0xe8] sm:$0xff] }
  0x1f   :  { %v4328_v34 = vld [vmem:[#allocation2 + $0x31] sm:$0xff]  ;;  %3926 = vrot.lane.b32.xlu0 %v3925_v30, %s4112_s16  ;;  %v3930_v36 = vpack.i.bf16 %v4324_v32, %v4326_v33  ;;  %v4338_v38 = vld [vmem:[#allocation2 + $0x41] sm:$0xff]  ;;  %v3816_v30 = vpack.c.bf16 %v571_v12, %v570_v11 }
  0x20   :  { %3936 = vrot.lane.b32.xlu1 %v3935_v31, %s4112_s16  ;;  %v3940_v37 = vpack.i.bf16 %v4328_v34, %v4330_v35  ;;  %v4340_v39 = vld [vmem:[#allocation2 + $0x50] sm:$0xff]  ;;  %v4344_v41 = vld [vmem:[#allocation2 + $0x60] sm:$0xff]  ;;  %3835 = vmatprep.subr.bf16.mxu1 %v3834_v19  ;;  %v601_v11 = vld [vmem:[%s6933_s1 + $0x128] sm:$0xff] }
  0x21   :  { %v4342_v40 = vld [vmem:[#allocation2 + $0x51] sm:$0xff]  ;;  %v3945_v42 = vpack.i.bf16 %v4338_v38, %v4340_v39  ;;  %v4352_v44 = vld [vmem:[#allocation2 + $0x61] sm:$0xff]  ;;  %3817 = vmatpush3.bf16.msra.mxu0 %v3816_v30 }
  0x22   :  { %v3950_v43 = vpack.i.bf16 %v4342_v40, %v4344_v41  ;;  %v4354_v45 = vld [vmem:[#allocation2 + $0x70] sm:$0xff]  ;;  %v4358_v47 = vld [vmem:[#allocation2 + $0x80] sm:$0xff]  ;;  %v603_v19 = vld [vmem:[%s6933_s1 + $0x138] sm:$0xff] }
  0x23   :  { %3931 = vrot.lane.b32.xlu0 %v3930_v36, %s4112_s16  ;;  %v4356_v46 = vld [vmem:[#allocation2 + $0x71] sm:$0xff]  ;;  %v3955_v48 = vpack.i.bf16 %v4352_v44, %v4354_v45  ;;  %v4378_v56 = vld [vmem:[#allocation2 + $0x22] sm:$0xff] }
  0x24   :  { %3941 = vrot.lane.b32.xlu1 %v3940_v37, %s4112_s16  ;;  %v3960_v49 = vpack.i.bf16 %v4356_v46, %v4358_v47  ;;  %v4366_v50 = vld [vmem:[#allocation2 + $0x12] sm:$0xff]  ;;  %v4382_v58 = vld [vmem:[#allocation2 + $0xc0] sm:$0xff]  ;;  %v3975_v5 = vpack.i.bf16 %v4378_v56, %v4328_v34 }
  0x25   :  { %v4368_v52 = vld [vmem:[#allocation2 + $0xb0] sm:$0xff]  ;;  %v3965_v54 = vpack.i.bf16 %v4366_v50, %v4317_v28  ;;  %v4413_v8 = vld [vmem:[#allocation2 + $0xc1] sm:$0xff]  ;;  %v615_v36 = vld [vmem:[%s6933_s1 + $0x198] sm:$0xff] }
  0x26   :  { %v3970_v55 = vpack.i.bf16 %v123_v51, %v4368_v52  ;;  %v4380_v57 = vld [vmem:[#allocation2 + $0xb1] sm:$0xff]  ;;  %v596_v16 = vld [vmem:[%s6933_s1 + $0x100] sm:$0xff] }
  0x27   :  { %3946 = vrot.lane.b32.xlu0 %v3945_v42, %s4112_s16  ;;  %v3980_v6 = vpack.i.bf16 %v4380_v57, %v4382_v58  ;;  %v4411_v7 = vld [vmem:[#allocation2 + $0x32] sm:$0xff]  ;;  %v4447_v23 = vld [vmem:[#allocation2 + $0x42] sm:$0xff]  ;;  %v3836_v26 = vpack.c.bf16 %v597_v20, %v596_v16  ;;  %v3818_v42 = vpack.c.bf16 %v589_v18, %v588_v17 }
  0x28   :  { %3951 = vrot.lane.b32.xlu1 %v3950_v43, %s4112_s16  ;;  %v4415_v9 = vld [vmem:[#allocation2 + $0xd0] sm:$0xff]  ;;  %v3985_v21 = vpack.i.bf16 %v4411_v7, %v4338_v38  ;;  %v4451_v25 = vld [vmem:[#allocation2 + $0xe0] sm:$0xff]  ;;  %v599_v51 = vld [vmem:[%s6933_s1 + $0x118] sm:$0xff]  ;;  %v3995_v62 = vpack.i.bf16 %v4447_v23, %v4342_v40 }
  0x29   :  { %v3990_v22 = vpack.i.bf16 %v4413_v8, %v4415_v9  ;;  %v4449_v24 = vld [vmem:[#allocation2 + $0xd1] sm:$0xff]  ;;  %v572_v43 = vld [vmem:[%s6933_s1 + $0x40] sm:$0xff]  ;;  %3837 = vmatpush3.bf16.msra.mxu1 %v3836_v26  ;;  %3819 = vmatprep.subr.bf16.mxu0 %v3818_v42  ;;  %v621_v42 = vld [vmem:[%s6933_s1 + $0x1c8] sm:$0xff] }
  0x2a   :  { %v614_v31 = vld [vmem:[%s6933_s1 + $0x190] sm:$0xff]  ;;  %v4000_v63 = vpack.i.bf16 %v4449_v24, %v4451_v25  ;;  %v600_v3 = vld [vmem:[%s6933_s1 + $0x120] sm:$0xff]  ;;  %v619_v17 = vld [vmem:[%s6933_s1 + $0x1b8] sm:$0xff] }
  0x2b   :  { %3956 = vrot.lane.b32.xlu0 %v3955_v48, %s4112_s16  ;;  %v598_v37 = vld [vmem:[%s6933_s1 + $0x110] sm:$0xff]  ;;  %v573_v48 = vld [vmem:[%s6933_s1 + $0x48] sm:$0xff]  ;;  %v592_v13 = vld [vmem:[%s6933_s1 + $0xe0] sm:$0xff]  ;;  %v3844_v15 = vpack.c.bf16 %v601_v11, %v600_v3 }
  0x2c   :  { %3961 = vrot.lane.b32.xlu1 %v3960_v49, %s4112_s16  ;;  %v3838_v49 = vpack.c.bf16 %v615_v36, %v614_v31  ;;  %v4471_v53 = vld [vmem:[#allocation2 + $0x52] sm:$0xff]  ;;  %v3840_v60 = vpack.c.bf16 %v599_v51, %v598_v37  ;;  %v3820_v4 = vpack.c.bf16 %v573_v48, %v572_v43  ;;  %v4535_v31 = vld [vmem:[#allocation2 + $0x100] sm:$0xff]  ;;  %v3826_v43 = vpack.c.bf16 %v593_v14, %v592_v13 }
  0x2d   :  { %v4490_v0 = vld [vmem:[#allocation2 + $0xf0] sm:$0xff]  ;;  %v4005_v20 = vpack.i.bf16 %v4471_v53, %v4352_v44  ;;  %v620_v37 = vld [vmem:[%s6933_s1 + $0x1c0] sm:$0xff] }
  0x2e   :  { %3839 = vmatprep.subr.bf16.mxu1 %v3838_v49  ;;  %v618_v16 = vld [vmem:[%s6933_s1 + $0x1b0] sm:$0xff]  ;;  %3821 = vmatpush3.bf16.msra.mxu0 %v3820_v4  ;;  %v576_v48 = vld [vmem:[%s6933_s1 + $0x60] sm:$0xff]  ;;  %v577_v49 = vld [vmem:[%s6933_s1 + $0x68] sm:$0xff]  ;;  %v3850_v61 = vpack.c.bf16 %v621_v42, %v620_v37 }
  0x2f   :  { %3966 = vrot.lane.b32.xlu0 %v3965_v54, %s4112_s16  ;;  %v4473_v54 = vld [vmem:[#allocation2 + $0xe1] sm:$0xff]  ;;  %3841 = vmatpush3.bf16.msra.mxu1 %v3840_v60  ;;  %v602_v18 = vld [vmem:[%s6933_s1 + $0x130] sm:$0xff]  ;;  %v3846_v30 = vpack.c.bf16 %v619_v17, %v618_v16  ;;  %v595_v60 = vld [vmem:[%s6933_s1 + $0xf8] sm:$0xff] }
  0x30   :  { %3971 = vrot.lane.b32.xlu1 %v3970_v55, %s4112_s16  ;;  %v590_v55 = vld [vmem:[%s6933_s1 + $0xd0] sm:$0xff]  ;;  %3843 = vmatprep.subr.bf16.mxu1 %v3842_v10  ;;  %v4569_v4 = vld [vmem:[#allocation2 + $0x81] sm:$0xff] }
  0x31   :  { %v3822_v12 = vpack.c.bf16 %v591_v59, %v590_v55  ;;  %v4533_v26 = vld [vmem:[#allocation2 + $0xf1] sm:$0xff]  ;;  %v3848_v55 = vpack.c.bf16 %v603_v19, %v602_v18  ;;  %v4577_v10 = vld [vmem:[#allocation2 + $0x101] sm:$0xff] }
  0x32   :  { %v594_v51 = vld [vmem:[%s6933_s1 + $0xf0] sm:$0xff]  ;;  %v4020_v3 = vpack.i.bf16 %v4533_v26, %v4535_v31  ;;  %v628_v16 = vld [vmem:[%s6933_s1 + $0x200] sm:$0xff]  ;;  %v629_v17 = vld [vmem:[%s6933_s1 + $0x208] sm:$0xff] }
  0x33   :  { %3976 = vrot.lane.b32.xlu0 %v3975_v5, %s4112_s16  ;;  %v574_v5 = vld [vmem:[%s6933_s1 + $0x50] sm:$0xff]  ;;  %3823 = vmatprep.subr.bf16.mxu0 %v3822_v12  ;;  %v3828_v12 = vpack.c.bf16 %v577_v49, %v576_v48  ;;  %v3830_v14 = vpack.c.bf16 %v595_v60, %v594_v51 }
  0x34   :  { %3981 = vrot.lane.b32.xlu1 %v3980_v6, %s4112_s16  ;;  %v575_v6 = vld [vmem:[%s6933_s1 + $0x58] sm:$0xff]  ;;  %3845 = vmatpush3.bf16.msra.mxu1 %v3844_v15  ;;  %v4579_v11 = vld [vmem:[#allocation2 + $0x110] sm:$0xff] }
  0x35   :  { %v3824_v36 = vpack.c.bf16 %v575_v6, %v574_v5  ;;  %v4552_v59 = vld [vmem:[#allocation2 + $0x72] sm:$0xff]  ;;  %3847 = vmatprep.subr.bf16.mxu1 %v3846_v30  ;;  %v624_v30 = vld [vmem:[%s6933_s1 + $0x1e0] sm:$0xff]  ;;  %v4030_v37 = vpack.i.bf16 %v4577_v10, %v4579_v11 }
  0x36   :  { %v622_v5 = vld [vmem:[%s6933_s1 + $0x1d0] sm:$0xff]  ;;  %v623_v6 = vld [vmem:[%s6933_s1 + $0x1d8] sm:$0xff] }
  0x37   :  { %3986 = vrot.lane.b32.xlu0 %v3985_v21, %s4112_s16  ;;  %v4010_v21 = vpack.i.bf16 %v4473_v54, %v4490_v0  ;;  %3825 = vmatpush3.bf16.msra.mxu0 %v3824_v36  ;;  %v578_v13 = vld [vmem:[%s6933_s1 + $0x70] sm:$0xff]  ;;  %v579_v15 = vld [vmem:[%s6933_s1 + $0x78] sm:$0xff]  ;;  %v3854_v19 = vpack.c.bf16 %v623_v6, %v622_v5  ;;  %v4025_v36 = vpack.i.bf16 %v4552_v59, %v4569_v4 }
  0x38   :  { %3991 = vrot.lane.b32.xlu1 %v3990_v22, %s4112_s16  ;;  %v4531_v22 = vld [vmem:[#allocation2 + $0x62] sm:$0xff]  ;;  %3827 = vmatprep.subr.bf16.mxu0 %v3826_v43  ;;  %v219_v42 = vld [vmem:[#allocation2 + $0x91] sm:$0xff] }
  0x39   :  { %v4015_v1 = vpack.i.bf16 %v4531_v22, %v4356_v46  ;;  %3849 = vmatpush3.bf16.msra.mxu1 %v3848_v55  ;;  %v625_v43 = vld [vmem:[%s6933_s1 + $0x1e8] sm:$0xff] }
  0x3a   :  { %3851 = vmatprep.subr.bf16.mxu1 %v3850_v61 }
  0x3b   :  { %3996 = vrot.lane.b32.xlu0 %v3995_v62, %s4112_s16  ;;  %v604_v62 = vld [vmem:[%s6933_s1 + $0x140] sm:$0xff] }
  0x3c   :  { %4001 = vrot.lane.b32.xlu1 %v4000_v63, %s4112_s16  ;;  %v605_v63 = vld [vmem:[%s6933_s1 + $0x148] sm:$0xff] }
  0x3d   :  { %v3852_v18 = vpack.c.bf16 %v605_v63, %v604_v62 }
  0x3f   :  { %4006 = vrot.lane.b32.xlu0 %v4005_v20, %s4112_s16  ;;  %v606_v20 = vld [vmem:[%s6933_s1 + $0x150] sm:$0xff] }
  0x40   :  { %4011 = vrot.lane.b32.xlu1 %v4010_v21, %s4112_s16  ;;  %v607_v21 = vld [vmem:[%s6933_s1 + $0x158] sm:$0xff] }
  0x43   :  { %4016 = vrot.lane.b32.xlu0 %v4015_v1, %s4112_s16 }
  0x44   :  { %4021 = vrot.lane.b32.xlu1 %v4020_v3, %s4112_s16 }
  0x45   :  { %11 = vsyncpa [#allocation6], 0  ;;  %v4611_v48 = vld [vmem:[#allocation2 + $0x82] sm:$0xff]  ;;  %v4613_v49 = vld [vmem:[#allocation2 + $0x111] sm:$0xff]  ;;  %3829 = vmatpush3.bf16.msra.mxu0 %v3828_v12  ;;  %v3832_v55 = vpack.c.bf16 %v579_v15, %v578_v13  ;;  %v4617_v60 = vpack.c.bf16 %v629_v17, %v628_v16  ;;  %3853 = vmatpush3.bf16.msra.mxu1 %v3852_v18  ;;  %v3856_v61 = vpack.c.bf16 %v607_v21, %v606_v20  ;;  %vm4114_vm2 = vmmov 0  }
  0x46   :  { %7158 = vst [vmem:[#allocation8_spill] sm:$0xff] %v4611_v48  ;;  %v4615_v51 = vld [vmem:[#allocation2 + $0x120] sm:$0xff]  ;;  %3831 = vmatprep.subr.bf16.mxu0 %v3830_v14  ;;  %3855 = vmatprep.subr.bf16.mxu1 %v3854_v19  ;;  %v3858_v62 = vpack.c.bf16 %v625_v43, %v624_v30  ;;  %v609_v1 = vld [vmem:[%s6933_s1 + $0x168] sm:$0xff]  ;;  %v4035_v3 = vpack.i.bf16 %v4611_v48, %v219_v42  ;;  %v626_v6 = vld [vmem:[%s6933_s1 + $0x1f0] sm:$0xff]  ;;  %vm1229_vm3 = vcmask 1041409   ;;  %vm1390_vm4 = vcmask 261120  }
  0x47   :  { %v608_v63 = vld [vmem:[%s6933_s1 + $0x160] sm:$0xff]  ;;  %4026 = vrot.lane.b32.xlu0 %v4025_v36, %s4112_s16  ;;  %v4040_v5 = vpack.i.bf16 %v4613_v49, %v4615_v51  ;;  %v627_v12 = vld [vmem:[%s6933_s1 + $0x1f8] sm:$0xff]  ;;  %v610_v17 = vld [vmem:[%s6933_s1 + $0x170] sm:$0xff]  ;;  %vm2343_vm5 = vcmask 1042434   ;;  %vm2346_vm6 = vcmask 1043459   ;;  %vm2349_vm7 = vcmask 1044484  }
  0x48   :  { %4031 = vrot.lane.b32.xlu1 %v4030_v37, %s4112_s16  ;;  %v4636_v13 = vld [vmem:[#allocation2 + $0xb2] sm:$0xff]  ;;  %v4638_v14 = vld [vmem:[#allocation2 + $0xc2] sm:$0xff]  ;;  %v3860_v15 = vpack.c.bf16 %v609_v1, %v608_v63  ;;  %v3862_v16 = vpack.c.bf16 %v627_v12, %v626_v6  ;;  %vm2352_vm8 = vcmask 1045509   ;;  %vm2355_vm9 = vcmask 1046534  }
  0x49   :  { %3833 = vmatpush3.bf16.msra.mxu0 %v3832_v55  ;;  %3857 = vmatpush3.bf16.msra.mxu1 %v3856_v61  ;;  %v611_v18 = vld [vmem:[%s6933_s1 + $0x178] sm:$0xff]  ;;  %v4045_v19 = vpack.i.bf16 %v4636_v13, %v4413_v8  ;;  %v4050_v20 = vpack.i.bf16 %v4638_v14, %v4449_v24  ;;  %v4655_v30 = vld [vmem:[#allocation2 + $0xe2] sm:$0xff]  ;;  %vm2358_vm10 = vcmask 1047559  }
  0x4a   :  { %3867 = vmatprep.subr.bf16.mxu0 %v4617_v60  ;;  %3859 = vmatprep.subr.bf16.mxu1 %v3858_v62  ;;  %v4653_v21 = vld [vmem:[#allocation2 + $0xd2] sm:$0xff]  ;;  %v3864_v36 = vpack.c.bf16 %v611_v18, %v610_v17  ;;  %v4060_v42 = vpack.i.bf16 %v4655_v30, %v4533_v26  ;;  %v4665_v55 = vld [vmem:[#allocation2 + $0x102] sm:$0xff] }
  0x4b   :  { %4036 = vrot.lane.b32.xlu0 %v4035_v3, %s4112_s16  ;;  %v4055_v37 = vpack.i.bf16 %v4653_v21, %v4473_v54  ;;  %v4663_v43 = vld [vmem:[#allocation2 + $0xf2] sm:$0xff]  ;;  %v4070_v62 = vpack.i.bf16 %v4665_v55, %v4613_v49  ;;  %v4675_v1 = vld [vmem:[#allocation2 + $0x121] sm:$0xff] }
  0x4c   :  { %4041 = vrot.lane.b32.xlu1 %v4040_v5, %s4112_s16  ;;  %v4065_v61 = vpack.i.bf16 %v4663_v43, %v4577_v10  ;;  %v4673_v63 = vld [vmem:[#allocation2 + $0x112] sm:$0xff]  ;;  %7159 = vst [vmem:[#allocation9_spill] sm:$0xff] %v4675_v1  ;;  %v4677_v3 = vld [vmem:[#allocation2 + $0x122] sm:$0xff] }
  0x4d   :  { %3861 = vmatpush3.bf16.msra.mxu1 %v3860_v15  ;;  %7160 = vst [vmem:[#allocation10_spill] sm:$0xff] %v4677_v3  ;;  %v227_v5 = vld [vmem:[#allocation2 + $0x131] sm:$0xff]  ;;  %v4075_v6 = vpack.i.bf16 %v4673_v63, %v4675_v1  ;;  %v131_v15 = vld [vmem:[#allocation2 + $0x2] sm:$0xff] }
  0x4e   :  { %3863 = vmatprep.subr.bf16.mxu1 %v3862_v16  ;;  %v4080_v12 = vpack.i.bf16 %v4677_v3, %v227_v5  ;;  %v99_v18 = vld [vmem:[#allocation2] sm:$0xff] }
  0x4f   :  { %4046 = vrot.lane.b32.xlu0 %v4045_v19, %s4112_s16  ;;  %v630_v19 = vld [vmem:[%s6933_s1 + $0x210] sm:$0xff] }
  0x50   :  { %4051 = vrot.lane.b32.xlu1 %v4050_v20, %s4112_s16  ;;  %v631_v20 = vld [vmem:[%s6933_s1 + $0x218] sm:$0xff] }
  0x51   :  { %3865 = vmatpush3.bf16.msra.mxu1 %v3864_v36  ;;  %v3870_v5 = vpack.c.bf16 %v631_v20, %v630_v19 }
  0x53   :  { %4056 = vrot.lane.b32.xlu0 %v4055_v37, %s4112_s16 }
  0x54   :  { %4061 = vrot.lane.b32.xlu1 %v4060_v42, %s4112_s16 }
  0x57   :  { %4066 = vrot.lane.b32.xlu0 %v4065_v61, %s4112_s16 }
  0x58   :  { %4071 = vrot.lane.b32.xlu1 %v4070_v62, %s4112_s16 }
  0x5b   :  { %4076 = vrot.lane.b32.xlu0 %v4075_v6, %s4112_s16  ;;  %v632_v6 = vld [vmem:[%s6933_s1 + $0x220] sm:$0xff] }
  0x5c   :  { %4081 = vrot.lane.b32.xlu1 %v4080_v12, %s4112_s16  ;;  %v633_v12 = vld [vmem:[%s6933_s1 + $0x228] sm:$0xff] }
  0x91   :  { %v3927_v16 = vpop.permute.xlu0 %3926 }
  0x92   :  { %v3937_v17 = vpop.permute.xlu1 %3936  ;;  %v3929_v36 = vunpack.i.h.bf16 %v3927_v16  ;;  %v3928_v37 = vunpack.i.l.bf16 %v3927_v16 }
  0x93   :  { %v3938_v42 = vunpack.i.l.bf16 %v3937_v17  ;;  %v3939_v16 = vunpack.i.h.bf16 %v3937_v17 }
  0x94   :  { %v516_v61 = vsel %vm24_vm0, %v131_v15, %v3928_v37  ;;  %v500_v62 = vsel %vm24_vm0, %v99_v18, %v3929_v36  ;;  %v3874_v15 = vpack.c.bf16 %v633_v12, %v632_v6 }
  0x95   :  { %v3932_v2 = vpop.permute.xlu0 %3931  ;;  %748 = vmatprep.mubr.f32.mxu0 %v516_v61  ;;  %v518_v36 = vsel %vm24_vm0, %v4378_v56, %v3938_v42 }
  0x96   :  { %v3942_v3 = vpop.permute.xlu1 %3941  ;;  %v3934_v1 = vunpack.i.h.bf16 %v3932_v2  ;;  %v3933_v48 = vunpack.i.l.bf16 %v3932_v2  ;;  %749 = vmatmul.mubr.f32.vlgmr.msra.gmra.mrb[0].mxu0 %v500_v62  ;;  %v634_v2 = vld [vmem:[%s6933_s1 + $0x230] sm:$0xff] }
  0x97   :  { %3869 = vmatpush3.bf16.msra.mxu0 %v4617_v60  ;;  %v3943_v18 = vunpack.i.l.bf16 %v3942_v3  ;;  %v635_v60 = vld [vmem:[%s6933_s1 + $0x238] sm:$0xff] }
  0x98   :  { %v517_v19 = vsel %vm24_vm0, %v4366_v50, %v3933_v48  ;;  %v501_v20 = vsel %vm24_vm0, %v4315_v27, %v3934_v1  ;;  %3871 = vmatprep.subr.bf16.mxu0 %v3870_v5  ;;  %v3944_v50 = vunpack.i.h.bf16 %v3942_v3  ;;  %v502_v27 = vsel %vm24_vm0, %v4326_v33, %v3939_v16 }
  0x99   :  { %v3947_v37 = vpop.permute.xlu0 %3946  ;;  %753 = vmatprep.mubr.f32.mxu0 %v517_v19  ;;  %v519_v1 = vsel %vm24_vm0, %v4411_v7, %v3943_v18  ;;  %v3878_v17 = vpack.c.bf16 %v635_v60, %v634_v2 }
  0x9a   :  { %v3952_v61 = vpop.permute.xlu1 %3951  ;;  %754 = vmatmul.mubr.f32.gmra.mrb[2].mxu0 %v501_v20  ;;  %v3948_v48 = vunpack.i.l.bf16 %v3947_v37  ;;  %v3949_v6 = vunpack.i.h.bf16 %v3947_v37  ;;  %v503_v12 = vsel %vm24_vm0, %v4319_v29, %v3944_v50 }
  0x9b   :  { %758 = vmatprep.mubr.f32.mxu0 %v518_v36  ;;  %3873 = vmatpush3.bf16.msra.mxu0 %v3870_v5  ;;  %v3953_v3 = vunpack.i.l.bf16 %v3952_v61  ;;  %v3954_v36 = vunpack.i.h.bf16 %v3952_v61 }
  0x9c   :  { %3875 = vmatprep.subr.bf16.mxu0 %v3874_v15  ;;  %v520_v16 = vsel %vm24_vm0, %v4447_v23, %v3948_v48  ;;  %v504_v37 = vsel %vm24_vm0, %v4330_v35, %v3949_v6 }
  0x9d   :  { %v3957_v42 = vpop.permute.xlu0 %3956  ;;  %v521_v50 = vsel %vm24_vm0, %v4471_v53, %v3953_v3 }
  0x9e   :  { %v3962_v62 = vpop.permute.xlu1 %3961  ;;  %759 = vmatmul.mubr.f32.gmra.mrb[4].mxu0 %v502_v27  ;;  %v3958_v2 = vunpack.i.l.bf16 %v3957_v42  ;;  %v3959_v6 = vunpack.i.h.bf16 %v3957_v42 }
  0x9f   :  { %763 = vmatprep.mubr.f32.mxu0 %v519_v1  ;;  %3877 = vmatpush3.bf16.msra.mxu0 %v3874_v15 }
  0xa0   :  { %3879 = vmatprep.subr.bf16.mxu0 %v3878_v17  ;;  %v522_v3 = vsel %vm24_vm0, %v4531_v22, %v3958_v2 }
  0xa1   :  { %v3967_v5 = vpop.permute.xlu0 %3966 }
  0xa2   :  { %v4721_v19 = vpop.permute.xlu1 %3971  ;;  %v3969_v18 = vunpack.i.h.bf16 %v3967_v5  ;;  %v3968_v20 = vunpack.i.l.bf16 %v3967_v5  ;;  %764 = vmatmul.mubr.f32.gmra.mrb[6].mxu0 %v503_v12 }
  0xa3   :  { %768 = vmatprep.mubr.f32.mxu0 %v520_v16  ;;  %3881 = vmatpush3.bf16.msra.mxu0 %v3878_v17  ;;  %v505_v17 = vsel %vm24_vm0, %v4340_v39, %v3954_v36  ;;  %v506_v36 = vsel %vm24_vm0, %v4344_v41, %v3959_v6 }
  0xa4   :  { %v548_v15 = vsel %vm24_vm0, %v4326_v33, %v3968_v20  ;;  %v532_v60 = vsel %vm24_vm0, %v4324_v32, %v3969_v18  ;;  %v3963_v33 = vunpack.i.l.bf16 %v3962_v62  ;;  %v3964_v20 = vunpack.i.h.bf16 %v3962_v62  ;;  %v139_v62 = vld [vmem:[#allocation2 + $0xa2] sm:$0xff] }
  0xa5   :  { %v3977_v27 = vpop.permute.xlu0 %3976  ;;  %893 = vmatprep.mubr.f32.mxu1 %v548_v15 }
  0xa6   :  { %v4731_v48 = vpop.permute.xlu1 %3981  ;;  %v3979_v61 = vunpack.i.h.bf16 %v3977_v27  ;;  %v3978_v1 = vunpack.i.l.bf16 %v3977_v27  ;;  %769 = vmatmul.mubr.f32.gmra.mrb[8].mxu0 %v504_v37  ;;  %894 = vmatmul.mubr.f32.vlgmr.msra.gmra.mrb[0].mxu1 %v532_v60  ;;  %v523_v2 = vsel %vm24_vm0, %v4552_v59, %v3963_v33  ;;  %v107_v33 = vld [vmem:[#allocation2 + $0xa0] sm:$0xff] }
  0xa7   :  { %773 = vmatprep.mubr.f32.mxu0 %v521_v50 }
  0xa8   :  { %v549_v32 = vsel %vm24_vm0, %v4319_v29, %v3978_v1  ;;  %v533_v12 = vsel %vm24_vm0, %v4317_v28, %v3979_v61  ;;  %v3973_v29 = vunpack.i.l.bf16 %v4721_v19  ;;  %v3974_v61 = vunpack.i.h.bf16 %v4721_v19 }
  0xa9   :  { %v3987_v16 = vpop.permute.xlu0 %3986  ;;  %898 = vmatprep.mubr.f32.mxu1 %v549_v32 }
  0xaa   :  { %v4741_v5 = vpop.permute.xlu1 %3991  ;;  %v3989_v18 = vunpack.i.h.bf16 %v3987_v16  ;;  %v3988_v42 = vunpack.i.l.bf16 %v3987_v16  ;;  %774 = vmatmul.mubr.f32.gmra.mrb[10].mxu0 %v505_v17  ;;  %899 = vmatmul.mubr.f32.gmra.mrb[2].mxu1 %v533_v12  ;;  %v524_v17 = vsel %vm24_vm0, %v139_v62, %v3973_v29  ;;  %v3984_v16 = vunpack.i.h.bf16 %v4731_v48 }
  0xab   :  { %778 = vmatprep.mubr.f32.mxu0 %v522_v3 }
  0xac   :  { %v550_v28 = vsel %vm24_vm0, %v4330_v35, %v3988_v42  ;;  %v534_v37 = vsel %vm24_vm0, %v4328_v34, %v3989_v18  ;;  %v507_v35 = vsel %vm24_vm0, %v4354_v45, %v3964_v20  ;;  %v3983_v34 = vunpack.i.l.bf16 %v4731_v48 }
  0xad   :  { %v3997_v15 = vpop.permute.xlu0 %3996  ;;  %903 = vmatprep.mubr.f32.mxu1 %v550_v28  ;;  %v508_v18 = vsel %vm24_vm0, %v107_v33, %v3974_v61 }
  0xae   :  { %v4752_v60 = vpop.permute.xlu1 %4001  ;;  %v3999_v50 = vunpack.i.h.bf16 %v3997_v15  ;;  %v3998_v27 = vunpack.i.l.bf16 %v3997_v15  ;;  %779 = vmatmul.mubr.f32.gmra.mrb[12].mxu0 %v506_v36  ;;  %904 = vmatmul.mubr.f32.gmra.mrb[4].mxu1 %v534_v37  ;;  %v525_v20 = vsel %vm24_vm0, %v4636_v13, %v3983_v34  ;;  %v3994_v37 = vunpack.i.h.bf16 %v4741_v5 }
  0xaf   :  { %783 = vmatprep.mubr.f32.mxu0 %v523_v2  ;;  %v4003_v2 = vunpack.i.l.bf16 %v4752_v60 }
  0xb0   :  { %v551_v1 = vsel %vm24_vm0, %v4340_v39, %v3998_v27  ;;  %v535_v6 = vsel %vm24_vm0, %v4338_v38, %v3999_v50  ;;  %v3993_v39 = vunpack.i.l.bf16 %v4741_v5 }
  0xb1   :  { %v4007_v32 = vpop.permute.xlu0 %4006  ;;  %908 = vmatprep.mubr.f32.mxu1 %v551_v1  ;;  %v527_v34 = vsel %vm24_vm0, %v4653_v21, %v4003_v2 }
  0xb2   :  { %v4763_v12 = vpop.permute.xlu1 %4011  ;;  %v4009_v19 = vunpack.i.h.bf16 %v4007_v32  ;;  %v4008_v3 = vunpack.i.l.bf16 %v4007_v32  ;;  %784 = vmatmul.mubr.f32.gmra.mrb[14].mxu0 %v507_v35  ;;  %909 = vmatmul.mubr.f32.gmra.mrb[6].mxu1 %v535_v6  ;;  %v526_v15 = vsel %vm24_vm0, %v4638_v14, %v3993_v39 }
  0xb3   :  { %788 = vmatprep.mubr.f32.mxu0 %v524_v17  ;;  %v4013_v61 = vunpack.i.l.bf16 %v4763_v12  ;;  %v4014_v32 = vunpack.i.h.bf16 %v4763_v12 }
  0xb4   :  { %v552_v38 = vsel %vm24_vm0, %v4344_v41, %v4008_v3  ;;  %v536_v42 = vsel %vm24_vm0, %v4342_v40, %v4009_v19  ;;  %v509_v41 = vsel %vm24_vm0, %v4368_v52, %v3984_v16  ;;  %v4004_v52 = vunpack.i.h.bf16 %v4752_v60  ;;  %v203_v60 = vld [vmem:[#allocation2 + $0x90] sm:$0xff] }
  0xb5   :  { %v4017_v36 = vpop.permute.xlu0 %4016  ;;  %913 = vmatprep.mubr.f32.mxu1 %v552_v38  ;;  %v528_v16 = vsel %vm24_vm0, %v4655_v30, %v4013_v61 }
  0xb6   :  { %v4774_v29 = vpop.permute.xlu1 %4021  ;;  %v4019_v28 = vunpack.i.h.bf16 %v4017_v36  ;;  %v4018_v48 = vunpack.i.l.bf16 %v4017_v36  ;;  %789 = vmatmul.mubr.f32.gmra.mrb[16].mxu0 %v508_v18  ;;  %914 = vmatmul.mubr.f32.gmra.mrb[8].mxu1 %v536_v42 }
  0xb7   :  { %793 = vmatprep.mubr.f32.mxu0 %v525_v20  ;;  %v4023_v19 = vunpack.i.l.bf16 %v4774_v29  ;;  %v4024_v20 = vunpack.i.h.bf16 %v4774_v29 }
  0xb8   :  { %v553_v40 = vsel %vm24_vm0, %v4354_v45, %v4018_v48  ;;  %v537_v13 = vsel %vm24_vm0, %v4352_v44, %v4019_v28  ;;  %v510_v45 = vsel %vm24_vm0, %v4382_v58, %v3994_v37  ;;  %v512_v28 = vsel %vm24_vm0, %v4451_v25, %v4014_v32 }
  0xb9   :  { %v4027_v62 = vpop.permute.xlu0 %4026  ;;  %918 = vmatprep.mubr.f32.mxu1 %v553_v40 }
  0xba   :  { %v4786_v50 = vpop.permute.xlu1 %4031  ;;  %v4029_v5 = vunpack.i.h.bf16 %v4027_v62  ;;  %v4028_v27 = vunpack.i.l.bf16 %v4027_v62  ;;  %794 = vmatmul.mubr.f32.gmra.mrb[18].mxu0 %v509_v41  ;;  %919 = vmatmul.mubr.f32.gmra.mrb[10].mxu1 %v537_v13 }
  0xbb   :  { %798 = vmatprep.mubr.f32.mxu0 %v526_v15  ;;  %v4033_v48 = vunpack.i.l.bf16 %v4786_v50  ;;  %v4034_v15 = vunpack.i.h.bf16 %v4786_v50 }
  0xbc   :  { %v554_v44 = vsel %vm24_vm0, %v4358_v47, %v4028_v27  ;;  %v538_v35 = vsel %vm24_vm0, %v4356_v46, %v4029_v5  ;;  %v511_v46 = vsel %vm24_vm0, %v4415_v9, %v4004_v52 }
  0xbd   :  { %v4037_v1 = vpop.permute.xlu0 %4036  ;;  %923 = vmatprep.mubr.f32.mxu1 %v554_v44  ;;  %v530_v27 = vsel %vm24_vm0, %v4665_v55, %v4033_v48 }
  0xbe   :  { %v4798_v6 = vpop.permute.xlu1 %4041  ;;  %v4039_v17 = vunpack.i.h.bf16 %v4037_v1  ;;  %v4038_v33 = vunpack.i.l.bf16 %v4037_v1  ;;  %799 = vmatmul.mubr.f32.gmra.mrb[20].mxu0 %v510_v45  ;;  %924 = vmatmul.mubr.f32.gmra.mrb[12].mxu1 %v538_v35 }
  0xbf   :  { %803 = vmatprep.mubr.f32.mxu0 %v527_v34  ;;  %v4043_v5 = vunpack.i.l.bf16 %v4798_v6  ;;  %v4044_v50 = vunpack.i.h.bf16 %v4798_v6 }
  0xc0   :  { %v555_v47 = vsel %vm24_vm0, %v203_v60, %v4038_v33  ;;  %v539_v3 = vsel %vm24_vm0, %v4569_v4, %v4039_v17  ;;  %v529_v4 = vsel %vm24_vm0, %v4663_v43, %v4023_v19 }
  0xc1   :  { %v4047_v18 = vpop.permute.xlu0 %4046  ;;  %928 = vmatprep.mubr.f32.mxu1 %v555_v47  ;;  %v531_v34 = vsel %vm24_vm0, %v4673_v63, %v4043_v5  ;;  %v515_v60 = vsel %vm24_vm0, %v4579_v11, %v4044_v50 }
  0xc2   :  { %v4052_v39 = vpop.permute.xlu1 %4051  ;;  %v4049_v38 = vunpack.i.h.bf16 %v4047_v18  ;;  %v4048_v42 = vunpack.i.l.bf16 %v4047_v18  ;;  %804 = vmatmul.mubr.f32.gmra.mrb[22].mxu0 %v511_v46  ;;  %929 = vmatmul.mubr.f32.gmra.mrb[14].mxu1 %v539_v3  ;;  %v235_v18 = vld [vmem:[#allocation2 + $0x92] sm:$0xff] }
  0xc3   :  { %v4053_v12 = vunpack.i.l.bf16 %v4052_v39  ;;  %v4054_v36 = vunpack.i.h.bf16 %v4052_v39  ;;  %808 = vmatprep.mubr.f32.mxu0 %v528_v16  ;;  %v211_v16 = vld [vmem:[#allocation2 + $0x130] sm:$0xff]  ;;  %v1223_v39 = vld [vmem:[%s6936_s4 + $0x20] sm:$0xff] }
  0xc4   :  { %v556_v37 = vsel %vm24_vm0, %v4382_v58, %v4048_v42  ;;  %v540_v41 = vsel %vm24_vm0, %v4380_v57, %v4049_v38  ;;  %v513_v58 = vsel %vm24_vm0, %v4490_v0, %v4024_v20  ;;  %v1224_v38 = vld [vmem:[%s6936_s4 + $0x28] sm:$0xff]  ;;  %v1226_v20 = vld [vmem:[%s6936_s4 + $0x38] sm:$0xff] }
  0xc5   :  { %v557_v2 = vsel %vm24_vm0, %v4415_v9, %v4053_v12  ;;  %933 = vmatprep.mubr.f32.mxu1 %v556_v37  ;;  %v4057_v29 = vpop.permute.xlu0 %4056  ;;  %v541_v57 = vsel %vm24_vm0, %v4413_v8, %v4054_v36  ;;  %v514_v8 = vsel %vm24_vm0, %v4535_v31, %v4034_v15  ;;  %v4917_v42 = vpack.c.bf16 %v1224_v38, %v1223_v39  ;;  %v1225_v12 = vld [vmem:[%s6936_s4 + $0x30] sm:$0xff] }
  0xc6   :  { %v4062_v40 = vpop.permute.xlu1 %4061  ;;  %809 = vmatmul.mubr.f32.gmra.mrb[24].mxu0 %v512_v28  ;;  %934 = vmatmul.mubr.f32.gmra.mrb[16].mxu1 %v540_v41  ;;  %v4058_v13 = vunpack.i.l.bf16 %v4057_v29  ;;  %v4059_v62 = vunpack.i.h.bf16 %v4057_v29  ;;  %v4927_v36 = vpack.c.bf16 %v1226_v20, %v1225_v12  ;;  %v7164_v28 = vmov 0.0   ;;  %v1386_v41 = vld [vmem:[%s6937_s5] sm:$0xff] }
  0xc7   :  { %813 = vmatprep.mubr.f32.mxu0 %v529_v4  ;;  %938 = vmatprep.mubr.f32.mxu1 %v557_v2  ;;  %v4063_v9 = vunpack.i.l.bf16 %v4062_v40  ;;  %v4064_v61 = vunpack.i.h.bf16 %v4062_v40  ;;  %v1387_v2 = vld [vmem:[%s6937_s5 + $0x8] sm:$0xff] }
  0xc8   :  { %v558_v52 = vsel %vm24_vm0, %v4451_v25, %v4058_v13  ;;  %v542_v44 = vsel %vm24_vm0, %v4449_v24, %v4059_v62  ;;  %v4941_v40 = vpack.c.bf16 %v1387_v2, %v1386_v41 }
  0xc9   :  { %v4067_v45 = vpop.permute.xlu0 %4066  ;;  %v559_v25 = vsel %vm24_vm0, %v4490_v0, %v4063_v9  ;;  %v543_v17 = vsel %vm24_vm0, %v4473_v54, %v4064_v61 }
  0xca   :  { %814 = vmatmul.mubr.f32.gmra.mrb[26].mxu0 %v513_v58  ;;  %939 = vmatmul.mubr.f32.gmra.mrb[18].mxu1 %v541_v57  ;;  %v4068_v35 = vunpack.i.l.bf16 %v4067_v45  ;;  %v4072_v1 = vpop.permute.xlu1 %4071  ;;  %v4069_v6 = vunpack.i.h.bf16 %v4067_v45 }
  0xcb   :  { %818 = vmatprep.mubr.f32.mxu0 %v530_v27  ;;  %943 = vmatprep.mubr.f32.mxu1 %v558_v52  ;;  %v4073_v24 = vunpack.i.l.bf16 %v4072_v1  ;;  %v4074_v0 = vunpack.i.h.bf16 %v4072_v1 }
  0xcc   :  { %v560_v33 = vsel %vm24_vm0, %v4535_v31, %v4068_v35  ;;  %v544_v19 = vsel %vm24_vm0, %v4533_v26, %v4069_v6 }
  0xcd   :  { %v4077_v32 = vpop.permute.xlu0 %4076  ;;  %v561_v47 = vsel %vm24_vm0, %v4579_v11, %v4073_v24 }
  0xce   :  { %819 = vmatmul.mubr.f32.gmra.mrb[28].mxu0 %v514_v8  ;;  %944 = vmatmul.mubr.f32.gmra.mrb[20].mxu1 %v542_v44  ;;  %v4078_v46 = vunpack.i.l.bf16 %v4077_v32  ;;  %v4082_v54 = vpop.permute.xlu1 %4081  ;;  %v4079_v31 = vunpack.i.h.bf16 %v4077_v32 }
  0xcf   :  { %823 = vmatprep.mubr.f32.mxu0 %v531_v34  ;;  %948 = vmatprep.mubr.f32.mxu1 %v559_v25  ;;  %v4083_v3 = vunpack.i.l.bf16 %v4082_v54  ;;  %v4084_v11 = vunpack.i.h.bf16 %v4082_v54 }
  0xd0   :  { %v562_v26 = vsel %vm24_vm0, %v4615_v51, %v4078_v46  ;;  %v7162_v51 = vld [vmem:[#allocation9_spill] sm:$0xff] }
  0xd2   :  { %824 = vmatmul.mubr.f32.gmra.mrb[30].mxu0 %v515_v60  ;;  %949 = vmatmul.mubr.f32.gmra.mrb[22].mxu1 %v543_v17 }
  0xd3   :  { %953 = vmatprep.mubr.f32.mxu1 %v560_v33  ;;  %3718 = vmatprep.mubr.msk.f32.mxu0 %vm24_vm0, %v4378_v56  ;;  %v545_v56 = vsel %vm24_vm0, %v4577_v10, %v4074_v0  ;;  %v7161_v10 = vld [vmem:[#allocation8_spill] sm:$0xff] }
  0xd6   :  { %954 = vmatmul.mubr.f32.gmra.mrb[24].mxu1 %v544_v19  ;;  %3719 = vmatmul.mubr.msk.f32.vlgmr.msra.gmra.mrb[32].mxu0 %vm24_vm0, %v4411_v7  ;;  %v546_v7 = vsel %vm24_vm0, %v4613_v49, %v4079_v31  ;;  %v1219_v49 = vld [vmem:[%s6936_s4] sm:$0xff] }
  0xd7   :  { %958 = vmatprep.mubr.f32.mxu1 %v561_v47  ;;  %3721 = vmatprep.mubr.msk.f32.mxu0 %vm24_vm0, %v4447_v23  ;;  %v563_v23 = vsel %vm24_vm0, %v211_v16, %v4083_v3 }
  0xda   :  { %959 = vmatmul.mubr.f32.gmra.mrb[26].mxu1 %v545_v56  ;;  %3722 = vmatmul.mubr.msk.f32.gmra.mrb[34].mxu0 %vm24_vm0, %v4471_v53  ;;  %v547_v53 = vsel %vm24_vm0, %v7162_v51, %v4084_v11 }
  0xdb   :  { %963 = vmatprep.mubr.f32.mxu1 %v562_v26  ;;  %3724 = vmatprep.mubr.msk.f32.mxu0 %vm24_vm0, %v4531_v22  ;;  %v7163_v22 = vld [vmem:[#allocation10_spill] sm:$0xff] }
  0xde   :  { %964 = vmatmul.mubr.f32.gmra.mrb[28].mxu1 %v546_v7  ;;  %3725 = vmatmul.mubr.msk.f32.gmra.mrb[36].mxu0 %vm24_vm0, %v4552_v59  ;;  %v243_v59 = vld [vmem:[#allocation2 + $0x132] sm:$0xff] }
  0xdf   :  { %968 = vmatprep.mubr.f32.mxu1 %v563_v23  ;;  %3727 = vmatprep.mubr.msk.f32.mxu0 %vm24_vm0, %v7161_v10 }
  0xe2   :  { %969 = vmatmul.mubr.f32.gmra.mrb[30].mxu1 %v547_v53  ;;  %3728 = vmatmul.mubr.msk.f32.gmra.mrb[38].mxu0 %vm24_vm0, %v235_v18 }
  0xe3   :  { %3730 = vmatprep.mubr.msk.f32.mxu0 %vm24_vm0, %v4638_v14  ;;  %v1220_v14 = vld [vmem:[%s6936_s4 + $0x8] sm:$0xff]  ;;  %3758 = vmatprep.mubr.msk.f32.mxu1 %vm4114_vm2, %v7164_v28 }
  0xe6   :  { %3731 = vmatmul.mubr.msk.f32.gmra.mrb[40].mxu0 %vm24_vm0, %v4653_v21  ;;  %v4113_v21 = vmov 0.0|0.0  }
  0xe7   :  { %3733 = vmatprep.mubr.msk.f32.mxu0 %vm24_vm0, %v4655_v30  ;;  %3882 = vmatprep.subr.bf16.mxu1 %v4113_v21  ;;  %v4896_v30 = vpack.c.bf16 %v1220_v14, %v1219_v49 }
  0xe8   :  { %3912 = vmatprep.subr.bf16.mxu0 %v4113_v21 }
  0xe9   :  { %3884 = vmatpush3.bf16.msra.mxu1 %v4896_v30  ;;  %3914 = vmatpush3.bf16.msra.mxu0 %v4941_v40 }
  0xea   :  { %3734 = vmatmul.mubr.msk.f32.gmra.mrb[42].mxu0 %vm24_vm0, %v4663_v43  ;;  %3885 = vmatprep.subr.bf16.mxu1 %v4113_v21  ;;  %v1221_v43 = vld [vmem:[%s6936_s4 + $0x10] sm:$0xff] }
  0xeb   :  { %3736 = vmatprep.mubr.msk.f32.mxu0 %vm24_vm0, %v4665_v55  ;;  %v1222_v55 = vld [vmem:[%s6936_s4 + $0x18] sm:$0xff]  ;;  %3915 = vmatprep.subr.bf16.mxu0 %v4113_v21 }
  0xee   :  { %3737 = vmatmul.mubr.msk.f32.gmra.mrb[44].mxu0 %vm24_vm0, %v4673_v63  ;;  %v4907_v63 = vpack.c.bf16 %v1222_v55, %v1221_v43 }
  0xef   :  { %3739 = vmatprep.mubr.msk.f32.mxu0 %vm24_vm0, %v7163_v22 }
  0xf0   :  { %3887 = vmatpush3.bf16.msra.mxu1 %v4907_v63 }
  0xf1   :  { %3888 = vmatprep.subr.bf16.mxu1 %v4113_v21 }
  0xf2   :  { %3740 = vmatmul.mubr.msk.f32.gmra.mrb[46].mxu0 %vm24_vm0, %v243_v59 }
  0xf3   :  { %3799 = vmatprep.mubr.msk.f32.mxu0 %vm4114_vm2, %v7164_v28 }
  0xf4   :  { %3890 = vmatpush3.bf16.msra.mxu1 %v4917_v42 }
  0xf5   :  { %3891 = vmatprep.subr.bf16.mxu1 %v4113_v21 }
  0xf8   :  { %3893 = vmatpush3.bf16.msra.mxu1 %v4927_v36 }
  0xf9   :  { %3894 = vmatprep.subr.bf16.mxu1 %v4113_v21 }
 0x169   :  { %v3522_v4 = vpop.f32.mrb[0].mxu0 }
 0x16a   :  { %v3523_v48 = vpop.f32.mrb[1].mxu0 }
 0x16b   :  { %v3524_v37 = vadd.f32 %v3523_v48, %v3522_v4 }
 0x16d   :  { %v3525_v29 = vpop.f32.mrb[2].mxu0 }
 0x16e   :  { %v3526_v13 = vpop.f32.mrb[3].mxu0 }
 0x16f   :  { %v3527_v15 = vadd.f32 %v3526_v13, %v3525_v29 }
 0x171   :  { %v3528_v62 = vpop.f32.mrb[4].mxu0 }
 0x172   :  { %v3529_v58 = vpop.f32.mrb[5].mxu0 }
 0x173   :  { %v3530_v57 = vadd.f32 %v3529_v58, %v3528_v62 }
 0x175   :  { %v3531_v5 = vpop.f32.mrb[6].mxu0 }
 0x176   :  { %v3532_v9 = vpop.f32.mrb[7].mxu0 }
 0x177   :  { %v3533_v27 = vadd.f32 %v3532_v9, %v3531_v5 }
 0x179   :  { %v3534_v52 = vpop.f32.mrb[8].mxu0  ;;  %v3602_v45 = vpop.f32.mrb[0].mxu1 }
 0x17a   :  { %v3535_v50 = vpop.f32.mrb[9].mxu0  ;;  %v3603_v61 = vpop.f32.mrb[1].mxu1 }
 0x17b   :  { %v3536_v8 = vadd.f32 %v3535_v50, %v3534_v52  ;;  %v3604_v44 = vadd.f32 %v3603_v61, %v3602_v45 }
 0x17d   :  { %v3537_v35 = vpop.f32.mrb[10].mxu0  ;;  %v3605_v34 = vpop.f32.mrb[2].mxu1  ;;  %v4945_v25 = vadd.f32 %v3604_v44, %v3524_v37 }
 0x17e   :  { %v3538_v1 = vpop.f32.mrb[11].mxu0  ;;  %v3606_v6 = vpop.f32.mrb[3].mxu1 }
 0x17f   :  { %v3539_v60 = vadd.f32 %v3538_v1, %v3537_v35  ;;  %v3607_v17 = vadd.f32 %v3606_v6, %v3605_v34 }
 0x181   :  { %v3540_v24 = vpop.f32.mrb[12].mxu0  ;;  %v3608_v33 = vpop.f32.mrb[4].mxu1  ;;  %v4947_v32 = vadd.f32 %v3607_v17, %v3527_v15 }
 0x182   :  { %v3541_v0 = vpop.f32.mrb[13].mxu0  ;;  %v3609_v19 = vpop.f32.mrb[5].mxu1 }
 0x183   :  { %v3542_v46 = vadd.f32 %v3541_v0, %v3540_v24  ;;  %v3610_v47 = vadd.f32 %v3609_v19, %v3608_v33 }
 0x185   :  { %v3543_v54 = vpop.f32.mrb[14].mxu0  ;;  %v3611_v31 = vpop.f32.mrb[6].mxu1  ;;  %v4949_v56 = vadd.f32 %v3610_v47, %v3530_v57 }
 0x186   :  { %v3544_v3 = vpop.f32.mrb[15].mxu0  ;;  %v3612_v26 = vpop.f32.mrb[7].mxu1 }
 0x187   :  { %v3545_v16 = vadd.f32 %v3544_v3, %v3543_v54  ;;  %v3613_v11 = vadd.f32 %v3612_v26, %v3611_v31 }
 0x189   :  { %v3546_v7 = vpop.f32.mrb[16].mxu0  ;;  %v3614_v23 = vpop.f32.mrb[8].mxu1  ;;  %v4951_v10 = vadd.f32 %v3613_v11, %v3533_v27 }
 0x18a   :  { %v3547_v51 = vpop.f32.mrb[17].mxu0  ;;  %v3615_v53 = vpop.f32.mrb[9].mxu1 }
 0x18b   :  { %v3548_v18 = vadd.f32 %v3547_v51, %v3546_v7  ;;  %v3616_v22 = vadd.f32 %v3615_v53, %v3614_v23 }
 0x18d   :  { %v3549_v59 = vpop.f32.mrb[18].mxu0  ;;  %v3617_v49 = vpop.f32.mrb[10].mxu1  ;;  %v4953_v14 = vadd.f32 %v3616_v22, %v3536_v8 }
 0x18e   :  { %v3550_v43 = vpop.f32.mrb[19].mxu0  ;;  %v3618_v55 = vpop.f32.mrb[11].mxu1 }
 0x18f   :  { %v3551_v39 = vadd.f32 %v3550_v43, %v3549_v59  ;;  %v3619_v38 = vadd.f32 %v3618_v55, %v3617_v49 }
 0x191   :  { %v3552_v12 = vpop.f32.mrb[20].mxu0  ;;  %v3620_v20 = vpop.f32.mrb[12].mxu1  ;;  %v4955_v4 = vadd.f32 %v3619_v38, %v3539_v60 }
 0x192   :  { %v3553_v48 = vpop.f32.mrb[21].mxu0  ;;  %v3621_v37 = vpop.f32.mrb[13].mxu1 }
 0x193   :  { %v3554_v41 = vadd.f32 %v3553_v48, %v3552_v12  ;;  %v3622_v2 = vadd.f32 %v3621_v37, %v3620_v20 }
 0x195   :  { %v3555_v29 = vpop.f32.mrb[22].mxu0  ;;  %v3623_v13 = vpop.f32.mrb[14].mxu1  ;;  %v4957_v15 = vadd.f32 %v3622_v2, %v3542_v46 }
 0x196   :  { %v3556_v62 = vpop.f32.mrb[23].mxu0  ;;  %v3624_v58 = vpop.f32.mrb[15].mxu1 }
 0x197   :  { %v3557_v57 = vadd.f32 %v3556_v62, %v3555_v29  ;;  %v3625_v5 = vadd.f32 %v3624_v58, %v3623_v13 }
 0x199   :  { %v3558_v9 = vpop.f32.mrb[24].mxu0  ;;  %v3626_v27 = vpop.f32.mrb[16].mxu1  ;;  %v4959_v52 = vadd.f32 %v3625_v5, %v3545_v16 }
 0x19a   :  { %v3559_v45 = vpop.f32.mrb[25].mxu0  ;;  %v3627_v50 = vpop.f32.mrb[17].mxu1 }
 0x19b   :  { %v3560_v61 = vadd.f32 %v3559_v45, %v3558_v9  ;;  %v3628_v8 = vadd.f32 %v3627_v50, %v3626_v27 }
 0x19d   :  { %v3561_v44 = vpop.f32.mrb[26].mxu0  ;;  %v3629_v35 = vpop.f32.mrb[18].mxu1  ;;  %v4961_v34 = vadd.f32 %v3628_v8, %v3548_v18 }
 0x19e   :  { %v3562_v1 = vpop.f32.mrb[27].mxu0  ;;  %v3630_v6 = vpop.f32.mrb[19].mxu1 }
 0x19f   :  { %v3563_v60 = vadd.f32 %v3562_v1, %v3561_v44  ;;  %v3631_v17 = vadd.f32 %v3630_v6, %v3629_v35 }
 0x1a1   :  { %v3564_v24 = vpop.f32.mrb[28].mxu0  ;;  %v3632_v33 = vpop.f32.mrb[20].mxu1  ;;  %v4963_v0 = vadd.f32 %v3631_v17, %v3551_v39 }
 0x1a2   :  { %v3565_v19 = vpop.f32.mrb[29].mxu0  ;;  %v3633_v46 = vpop.f32.mrb[21].mxu1 }
 0x1a3   :  { %v3566_v47 = vadd.f32 %v3565_v19, %v3564_v24  ;;  %v3634_v54 = vadd.f32 %v3633_v46, %v3632_v33 }
 0x1a5   :  { %v3567_v31 = vpop.f32.mrb[30].mxu0  ;;  %v3635_v3 = vpop.f32.mrb[22].mxu1  ;;  %v4965_v26 = vadd.f32 %v3634_v54, %v3554_v41 }
 0x1a6   :  { %v3568_v16 = vpop.f32.mrb[31].mxu0  ;;  %v3636_v11 = vpop.f32.mrb[23].mxu1 }
 0x1a7   :  { %v3569_v7 = vadd.f32 %v3568_v16, %v3567_v31  ;;  %v3637_v23 = vadd.f32 %v3636_v11, %v3635_v3 }
 0x1a9   :  { %v3638_v51 = vpop.f32.mrb[24].mxu1  ;;  %v3720_v53 = vpop.f32.mrb[32].mxu0  ;;  %v4967_v18 = vadd.f32 %v3637_v23, %v3557_v57 }
 0x1aa   :  { %v4970_v22 = vadd.f32 %v3720_v53, %v4947_v32  ;;  %v3639_v59 = vpop.f32.mrb[25].mxu1  ;;  %v1040_v49 = vpop.f32.mrb[33].mxu0 }
 0x1ab   :  { %v3640_v43 = vadd.f32 %v3639_v59, %v3638_v51  ;;  %v4973_v55 = vadd.f32 %v1040_v49, %v4945_v25 }
 0x1ac   :  { %v1120_v39 = vsel %vm24_vm0, %v4970_v22, 0.0  ;;  %v1162_v13 = vmul.f32 %v4970_v22, %v4970_v22 }
 0x1ad   :  { %v1119_v38 = vsel %vm24_vm0, %v4973_v55, 0.0  ;;  %v3641_v12 = vpop.f32.mrb[26].mxu1  ;;  %v3723_v20 = vpop.f32.mrb[34].mxu0  ;;  %v4979_v48 = vadd.f32 %v3640_v43, %v3560_v61  ;;  %v1161_v62 = vmul.f32 %v4973_v55, %v4973_v55 }
 0x1ae   :  { %v4982_v37 = vadd.f32 %v3723_v20, %v4951_v10  ;;  %v3642_v32 = vpop.f32.mrb[27].mxu1  ;;  %v1050_v41 = vpop.f32.mrb[35].mxu0  ;;  %v1121_v25 = vadd.f32 %v1120_v39, %v1119_v38  ;;  %v1178_v1 = vsel %vm24_vm0, %v1162_v13, 0.0 }
 0x1af   :  { %v3643_v2 = vadd.f32 %v3642_v32, %v3641_v12  ;;  %v4985_v29 = vadd.f32 %v1050_v41, %v4949_v56  ;;  %v1177_v6 = vsel %vm24_vm0, %v1161_v62, 0.0 }
 0x1b0   :  { %v1124_v50 = vsel %vm24_vm0, %v4982_v37, 0.0  ;;  %v1179_v11 = vadd.f32 %v1178_v1, %v1177_v6 }
 0x1b1   :  { %v1122_v58 = vsel %vm24_vm0, %v4985_v29, 0.0  ;;  %v3644_v57 = vpop.f32.mrb[28].mxu1  ;;  %v3726_v5 = vpop.f32.mrb[36].mxu0  ;;  %v961_v10 = vadd.f32 %v3643_v2, %v3563_v60  ;;  %v1163_v61 = vmul.f32 %v4985_v29, %v4985_v29 }
 0x1b2   :  { %v1123_v9 = vadd.f32 %v1122_v58, %v1121_v25  ;;  %v4994_v27 = vadd.f32 %v3726_v5, %v4955_v4  ;;  %v3645_v45 = vpop.f32.mrb[29].mxu1  ;;  %v1060_v56 = vpop.f32.mrb[37].mxu0 }
 0x1b3   :  { %v3646_v8 = vadd.f32 %v3645_v45, %v3644_v57  ;;  %v5001_v44 = vadd.f32 %v1060_v56, %v4953_v14  ;;  %v1180_v14 = vsel %vm24_vm0, %v1163_v61, 0.0 }
 0x1b4   :  { %v1125_v35 = vadd.f32 %v1124_v50, %v1123_v9  ;;  %v1128_v31 = vsel %vm24_vm0, %v4994_v27, 0.0  ;;  %v1181_v59 = vadd.f32 %v1180_v14, %v1179_v11  ;;  %v1166_v6 = vmul.f32 %v4994_v27, %v4994_v27 }
 0x1b5   :  { %v1126_v4 = vsel %vm24_vm0, %v5001_v44, 0.0  ;;  %v3647_v60 = vpop.f32.mrb[30].mxu1  ;;  %v3729_v17 = vpop.f32.mrb[38].mxu0  ;;  %v5007_v24 = vadd.f32 %v3646_v8, %v3566_v47  ;;  %v1164_v47 = vmul.f32 %v4982_v37, %v4982_v37 }
 0x1b6   :  { %v1127_v33 = vadd.f32 %v1126_v4, %v1125_v35  ;;  %v5010_v19 = vadd.f32 %v3729_v17, %v4959_v52  ;;  %v3648_v46 = vpop.f32.mrb[31].mxu1  ;;  %v1070_v54 = vpop.f32.mrb[39].mxu0 }
 0x1b7   :  { %v3649_v3 = vadd.f32 %v3648_v46, %v3647_v60  ;;  %v5016_v16 = vadd.f32 %v1070_v54, %v4957_v15  ;;  %v1165_v15 = vmul.f32 %v5001_v44, %v5001_v44  ;;  %v1182_v20 = vsel %vm24_vm0, %v1164_v47, 0.0 }
 0x1b8   :  { %v1129_v23 = vadd.f32 %v1128_v31, %v1127_v33  ;;  %v1183_v41 = vadd.f32 %v1182_v20, %v1181_v59  ;;  %v1132_v2 = vsel %vm24_vm0, %v5010_v19, 0.0  ;;  %v1186_v59 = vsel %vm24_vm0, %v1166_v6, 0.0 }
 0x1b9   :  { %v1130_v52 = vsel %vm24_vm0, %v5016_v16, 0.0  ;;  %v3732_v51 = vpop.f32.mrb[40].mxu0  ;;  %v971_v53 = vadd.f32 %v3649_v3, %v3569_v7  ;;  %v1184_v5 = vsel %vm24_vm0, %v1165_v15, 0.0 }
 0x1ba   :  { %v5023_v49 = vadd.f32 %v3732_v51, %v4963_v0  ;;  %v1080_v43 = vpop.f32.mrb[41].mxu0  ;;  %v1131_v38 = vadd.f32 %v1130_v52, %v1129_v23  ;;  %v1185_v4 = vadd.f32 %v1184_v5, %v1183_v41  ;;  %v1168_v5 = vmul.f32 %v5010_v19, %v5010_v19 }
 0x1bb   :  { %v5026_v39 = vadd.f32 %v1080_v43, %v4961_v34 }
 0x1bc   :  { %v1170_v12 = vmul.f32 %v5023_v49, %v5023_v49  ;;  %v1141_v7 = vsel %vm24_vm0, %v5023_v49, 0.0  ;;  %v1133_v9 = vadd.f32 %v1132_v2, %v1131_v38  ;;  %v1187_v20 = vadd.f32 %v1186_v59, %v1185_v4 }
 0x1bd   :  { %v1140_v0 = vsel %vm24_vm0, %v5026_v39, 0.0  ;;  %v1169_v32 = vmul.f32 %v5026_v39, %v5026_v39  ;;  %v3735_v34 = vpop.f32.mrb[42].mxu0 }
 0x1be   :  { %v1090_v25 = vpop.f32.mrb[43].mxu0  ;;  %v1199_v13 = vsel %vm24_vm0, %v1170_v12, 0.0  ;;  %v5044_v58 = vadd.f32 %v3735_v34, %v4967_v18  ;;  %v1142_v45 = vadd.f32 %v1141_v7, %v1140_v0  ;;  %v1134_v33 = vrot.slane %v1133_v9, 4 }
 0x1bf   :  { %v1198_v62 = vsel %vm24_vm0, %v1169_v32, 0.0  ;;  %v5047_v57 = vadd.f32 %v1090_v25, %v4965_v26 }
 0x1c0   :  { %v1172_v56 = vmul.f32 %v5044_v58, %v5044_v58  ;;  %v1200_v35 = vadd.f32 %v1199_v13, %v1198_v62  ;;  %v1145_v46 = vsel %vm24_vm0, %v5044_v58, 0.0  ;;  %v1135_v12 = vadd.f32 %v1134_v33, %v1133_v9 }
 0x1c1   :  { %v1143_v50 = vsel %vm24_vm0, %v5047_v57, 0.0  ;;  %v1171_v61 = vmul.f32 %v5047_v57, %v5047_v57  ;;  %v3738_v8 = vpop.f32.mrb[44].mxu0 }
 0x1c2   :  { %v1144_v18 = vadd.f32 %v1143_v50, %v1142_v45  ;;  %v5056_v1 = vadd.f32 %v3738_v8, %v961_v10  ;;  %v1100_v26 = vpop.f32.mrb[45].mxu0  ;;  %v1203_v54 = vsel %vm24_vm0, %v1172_v56, 0.0  ;;  %v1136_v56 = vrot.slane %v1135_v12, 2 }
 0x1c3   :  { %v1201_v60 = vsel %vm24_vm0, %v1171_v61, 0.0  ;;  %v5062_v17 = vadd.f32 %v1100_v26, %v4979_v48  ;;  %v1167_v48 = vmul.f32 %v5016_v16, %v5016_v16  ;;  %v1190_v26 = vsel %vm24_vm0, %v1168_v5, 0.0 }
 0x1c4   :  { %v1202_v14 = vadd.f32 %v1201_v60, %v1200_v35  ;;  %v1174_v10 = vmul.f32 %v5056_v1, %v5056_v1  ;;  %v1146_v31 = vadd.f32 %v1145_v46, %v1144_v18  ;;  %v1149_v7 = vsel %vm24_vm0, %v5056_v1, 0.0 }
 0x1c5   :  { %v1147_v3 = vsel %vm24_vm0, %v5062_v17, 0.0  ;;  %v1173_v11 = vmul.f32 %v5062_v17, %v5062_v17  ;;  %v3741_v23 = vpop.f32.mrb[46].mxu0  ;;  %v1188_v2 = vsel %vm24_vm0, %v1167_v48, 0.0  ;;  %v1137_v6 = vadd.f32 %v1136_v56, %v1135_v12 }
 0x1c6   :  { %v1204_v47 = vadd.f32 %v1203_v54, %v1202_v14  ;;  %v5075_v52 = vadd.f32 %v3741_v23, %v971_v53  ;;  %v1110_v51 = vpop.f32.mrb[47].mxu0  ;;  %v1148_v43 = vadd.f32 %v1147_v3, %v1146_v31  ;;  %v1207_v32 = vsel %vm24_vm0, %v1174_v10, 0.0 }
 0x1c7   :  { %v1205_v15 = vsel %vm24_vm0, %v1173_v11, 0.0  ;;  %v5080_v38 = vadd.f32 %v1110_v51, %v5007_v24  ;;  %v1189_v50 = vadd.f32 %v1188_v2, %v1187_v20  ;;  %v1138_v54 = vrot.slane %v1137_v6, 1 }
 0x1c8   :  { %v1206_v0 = vadd.f32 %v1205_v15, %v1204_v47  ;;  %v1150_v34 = vadd.f32 %v1149_v7, %v1148_v43  ;;  %v1176_v24 = vmul.f32 %v5075_v52, %v5075_v52  ;;  %v1153_v9 = vsel %vm24_vm0, %v5075_v52, 0.0 }
 0x1c9   :  { %v1151_v53 = vsel %vm24_vm0, %v5080_v38, 0.0  ;;  %v1175_v41 = vmul.f32 %v5080_v38, %v5080_v38  ;;  %v1191_v4 = vadd.f32 %v1190_v26, %v1189_v50  ;;  %v1139_v23 = vadd.f32 %v1138_v54, %v1137_v6 }
 0x1ca   :  { %v1208_v25 = vadd.f32 %v1207_v32, %v1206_v0  ;;  %v1152_v13 = vadd.f32 %v1151_v53, %v1150_v34  ;;  %v1211_v8 = vsel %vm24_vm0, %v1176_v24, 0.0  ;;  %v1558_v56 = vlaneseq }
 0x1cb   :  { %v1209_v62 = vsel %vm24_vm0, %v1175_v41, 0.0  ;;  %v1192_v14 = vrot.slane %v1191_v4, 4 }
 0x1cc   :  { %v1210_v45 = vadd.f32 %v1209_v62, %v1208_v25  ;;  %v1154_v61 = vadd.f32 %v1153_v9, %v1152_v13  ;;  %v4115_v9 = vmov 1966171168  }
 0x1cd   :  { %v1193_v11 = vadd.f32 %v1192_v14, %v1191_v4  ;;  %v3489_v4 = vld [vmem:[%s6935_s3] ss:$0 sm:$0xff] }
 0x1ce   :  { %v1155_v35 = vrot.slane %v1154_v61, 4  ;;  %v1212_v18 = vadd.f32 %v1211_v8, %v1210_v45  ;;  %v1556_v45 = vunpack.c.l.s4 %v4115_v9  ;;  %v3488_v8 = vld [vmem:[%s6934_s2] ss:$0 sm:$0xff]  ;;  %s4116_s2 = smov [#allocation5]  }
 0x1cf   :  { %v1194_v59 = vrot.slane %v1193_v11, 2  ;;  %s3457_s3 = sshll.u32 %s4116_s2, 4  ;;  %s3458_s3 = int_to_ptr.vmem [resolvable:$true] %s3457_s3 }
 0x1d0   :  { %v1156_v60 = vadd.f32 %v1155_v35, %v1154_v61  ;;  %v1213_v46 = vrot.slane %v1212_v18, 4  ;;  %v1557_v50 = vunpack.c.0.s8 %v1556_v45  ;;  %v1559_v61 = vshrl.u32 %v1558_v56, 7  ;;  %s4087_s29 = scalar_lea.vmem %s3458_s3, 4096  ;;  %p4092_p1 = scmp.lt.s32.totalorder %s3458_s3, %s3458_s3 }
 0x1d1   :  { %v1195_v15 = vadd.f32 %v1194_v59, %v1193_v11  ;;  %p4088_p0 = scmp.ne.s32.totalorder %s3458_s3, %s4087_s29  ;;  %p4093_p2 = scmp.lt.s32.totalorder %s4087_s29, %s4087_s29 }
 0x1d2   :  { %v1157_v33 = vrot.slane %v1156_v60, 2  ;;  %v1214_v3 = vadd.f32 %v1213_v46, %v1212_v18  ;;  %v1560_v35 = vsub.s32 %v1557_v50, %v1559_v61  ;;  %v1579_v46 = vsub.s32 0, %v1559_v61 }
 0x1d3   :  { %v1196_v20 = vrot.slane %v1195_v15, 1  ;;  %p4094_p3 = por %p4093_p2, %p4092_p1 }
 0x1d4   :  { %v1158_v10 = vadd.f32 %v1157_v33, %v1156_v60  ;;  %v1215_v47 = vrot.slane %v1214_v3, 2 }
 0x1d5   :  { %p4095_p4 = pnand %p4094_p3, %p4088_p0 }
 0x1d6   :  { %v1159_v31 = vrot.slane %v1158_v10, 1  ;;  %v1216_v43 = vadd.f32 %v1215_v47, %v1214_v3 }
 0x1d8   :  { %v1160_v48 = vadd.f32 %v1159_v31, %v1158_v10  ;;  %v1217_v12 = vrot.slane %v1216_v43, 1 }
 0x1da   :  { %v1230_v51 = vsel %vm1229_vm3, %v1160_v48, %v1139_v23  ;;  %v1218_v7 = vadd.f32 %v1217_v12, %v1216_v43 }
 0x1db   :  { %3759 = vmatmul.mubr.msk.f32.vlgmr.msra.gmra.mrb[32].mxu1 %vm24_vm0, %v1230_v51 }
 0x1dc   :  { %3896 = vmatpush3.bf16.msra.mxu1 %v4896_v30  ;;  %3777 = vmatprep.mubr.msk.f32.mxu1 %vm4114_vm2, %v7164_v28  ;;  %v1197_v30 = vadd.f32 %v1196_v20, %v1195_v15 }
 0x1dd   :  { %3897 = vmatprep.subr.bf16.mxu1 %v4113_v21 }
 0x1de   :  { %v1305_v0 = vsel %vm1229_vm3, %v1218_v7, %v1197_v30 }
 0x1e0   :  { %3899 = vmatpush3.bf16.msra.mxu1 %v4907_v63  ;;  %v1388_v63 = vld [vmem:[%s6937_s5 + $0x10] sm:$0xff] }
 0x1e1   :  { %3900 = vmatprep.subr.bf16.mxu1 %v4113_v21 }
 0x1e4   :  { %3902 = vmatpush3.bf16.msra.mxu1 %v4917_v42  ;;  %v1389_v42 = vld [vmem:[%s6937_s5 + $0x18] sm:$0xff] }
 0x1e5   :  { %3903 = vmatprep.subr.bf16.mxu1 %v4113_v21 }
 0x1e8   :  { %3905 = vmatpush3.bf16.msra.mxu1 %v4927_v36  ;;  %v3910_v36 = vpack.c.bf16 %v1389_v42, %v1388_v63 }
 0x1e9   :  { %3906 = vmatprep.subr.bf16.mxu1 %v4113_v21 }
 0x1ea   :  { %3917 = vmatpush3.bf16.msra.mxu0 %v3910_v36 }
 0x1eb   :  { %3778 = vmatmul.mubr.msk.f32.vlgmr.msra.gmra.mrb[34].mxu1 %vm24_vm0, %v1305_v0 }
 0x1ec   :  { %3908 = vmatpush3.bf16.msra.mxu1 %v4941_v40  ;;  %3788 = vmatprep.mubr.msk.f32.mxu1 %vm4114_vm2, %v7164_v28 }
 0x1ed   :  { %3909 = vmatprep.subr.bf16.mxu1 %v4113_v21 }
 0x1f0   :  { %3911 = vmatpush3.bf16.msra.mxu1 %v3910_v36 }
 0x2ae   :  { %v1299_v32 = vpop.f32.mrb[32].mxu1 }
 0x2af   :  { %v1379_v34 = vmul.f32 0.0078125, %v1299_v32  ;;  %v3760_v40 = vpop.f32.mrb[33].mxu1 }
 0x2b1   :  { %3789 = vmatmul.mubr.msk.f32.vlgmr.msra.gmra.mrb[36].mxu1 %vm1390_vm4, %v1379_v34  ;;  %v1381_v28 = vmul.f32 %v1379_v34, %v1379_v34 }
 0x2be   :  { %v1374_v53 = vpop.f32.mrb[34].mxu1 }
 0x2bf   :  { %v1380_v41 = vmul.f32 0.0078125, %v1374_v53  ;;  %v3779_v21 = vpop.f32.mrb[35].mxu1 }
 0x2c1   :  { %v1382_v2 = vsub.f32 %v1380_v41, %v1381_v28 }
 0x2c3   :  { %v1383_v24 = vmax.f32 %v1382_v2, 0.0 }
 0x2c5   :  { %v1384_v25 = vadd.f32 1e-05, %v1383_v24 }
 0x2c7   :  { %4085 = vrsqrt.f32 %v1384_v25 }
 0x2d1   :  { %v4086_v13 = vpop.eup %4085 }
 0x2d2   :  { %3800 = vmatmul.mubr.msk.f32.vlgmr.msra.gmra.mrb[48].mxu0 %vm1390_vm4, %v4086_v13 }
 0x384   :  { %v1460_v62 = vpop.f32.mrb[36].mxu1 }
 0x385   :  { %v3790_v5 = vpop.f32.mrb[37].mxu1 }
 0x3a5   :  { %v1533_v18 = vpop.f32.mrb[48].mxu0 }
 0x3a6   :  { %v1544_v26 = vmul.f32 %v3488_v8, %v1533_v18  ;;  %v3801_v6 = vpop.f32.mrb[49].mxu0 }
 0x3a8   :  { %v1546_v60 = vmul.f32 %v1544_v26, %v1460_v62  ;;  %v1561_v33 = vrot.slane %v1544_v26, %v1560_v35 }
 0x3aa   :  { %v1553_v54 = vsub.f32 %v3489_v4, %v1546_v60  ;;  %v1562_v14 = vcombine.high %v1561_v33, %v1561_v33  ;;  %v1569_v10 = vrot.slane %v1561_v33, %v1560_v35 }
 0x3ac   :  { %v1576_v31 = vrot.slane %v1562_v14, %v1560_v35  ;;  %v1580_v3 = vrot.slane %v1569_v10, %v1579_v46  ;;  %v1610_v11 = vrot.slane %v1553_v54, %v1560_v35 }
 0x3ae   :  { %v1584_v23 = vrot.slane %v1576_v31, %v1579_v46  ;;  %v1587_v48 = vmul.f32 %v1580_v3, %v4973_v55  ;;  %v1588_v47 = vmul.f32 %v1580_v3, %v4970_v22  ;;  %v1589_v51 = vmul.f32 %v1580_v3, %v4985_v29 }
 0x3af   :  { %v1590_v59 = vmul.f32 %v1580_v3, %v4982_v37  ;;  %v1591_v43 = vmul.f32 %v1580_v3, %v5001_v44  ;;  %v1592_v15 = vmul.f32 %v1580_v3, %v4994_v27  ;;  %v1611_v12 = vcombine.high %v1610_v11, %v1610_v11 }
 0x3b0   :  { %v1618_v20 = vrot.slane %v1610_v11, %v1560_v35  ;;  %v1593_v7 = vmul.f32 %v1580_v3, %v5016_v16  ;;  %v1594_v30 = vmul.f32 %v1580_v3, %v5010_v19  ;;  %v1595_v0 = vmul.f32 %v1584_v23, %v5026_v39 }
 0x3b1   :  { %v1596_v55 = vmul.f32 %v1584_v23, %v5023_v49  ;;  %v1597_v22 = vmul.f32 %v1584_v23, %v5047_v57  ;;  %v1598_v29 = vmul.f32 %v1584_v23, %v5044_v58  ;;  %v1625_v63 = vrot.slane %v1611_v12, %v1560_v35 }
 0x3b2   :  { %v1629_v37 = vrot.slane %v1618_v20, %v1579_v46  ;;  %v1599_v44 = vmul.f32 %v1584_v23, %v5062_v17  ;;  %v1600_v27 = vmul.f32 %v1584_v23, %v5056_v1  ;;  %v1601_v42 = vmul.f32 %v1584_v23, %v5080_v38 }
 0x3b3   :  { %v1602_v16 = vmul.f32 %v1584_v23, %v5075_v52  ;;  %v1633_v36 = vrot.slane %v1625_v63, %v1579_v46 }
 0x3b4   :  { %v1636_v19 = vadd.f32 %v1629_v37, %v1587_v48  ;;  %v1637_v32 = vadd.f32 %v1629_v37, %v1588_v47  ;;  %v1638_v39 = vadd.f32 %v1629_v37, %v1589_v51  ;;  %v1639_v34 = vadd.f32 %v1629_v37, %v1590_v59 }
 0x3b5   :  { %v1640_v49 = vadd.f32 %v1629_v37, %v1591_v43  ;;  %v1641_v40 = vadd.f32 %v1629_v37, %v1592_v15  ;;  %v1642_v57 = vadd.f32 %v1629_v37, %v1593_v7  ;;  %v1643_v53 = vadd.f32 %v1629_v37, %v1594_v30 }
 0x3b6   :  { %v1644_v58 = vadd.f32 %v1633_v36, %v1595_v0  ;;  %v1645_v28 = vadd.f32 %v1633_v36, %v1596_v55  ;;  %v1646_v41 = vadd.f32 %v1633_v36, %v1597_v22  ;;  %v1647_v21 = vadd.f32 %v1633_v36, %v1598_v29 }
 0x3b7   :  { %v1648_v17 = vadd.f32 %v1633_v36, %v1599_v44  ;;  %v1649_v2 = vadd.f32 %v1633_v36, %v1600_v27  ;;  %v1650_v1 = vadd.f32 %v1633_v36, %v1601_v42  ;;  %v1651_v24 = vadd.f32 %v1633_v36, %v1602_v16 }
 0x3b8   :  { %v1652_v38 = vmax.f32 %v1636_v19, 0.0  ;;  %v1653_v25 = vmax.f32 %v1637_v32, 0.0  ;;  %v1654_v52 = vmax.f32 %v1638_v39, 0.0  ;;  %v1655_v13 = vmax.f32 %v1639_v34, 0.0 }
 0x3b9   :  { %v1656_v62 = vmax.f32 %v1640_v49, 0.0  ;;  %v1657_v5 = vmax.f32 %v1641_v40, 0.0  ;;  %v1658_v9 = vmax.f32 %v1642_v57, 0.0  ;;  %v1659_v45 = vmax.f32 %v1643_v53, 0.0 }
 0x3ba   :  { %v1660_v56 = vmax.f32 %v1644_v58, 0.0  ;;  %v1661_v50 = vmax.f32 %v1645_v28, 0.0  ;;  %v1662_v61 = vmax.f32 %v1646_v41, 0.0  ;;  %1668 = vst.msk [vmem:[#allocation3] sm:$0xff] %vm24_vm0, %v1652_v38  ;;  %1669 = vst.msk [vmem:[#allocation3 + $0x8] sm:$0xff] %vm24_vm0, %v1653_v25  ;;  %v1663_v8 = vmax.f32 %v1647_v21, 0.0 }
 0x3bb   :  { %1670 = vst.msk [vmem:[#allocation3 + $0x10] sm:$0xff] %vm24_vm0, %v1654_v52  ;;  %v1664_v35 = vmax.f32 %v1648_v17, 0.0  ;;  %v1665_v18 = vmax.f32 %v1649_v2, 0.0  ;;  %v1666_v26 = vmax.f32 %v1650_v1, 0.0  ;;  %1671 = vst.msk [vmem:[#allocation3 + $0x18] sm:$0xff] %vm24_vm0, %v1655_v13  ;;  %v1667_v6 = vmax.f32 %v1651_v24, 0.0 }
 0x3bc   :  { %1672 = vst.msk [vmem:[#allocation3 + $0x20] sm:$0xff] %vm24_vm0, %v1656_v62  ;;  %1673 = vst.msk [vmem:[#allocation3 + $0x28] sm:$0xff] %vm24_vm0, %v1657_v5 }
 0x3bd   :  { %1674 = vst.msk [vmem:[#allocation3 + $0x30] sm:$0xff] %vm24_vm0, %v1658_v9  ;;  %1676 = vst.msk [vmem:[#allocation3 + $0x40] sm:$0xff] %vm24_vm0, %v1660_v56 }
 0x3be   :  { %1677 = vst.msk [vmem:[#allocation3 + $0x48] sm:$0xff] %vm24_vm0, %v1661_v50  ;;  %1678 = vst.msk [vmem:[#allocation3 + $0x50] sm:$0xff] %vm24_vm0, %v1662_v61 }
 0x3bf   :  { %1675 = vst.msk [vmem:[#allocation3 + $0x38] sm:$0xff] %vm24_vm0, %v1659_v45  ;;  %1679 = vst.msk [vmem:[#allocation3 + $0x58] sm:$0xff] %vm24_vm0, %v1663_v8 }
 0x3c0   :  { %1680 = vst.msk [vmem:[#allocation3 + $0x60] sm:$0xff] %vm24_vm0, %v1664_v35  ;;  %1681 = vst.msk [vmem:[#allocation3 + $0x68] sm:$0xff] %vm24_vm0, %v1665_v18 }
 0x3c1   :  { %1682 = vst.msk [vmem:[#allocation3 + $0x70] sm:$0xff] %vm24_vm0, %v1666_v26  ;;  %1683 = vst.msk [vmem:[#allocation3 + $0x78] sm:$0xff] %vm24_vm0, %v1667_v6  ;;  %v1684_v4 = vld [vmem:[#allocation3] sm:$0x1]  ;;  %v1685_v60 = vld [vmem:[#allocation3 + $0x8] sm:$0x1] }
 0x3c2   :  { %v1686_v33 = vld [vmem:[#allocation3 + $0x10] sm:$0x1]  ;;  %v1687_v46 = vld [vmem:[#allocation3 + $0x18] sm:$0x1]  ;;  %v5161_v3 = vld [vmem:[#allocation3 + $0x1] sm:$0x1] }
 0x3c3   :  { %v1688_v54 = vld [vmem:[#allocation3 + $0x20] sm:$0x1]  ;;  %v1689_v14 = vld [vmem:[#allocation3 + $0x28] sm:$0x1]  ;;  %v5163_v11 = vld [vmem:[#allocation3 + $0x9] sm:$0x1] }
 0x3c4   :  { %v1690_v10 = vld [vmem:[#allocation3 + $0x30] sm:$0x1]  ;;  %v5165_v23 = vld [vmem:[#allocation3 + $0x11] sm:$0x1]  ;;  %v5167_v48 = vld [vmem:[#allocation3 + $0x19] sm:$0x1] }
 0x3c5   :  { %v5169_v47 = vld [vmem:[#allocation3 + $0x21] sm:$0x1]  ;;  %v5171_v51 = vld [vmem:[#allocation3 + $0x29] sm:$0x1]  ;;  %v5173_v59 = vmul.f32 0.75, %v1684_v4  ;;  %v5175_v43 = vmul.f32 0.75, %v1685_v60 }
 0x3c6   :  { %v1691_v31 = vld [vmem:[#allocation3 + $0x38] sm:$0x1]  ;;  %v5177_v15 = vld [vmem:[#allocation3 + $0x31] sm:$0x1]  ;;  %v5179_v12 = vmul.f32 0.75, %v1686_v33  ;;  %v5181_v20 = vmul.f32 0.75, %v1687_v46 }
 0x3c7   :  { %7165 = vst [vmem:[#allocation8_spill] sm:$0xff] %v5173_v59  ;;  %v5183_v7 = vmul.f32 0.75, %v1688_v54  ;;  %v5185_v30 = vmul.f32 0.75, %v1689_v14  ;;  %v5187_v0 = vld [vmem:[#allocation3 + $0x39] sm:$0x1]  ;;  %v5189_v55 = vmul.f32 0.75, %v1690_v10 }
 0x3c8   :  { %v5191_v22 = vmul.f32 0.75, %v1691_v31  ;;  %v5193_v29 = vmul.f32 0.25, %v1684_v4  ;;  %v5195_v63 = vmul.f32 0.25, %v1685_v60  ;;  %v5197_v37 = vmul.f32 0.25, %v1686_v33  ;;  %v1692_v41 = vld [vmem:[#allocation3 + $0x40] sm:$0x1] }
 0x3c9   :  { %v5199_v44 = vmul.f32 0.25, %v1687_v46  ;;  %v5201_v27 = vmul.f32 0.25, %v1688_v54  ;;  %v5203_v42 = vmul.f32 0.25, %v1689_v14  ;;  %v5206_v16 = vmul.f32 0.25, %v5161_v3  ;;  %v1693_v24 = vld [vmem:[#allocation3 + $0x48] sm:$0x1] }
 0x3ca   :  { %7166 = vst [vmem:[#allocation9_spill] sm:$0xff] %v5191_v22  ;;  %7167 = vst [vmem:[#allocation10_spill] sm:$0xff] %v5193_v29  ;;  %v5209_v36 = vmul.f32 0.25, %v5163_v11  ;;  %v5212_v19 = vmul.f32 0.25, %v5165_v23  ;;  %v5215_v32 = vmul.f32 0.25, %v5167_v48  ;;  %v5218_v39 = vmul.f32 0.25, %v5169_v47 }
 0x3cb   :  { %7168 = vst [vmem:[#allocation11_spill] sm:$0xff] %v5206_v16  ;;  %v5221_v34 = vmul.f32 0.25, %v5171_v51  ;;  %v5224_v49 = vmul.f32 0.25, %v5177_v15  ;;  %v5227_v40 = vmul.f32 0.25, %v5187_v0  ;;  %v5229_v57 = vmul.f32 0.25, %v1690_v10 }
 0x3cc   :  { %7169 = vst [vmem:[#allocation12_spill] sm:$0xff] %v5209_v36  ;;  %7170 = vst [vmem:[#allocation13_spill] sm:$0xff] %v5212_v19  ;;  %v1877_v53 = vadd.f32 %v5209_v36, %v5175_v43  ;;  %v1878_v58 = vadd.f32 %v5212_v19, %v5179_v12  ;;  %v1879_v28 = vadd.f32 %v5215_v32, %v5181_v20  ;;  %v1694_v38 = vld [vmem:[#allocation3 + $0x50] sm:$0x1]  ;;  %v1695_v25 = vld [vmem:[#allocation3 + $0x58] sm:$0x1] }
 0x3cd   :  { %7171 = vst [vmem:[#allocation14_spill] sm:$0xff] %v5215_v32  ;;  %7172 = vst [vmem:[#allocation15_spill] sm:$0xff] %v5218_v39  ;;  %v1880_v21 = vadd.f32 %v5218_v39, %v5183_v7  ;;  %v1881_v17 = vadd.f32 %v5221_v34, %v5185_v30  ;;  %v1882_v2 = vadd.f32 %v5224_v49, %v5189_v55  ;;  %v1696_v5 = vld [vmem:[#allocation3 + $0x60] sm:$0x1]  ;;  %v1697_v9 = vld [vmem:[#allocation3 + $0x68] sm:$0x1] }
 0x3ce   :  { %7173 = vst [vmem:[#allocation16_spill] sm:$0xff] %v5221_v34  ;;  %7174 = vst [vmem:[#allocation17_spill] sm:$0xff] %v5224_v49  ;;  %v1883_v1 = vadd.f32 %v5227_v40, %v5191_v22  ;;  %v1876_v52 = vadd.f32 %v5206_v16, %v5173_v59  ;;  %v2392_v13 = vrot.slane %v1877_v53, 7  ;;  %v2394_v62 = vrot.slane %v1878_v58, 6  ;;  %v1698_v61 = vld [vmem:[#allocation3 + $0x70] sm:$0x1] }
 0x3cf   :  { %7175 = vst [vmem:[#allocation18_spill] sm:$0xff] %v5227_v40  ;;  %v5247_v45 = vmul.f32 0.25, %v1691_v31  ;;  %v2396_v56 = vrot.slane %v1879_v28, 5  ;;  %v2398_v50 = vrot.slane %v1880_v21, 4  ;;  %v5249_v8 = vmul.f32 0.75, %v1692_v41 }
 0x3d0   :  { %v2393_v35 = vsel %vm1229_vm3, %v2392_v13, %v1876_v52  ;;  %v2400_v18 = vrot.slane %v1881_v17, 3  ;;  %v2402_v26 = vrot.slane %v1882_v2, 2  ;;  %v2404_v6 = vrot.slane %v1883_v1, 1  ;;  %v1699_v4 = vld [vmem:[#allocation3 + $0x78] sm:$0x1] }
 0x3d1   :  { %7176 = vst [vmem:[#allocation19_spill] sm:$0xff] %v5247_v45  ;;  %7177 = vst [vmem:[#allocation20_spill] sm:$0xff] %v5249_v8  ;;  %v2395_v60 = vsel %vm2343_vm5, %v2394_v62, %v2393_v35  ;;  %v5253_v33 = vld [vmem:[#allocation3 + $0x41] sm:$0x1]  ;;  %v5255_v46 = vld [vmem:[#allocation3 + $0x49] sm:$0x1] }
 0x3d2   :  { %v5257_v54 = vld [vmem:[#allocation3 + $0x51] sm:$0x1]  ;;  %v5259_v14 = vmul.f32 0.75, %v1693_v24  ;;  %v5261_v10 = vmul.f32 0.75, %v1694_v38  ;;  %v5263_v31 = vmul.f32 0.75, %v1695_v25  ;;  %v2397_v53 = vsel %vm2346_vm6, %v2396_v56, %v2395_v60 }
 0x3d3   :  { %v5266_v58 = vld [vmem:[#allocation3 + $0x59] sm:$0x1]  ;;  %v5268_v28 = vld [vmem:[#allocation3 + $0x61] sm:$0x1]  ;;  %v5270_v21 = vmul.f32 0.75, %v1696_v5  ;;  %v5272_v17 = vmul.f32 0.75, %v1697_v9  ;;  %v2399_v1 = vsel %vm2349_vm7, %v2398_v50, %v2397_v53 }
 0x3d4   :  { %7178 = vst [vmem:[#allocation21_spill] sm:$0xff] %v5259_v14  ;;  %7179 = vst [vmem:[#allocation22_spill] sm:$0xff] %v5261_v10  ;;  %v5274_v2 = vmul.f32 0.75, %v1698_v61  ;;  %v5277_v52 = vld [vmem:[#allocation3 + $0x69] sm:$0x1]  ;;  %v5279_v13 = vmul.f32 0.75, %v1699_v4  ;;  %v2401_v56 = vsel %vm2352_vm8, %v2400_v18, %v2399_v1 }
 0x3d5   :  { %7180 = vst [vmem:[#allocation23_spill] sm:$0xff] %v5263_v31  ;;  %7181 = vst [vmem:[#allocation24_spill] sm:$0xff] %v5270_v21  ;;  %v5281_v62 = vmul.f32 0.25, %v1692_v41  ;;  %v5283_v35 = vmul.f32 0.25, %v1693_v24  ;;  %v5286_v60 = vld [vmem:[#allocation3 + $0x71] sm:$0x1]  ;;  %v2403_v50 = vsel %vm2355_vm9, %v2402_v26, %v2401_v56 }
 0x3d6   :  { %7182 = vst [vmem:[#allocation25_spill] sm:$0xff] %v5272_v17  ;;  %7183 = vst [vmem:[#allocation26_spill] sm:$0xff] %v5274_v2  ;;  %v5288_v40 = vmul.f32 0.25, %v1694_v38  ;;  %v5290_v49 = vmul.f32 0.25, %v1695_v25  ;;  %v5292_v34 = vmul.f32 0.25, %v1696_v5  ;;  %v5297_v39 = vmul.f32 0.25, %v1697_v9 }
 0x3d7   :  { %7184 = vst [vmem:[#allocation27_spill] sm:$0xff] %v5279_v13  ;;  %7185 = vst [vmem:[#allocation28_spill] sm:$0xff] %v5281_v62  ;;  %v5295_v53 = vld [vmem:[#allocation3 + $0x79] sm:$0x1]  ;;  %v5299_v41 = vmul.f32 0.25, %v1698_v61  ;;  %v5301_v24 = vmul.f32 0.25, %v1699_v4  ;;  %v2405_v18 = vsel %vm2358_vm10, %v2404_v6, %v2403_v50 }
 0x3d8   :  { %7186 = vst [vmem:[#allocation29_spill] sm:$0xff] %v5283_v35  ;;  %7187 = vst [vmem:[#allocation30_spill] sm:$0xff] %v5288_v40  ;;  %v5305_v1 = vmul.f32 0.25, %v5253_v33  ;;  %v5308_v38 = vmul.f32 0.25, %v5255_v46  ;;  %v5311_v25 = vmul.f32 0.25, %v5257_v54  ;;  %2420 = vrot.lane.b32.xlu0 %v2405_v18, %s4112_s16  ;;  %v5315_v5 = vmul.f32 0.25, %v5266_v58 }
 0x3d9   :  { %7188 = vst [vmem:[#allocation31_spill] sm:$0xff] %v5290_v49  ;;  %7189 = vst [vmem:[#allocation32_spill] sm:$0xff] %v5292_v34  ;;  %v5318_v9 = vmul.f32 0.25, %v5268_v28  ;;  %v5321_v61 = vmul.f32 0.25, %v5277_v52  ;;  %v5324_v26 = vmul.f32 0.25, %v5286_v60  ;;  %v5327_v6 = vmul.f32 0.25, %v5295_v53 }
 0x3da   :  { %7190 = vst [vmem:[#allocation33_spill] sm:$0xff] %v5297_v39  ;;  %7191 = vst [vmem:[#allocation34_spill] sm:$0xff] %v5299_v41  ;;  %v1884_v4 = vadd.f32 %v5305_v1, %v5249_v8  ;;  %v1885_v56 = vadd.f32 %v5308_v38, %v5259_v14  ;;  %v1886_v50 = vadd.f32 %v5311_v25, %v5261_v10  ;;  %v5343_v16 = vld [vmem:[#allocation3 + $0x2] sm:$0x1]  ;;  %v5349_v8 = vld [vmem:[#allocation3 + $0x12] sm:$0x1] }
 0x3db   :  { %7192 = vst [vmem:[#allocation35_spill] sm:$0xff] %v5301_v24  ;;  %7193 = vst [vmem:[#allocation36_spill] sm:$0xff] %v5305_v1  ;;  %v1887_v18 = vadd.f32 %v5315_v5, %v5263_v31  ;;  %v1888_v32 = vadd.f32 %v5318_v9, %v5270_v21  ;;  %v1889_v19 = vadd.f32 %v5321_v61, %v5272_v17  ;;  %v5368_v17 = vld [vmem:[#allocation3 + $0x32] sm:$0x1]  ;;  %v6321_v31 = vld [vmem:[#allocation3 + $0x67] sm:$0x1] }
 0x3dc   :  { %7194 = vst [vmem:[#allocation37_spill] sm:$0xff] %v5308_v38  ;;  %7195 = vst [vmem:[#allocation38_spill] sm:$0xff] %v5311_v25  ;;  %v1890_v36 = vadd.f32 %v5324_v26, %v5274_v2  ;;  %v1891_v38 = vadd.f32 %v5327_v6, %v5279_v13  ;;  %v2406_v1 = vrot.slane %v1885_v56, 7  ;;  %v2408_v62 = vrot.slane %v1886_v50, 6  ;;  %v5347_v25 = vld [vmem:[#allocation3 + $0xa] sm:$0x1] }
 0x3dd   :  { %7196 = vst [vmem:[#allocation39_spill] sm:$0xff] %v5315_v5  ;;  %7197 = vst [vmem:[#allocation40_spill] sm:$0xff] %v5318_v9  ;;  %v5351_v5 = vld [vmem:[#allocation3 + $0x1a] sm:$0x1]  ;;  %v5354_v9 = vmul.f32 0.75, %v5161_v3  ;;  %v2412_v24 = vrot.slane %v1888_v32, 4 }
 0x3de   :  { %7198 = vst [vmem:[#allocation41_spill] sm:$0xff] %v5321_v61  ;;  %7199 = vst [vmem:[#allocation42_spill] sm:$0xff] %v5324_v26  ;;  %v2410_v61 = vrot.slane %v1887_v18, 5  ;;  %v2414_v41 = vrot.slane %v1889_v19, 3  ;;  %v2416_v26 = vrot.slane %v1890_v36, 2  ;;  %v2407_v39 = vsel %vm1229_vm3, %v2406_v1, %v1884_v4 }
 0x3df   :  { %7200 = vst [vmem:[#allocation43_spill] sm:$0xff] %v5327_v6  ;;  %7201 = vst [vmem:[#allocation44_spill] sm:$0xff] %v5354_v9  ;;  %v5356_v2 = vld [vmem:[#allocation3 + $0x22] sm:$0x1]  ;;  %v2418_v6 = vrot.slane %v1891_v38, 1  ;;  %v5362_v50 = vmul.f32 0.75, %v5163_v11  ;;  %v2409_v3 = vsel %vm2343_vm5, %v2408_v62, %v2407_v39 }
 0x3e0   :  { %v5359_v56 = vld [vmem:[#allocation3 + $0x2a] sm:$0x1]  ;;  %v5365_v13 = vmul.f32 0.75, %v5165_v23  ;;  %v5371_v19 = vmul.f32 0.75, %v5167_v48  ;;  %v5374_v36 = vmul.f32 0.75, %v5169_v47  ;;  %v5377_v32 = vmul.f32 0.75, %v5171_v51 }
 0x3e1   :  { %7202 = vst [vmem:[#allocation45_spill] sm:$0xff] %v5362_v50  ;;  %v2411_v1 = vsel %vm2346_vm6, %v2410_v61, %v2409_v3  ;;  %v5380_v11 = vld [vmem:[#allocation3 + $0x3a] sm:$0x1]  ;;  %v5383_v23 = vmul.f32 0.75, %v5177_v15  ;;  %v5386_v39 = vmul.f32 0.75, %v5187_v0  ;;  %v5389_v62 = vmul.f32 0.25, %v5343_v16 }
 0x3e2   :  { %7203 = vst [vmem:[#allocation46_spill] sm:$0xff] %v5365_v13  ;;  %7204 = vst [vmem:[#allocation47_spill] sm:$0xff] %v5371_v19  ;;  %v2413_v48 = vsel %vm2349_vm7, %v2412_v24, %v2411_v1  ;;  %v5393_v47 = vmul.f32 0.25, %v5347_v25  ;;  %v5396_v51 = vmul.f32 0.25, %v5349_v8  ;;  %v5399_v38 = vmul.f32 0.25, %v5351_v5 }
 0x3e3   :  { %7205 = vst [vmem:[#allocation48_spill] sm:$0xff] %v5374_v36  ;;  %7206 = vst [vmem:[#allocation49_spill] sm:$0xff] %v5377_v32  ;;  %v2415_v15 = vsel %vm2352_vm8, %v2414_v41, %v2413_v48  ;;  %v5403_v61 = vmul.f32 0.25, %v5356_v2  ;;  %v5406_v0 = vmul.f32 0.25, %v5359_v56  ;;  %v5409_v4 = vmul.f32 0.25, %v5368_v17 }
 0x3e4   :  { %7207 = vst [vmem:[#allocation50_spill] sm:$0xff] %v5383_v23  ;;  %7208 = vst [vmem:[#allocation51_spill] sm:$0xff] %v5386_v39  ;;  %v2417_v24 = vsel %vm2355_vm9, %v2416_v26, %v2415_v15  ;;  %v5413_v18 = vmul.f32 0.25, %v5380_v11  ;;  %v1940_v3 = vadd.f32 %v5389_v62, %v5354_v9  ;;  %v1941_v41 = vadd.f32 %v5393_v47, %v5362_v50  ;;  %v6327_v10 = vld [vmem:[#allocation3 + $0x6f] sm:$0x1] }
 0x3e5   :  { %7209 = vst [vmem:[#allocation52_spill] sm:$0xff] %v5389_v62  ;;  %7210 = vst [vmem:[#allocation53_spill] sm:$0xff] %v5393_v47  ;;  %v2419_v1 = vsel %vm2358_vm10, %v2418_v6, %v2417_v24  ;;  %v1942_v48 = vadd.f32 %v5396_v51, %v5365_v13  ;;  %v1943_v34 = vadd.f32 %v5399_v38, %v5371_v19  ;;  %v5433_v47 = vld [vmem:[#allocation3 + $0x42] sm:$0x1] }
 0x3e6   :  { %7211 = vst [vmem:[#allocation54_spill] sm:$0xff] %v5396_v51  ;;  %7212 = vst [vmem:[#allocation55_spill] sm:$0xff] %v5399_v38  ;;  %v1944_v26 = vadd.f32 %v5403_v61, %v5374_v36  ;;  %2422 = vrot.lane.b32.xlu1 %v2419_v1, %s4112_s16  ;;  %v1945_v15 = vadd.f32 %v5406_v0, %v5377_v32  ;;  %v1946_v62 = vadd.f32 %v5409_v4, %v5383_v23  ;;  %v5435_v51 = vld [vmem:[#allocation3 + $0x4a] sm:$0x1]  ;;  %v5439_v1 = vld [vmem:[#allocation3 + $0x5a] sm:$0x1] }
 0x3e7   :  { %7213 = vst [vmem:[#allocation56_spill] sm:$0xff] %v5403_v61  ;;  %7214 = vst [vmem:[#allocation57_spill] sm:$0xff] %v5406_v0  ;;  %v1947_v6 = vadd.f32 %v5413_v18, %v5386_v39  ;;  %v2488_v24 = vrot.slane %v1941_v41, 7  ;;  %v2490_v38 = vrot.slane %v1942_v48, 6  ;;  %v2492_v19 = vrot.slane %v1943_v34, 5 }
 0x3e8   :  { %7215 = vst [vmem:[#allocation58_spill] sm:$0xff] %v5409_v4  ;;  %7216 = vst [vmem:[#allocation59_spill] sm:$0xff] %v5413_v18  ;;  %v2494_v13 = vrot.slane %v1944_v26, 4  ;;  %v5437_v61 = vld [vmem:[#allocation3 + $0x52] sm:$0x1]  ;;  %v5444_v0 = vmul.f32 0.75, %v5253_v33 }
 0x3e9   :  { %v5441_v36 = vld [vmem:[#allocation3 + $0x62] sm:$0x1]  ;;  %v2489_v4 = vsel %vm1229_vm3, %v2488_v24, %v1940_v3  ;;  %v2496_v18 = vrot.slane %v1945_v15, 3  ;;  %v2498_v41 = vrot.slane %v1946_v62, 2  ;;  %v2500_v39 = vrot.slane %v1947_v6, 1 }
 0x3ea   :  { %7217 = vst [vmem:[#allocation60_spill] sm:$0xff] %v5444_v0  ;;  %v5447_v23 = vld [vmem:[#allocation3 + $0x6a] sm:$0x1]  ;;  %v2491_v48 = vsel %vm2343_vm5, %v2490_v38, %v2489_v4  ;;  %v5450_v34 = vld [vmem:[#allocation3 + $0x72] sm:$0x1]  ;;  %v5453_v26 = vmul.f32 0.75, %v5255_v46 }
 0x3eb   :  { %v5456_v32 = vmul.f32 0.75, %v5257_v54  ;;  %v5459_v33 = vmul.f32 0.75, %v5266_v58  ;;  %v2493_v3 = vsel %vm2346_vm6, %v2492_v19, %v2491_v48  ;;  %v5462_v15 = vld [vmem:[#allocation3 + $0x7a] sm:$0x1]  ;;  %v5465_v62 = vmul.f32 0.75, %v5268_v28 }
 0x3ec   :  { %7218 = vst [vmem:[#allocation61_spill] sm:$0xff] %v5453_v26  ;;  %v5468_v38 = vmul.f32 0.75, %v5277_v52  ;;  %v5471_v4 = vmul.f32 0.75, %v5286_v60  ;;  %v2495_v46 = vsel %vm2349_vm7, %v2494_v13, %v2493_v3  ;;  %v5475_v54 = vmul.f32 0.75, %v5295_v53 }
 0x3ed   :  { %7219 = vst [vmem:[#allocation62_spill] sm:$0xff] %v5456_v32  ;;  %7220 = vst [vmem:[#allocation63_spill] sm:$0xff] %v5459_v33  ;;  %v5478_v58 = vmul.f32 0.25, %v5433_v47  ;;  %v5481_v19 = vmul.f32 0.25, %v5435_v51  ;;  %v2497_v28 = vsel %vm2352_vm8, %v2496_v18, %v2495_v46  ;;  %v5485_v6 = vmul.f32 0.25, %v5437_v61 }
 0x3ee   :  { %7221 = vst [vmem:[#allocation64_spill] sm:$0xff] %v5465_v62  ;;  %7222 = vst [vmem:[#allocation65_spill] sm:$0xff] %v5468_v38  ;;  %v5488_v52 = vmul.f32 0.25, %v5439_v1  ;;  %v5491_v60 = vmul.f32 0.25, %v5441_v36  ;;  %v2499_v13 = vsel %vm2355_vm9, %v2498_v41, %v2497_v28  ;;  %v5495_v53 = vmul.f32 0.25, %v5447_v23 }
 0x3ef   :  { %7223 = vst [vmem:[#allocation66_spill] sm:$0xff] %v5471_v4  ;;  %7224 = vst [vmem:[#allocation67_spill] sm:$0xff] %v5475_v54  ;;  %v5498_v24 = vmul.f32 0.25, %v5450_v34  ;;  %v5501_v48 = vmul.f32 0.25, %v5462_v15  ;;  %v2501_v18 = vsel %vm2358_vm10, %v2500_v39, %v2499_v13  ;;  %v1948_v3 = vadd.f32 %v5478_v58, %v5444_v0  ;;  %v5544_v0 = vld [vmem:[#allocation3 + $0x33] sm:$0x1] }
 0x3f0   :  { %7225 = vst [vmem:[#allocation68_spill] sm:$0xff] %v5478_v58  ;;  %7226 = vst [vmem:[#allocation69_spill] sm:$0xff] %v5481_v19  ;;  %v1949_v46 = vadd.f32 %v5481_v19, %v5453_v26  ;;  %v1950_v41 = vadd.f32 %v5485_v6, %v5456_v32  ;;  %2516 = vrot.lane.b32.xlu0 %v2501_v18, %s4112_s16  ;;  %v1951_v28 = vadd.f32 %v5488_v52, %v5459_v33  ;;  %v5519_v58 = vld [vmem:[#allocation3 + $0x3] sm:$0x1]  ;;  %v5523_v18 = vld [vmem:[#allocation3 + $0xb] sm:$0x1] }
 0x3f1   :  { %7227 = vst [vmem:[#allocation70_spill] sm:$0xff] %v5485_v6  ;;  %7228 = vst [vmem:[#allocation71_spill] sm:$0xff] %v5488_v52  ;;  %v1952_v50 = vadd.f32 %v5491_v60, %v5465_v62  ;;  %v1953_v39 = vadd.f32 %v5495_v53, %v5468_v38  ;;  %v1954_v13 = vadd.f32 %v5498_v24, %v5471_v4  ;;  %v5525_v26 = vld [vmem:[#allocation3 + $0x13] sm:$0x1]  ;;  %v5527_v52 = vld [vmem:[#allocation3 + $0x1b] sm:$0x1] }
 0x3f2   :  { %7229 = vst [vmem:[#allocation72_spill] sm:$0xff] %v5491_v60  ;;  %7230 = vst [vmem:[#allocation73_spill] sm:$0xff] %v5495_v53  ;;  %v1955_v19 = vadd.f32 %v5501_v48, %v5475_v54  ;;  %v2502_v6 = vrot.slane %v1949_v46, 7  ;;  %v2504_v32 = vrot.slane %v1950_v41, 6  ;;  %v5530_v60 = vmul.f32 0.75, %v5343_v16 }
 0x3f3   :  { %7231 = vst [vmem:[#allocation74_spill] sm:$0xff] %v5498_v24  ;;  %7232 = vst [vmem:[#allocation75_spill] sm:$0xff] %v5501_v48  ;;  %v2506_v53 = vrot.slane %v1951_v28, 5  ;;  %v2508_v38 = vrot.slane %v1952_v50, 4  ;;  %v2510_v62 = vrot.slane %v1953_v39, 3  ;;  %v2512_v24 = vrot.slane %v1954_v13, 2 }
 0x3f4   :  { %7233 = vst [vmem:[#allocation76_spill] sm:$0xff] %v5530_v60  ;;  %v5532_v4 = vld [vmem:[#allocation3 + $0x23] sm:$0x1]  ;;  %v2503_v33 = vsel %vm1229_vm3, %v2502_v6, %v1948_v3  ;;  %v2514_v48 = vrot.slane %v1955_v19, 1  ;;  %v5535_v46 = vld [vmem:[#allocation3 + $0x2b] sm:$0x1] }
 0x3f5   :  { %v5538_v41 = vmul.f32 0.75, %v5347_v25  ;;  %v5541_v54 = vmul.f32 0.75, %v5349_v8  ;;  %v2505_v16 = vsel %vm2343_vm5, %v2504_v32, %v2503_v33  ;;  %v5547_v50 = vmul.f32 0.75, %v5351_v5  ;;  %v5556_v25 = vld [vmem:[#allocation3 + $0x3b] sm:$0x1] }
 0x3f6   :  { %v5550_v28 = vmul.f32 0.75, %v5356_v2  ;;  %v5553_v19 = vmul.f32 0.75, %v5359_v56  ;;  %v2507_v6 = vsel %vm2346_vm6, %v2506_v53, %v2505_v16  ;;  %v5559_v8 = vmul.f32 0.75, %v5368_v17 }
 0x3f7   :  { %7234 = vst [vmem:[#allocation77_spill] sm:$0xff] %v5538_v41  ;;  %7235 = vst [vmem:[#allocation78_spill] sm:$0xff] %v5541_v54  ;;  %v5562_v32 = vmul.f32 0.75, %v5380_v11  ;;  %v5565_v33 = vmul.f32 0.25, %v5519_v58  ;;  %v2509_v5 = vsel %vm2349_vm7, %v2508_v38, %v2507_v6  ;;  %v5569_v2 = vmul.f32 0.25, %v5523_v18 }
 0x3f8   :  { %7236 = vst [vmem:[#allocation79_spill] sm:$0xff] %v5547_v50  ;;  %7237 = vst [vmem:[#allocation80_spill] sm:$0xff] %v5550_v28  ;;  %v5572_v56 = vmul.f32 0.25, %v5525_v26  ;;  %v5575_v53 = vmul.f32 0.25, %v5527_v52  ;;  %v2511_v17 = vsel %vm2352_vm8, %v2510_v62, %v2509_v5  ;;  %v5579_v3 = vmul.f32 0.25, %v5532_v4 }
 0x3f9   :  { %7238 = vst [vmem:[#allocation81_spill] sm:$0xff] %v5553_v19  ;;  %7239 = vst [vmem:[#allocation82_spill] sm:$0xff] %v5559_v8  ;;  %v5582_v11 = vmul.f32 0.25, %v5535_v46  ;;  %v5585_v39 = vmul.f32 0.25, %v5544_v0  ;;  %v2513_v38 = vsel %vm2355_vm9, %v2512_v24, %v2511_v17  ;;  %v5589_v13 = vmul.f32 0.25, %v5556_v25 }
 0x3fa   :  { %7240 = vst [vmem:[#allocation83_spill] sm:$0xff] %v5562_v32  ;;  %7241 = vst [vmem:[#allocation84_spill] sm:$0xff] %v5565_v33  ;;  %v2004_v16 = vadd.f32 %v5565_v33, %v5530_v60  ;;  %v2005_v62 = vadd.f32 %v5569_v2, %v5538_v41  ;;  %v2515_v6 = vsel %vm2358_vm10, %v2514_v48, %v2513_v38 }
 0x3fb   :  { %7242 = vst [vmem:[#allocation85_spill] sm:$0xff] %v5569_v2  ;;  %7243 = vst [vmem:[#allocation86_spill] sm:$0xff] %v5572_v56  ;;  %v2006_v5 = vadd.f32 %v5572_v56, %v5541_v54  ;;  %v2007_v9 = vadd.f32 %v5575_v53, %v5547_v50  ;;  %v2008_v24 = vadd.f32 %v5579_v3, %v5550_v28  ;;  %2518 = vrot.lane.b32.xlu1 %v2515_v6, %s4112_s16  ;;  %v5609_v2 = vld [vmem:[#allocation3 + $0x43] sm:$0x1]  ;;  %v5611_v56 = vld [vmem:[#allocation3 + $0x4b] sm:$0x1] }
 0x3fc   :  { %7244 = vst [vmem:[#allocation87_spill] sm:$0xff] %v5575_v53  ;;  %7245 = vst [vmem:[#allocation88_spill] sm:$0xff] %v5579_v3  ;;  %v2009_v17 = vadd.f32 %v5582_v11, %v5553_v19  ;;  %v2010_v33 = vadd.f32 %v5585_v39, %v5559_v8  ;;  %v2011_v48 = vadd.f32 %v5589_v13, %v5562_v32  ;;  %v2584_v38 = vrot.slane %v2005_v62, 7  ;;  %v5613_v3 = vld [vmem:[#allocation3 + $0x53] sm:$0x1] }
 0x3fd   :  { %7246 = vst [vmem:[#allocation89_spill] sm:$0xff] %v5582_v11  ;;  %7247 = vst [vmem:[#allocation90_spill] sm:$0xff] %v5585_v39  ;;  %v2586_v53 = vrot.slane %v2006_v5, 6  ;;  %v2588_v50 = vrot.slane %v2007_v9, 5  ;;  %v2590_v54 = vrot.slane %v2008_v24, 4  ;;  %v5620_v11 = vmul.f32 0.75, %v5433_v47 }
 0x3fe   :  { %7248 = vst [vmem:[#allocation91_spill] sm:$0xff] %v5589_v13  ;;  %v5615_v6 = vld [vmem:[#allocation3 + $0x5b] sm:$0x1]  ;;  %v5617_v28 = vld [vmem:[#allocation3 + $0x63] sm:$0x1]  ;;  %v2585_v39 = vsel %vm1229_vm3, %v2584_v38, %v2004_v16  ;;  %v2592_v13 = vrot.slane %v2009_v17, 3 }
 0x3ff   :  { %7249 = vst [vmem:[#allocation92_spill] sm:$0xff] %v5620_v11  ;;  %v2594_v62 = vrot.slane %v2010_v33, 2  ;;  %v2596_v32 = vrot.slane %v2011_v48, 1  ;;  %v5623_v8 = vld [vmem:[#allocation3 + $0x6b] sm:$0x1]  ;;  %v2587_v5 = vsel %vm2343_vm5, %v2586_v53, %v2585_v39  ;;  %v5629_v24 = vmul.f32 0.75, %v5435_v51 }
 0x400   :  { %v5626_v9 = vld [vmem:[#allocation3 + $0x73] sm:$0x1]  ;;  %v5632_v19 = vmul.f32 0.75, %v5437_v61  ;;  %v5635_v47 = vmul.f32 0.75, %v5439_v1  ;;  %v2589_v16 = vsel %vm2346_vm6, %v2588_v50, %v2587_v5  ;;  %v5638_v17 = vld [vmem:[#allocation3 + $0x7b] sm:$0x1] }
 0x401   :  { %7250 = vst [vmem:[#allocation93_spill] sm:$0xff] %v5629_v24  ;;  %v5641_v33 = vmul.f32 0.75, %v5441_v36  ;;  %v5644_v53 = vmul.f32 0.75, %v5447_v23  ;;  %v5647_v39 = vmul.f32 0.75, %v5450_v34  ;;  %v2591_v51 = vsel %vm2349_vm7, %v2590_v54, %v2589_v16 }
 0x402   :  { %7251 = vst [vmem:[#allocation94_spill] sm:$0xff] %v5632_v19  ;;  %7252 = vst [vmem:[#allocation95_spill] sm:$0xff] %v5635_v47  ;;  %v5651_v61 = vmul.f32 0.75, %v5462_v15  ;;  %v5654_v1 = vmul.f32 0.25, %v5609_v2  ;;  %v5657_v50 = vmul.f32 0.25, %v5611_v56  ;;  %v2593_v36 = vsel %vm2352_vm8, %v2592_v13, %v2591_v51 }
 0x403   :  { %7253 = vst [vmem:[#allocation96_spill] sm:$0xff] %v5641_v33  ;;  %7254 = vst [vmem:[#allocation97_spill] sm:$0xff] %v5644_v53  ;;  %v5661_v48 = vmul.f32 0.25, %v5613_v3  ;;  %v5664_v23 = vmul.f32 0.25, %v5615_v6  ;;  %v5667_v34 = vmul.f32 0.25, %v5617_v28  ;;  %v2595_v15 = vsel %vm2355_vm9, %v2594_v62, %v2593_v36 }
 0x404   :  { %7255 = vst [vmem:[#allocation98_spill] sm:$0xff] %v5647_v39  ;;  %7256 = vst [vmem:[#allocation99_spill] sm:$0xff] %v5651_v61  ;;  %v5671_v54 = vmul.f32 0.25, %v5623_v8  ;;  %v5674_v38 = vmul.f32 0.25, %v5626_v9  ;;  %v5677_v5 = vmul.f32 0.25, %v5638_v17  ;;  %v2597_v13 = vsel %vm2358_vm10, %v2596_v32, %v2595_v15 }
 0x405   :  { %7257 = vst [vmem:[#allocation100_spill] sm:$0xff] %v5654_v1  ;;  %7258 = vst [vmem:[#allocation101_spill] sm:$0xff] %v5657_v50  ;;  %v2012_v16 = vadd.f32 %v5654_v1, %v5620_v11  ;;  %v2013_v51 = vadd.f32 %v5657_v50, %v5629_v24  ;;  %v2014_v62 = vadd.f32 %v5661_v48, %v5632_v19  ;;  %2612 = vrot.lane.b32.xlu0 %v2597_v13, %s4112_s16  ;;  %v5695_v1 = vld [vmem:[#allocation3 + $0x4] sm:$0x1]  ;;  %v5699_v13 = vld [vmem:[#allocation3 + $0xc] sm:$0x1] }
 0x406   :  { %7259 = vst [vmem:[#allocation102_spill] sm:$0xff] %v5661_v48  ;;  %7260 = vst [vmem:[#allocation103_spill] sm:$0xff] %v5664_v23  ;;  %v2015_v36 = vadd.f32 %v5664_v23, %v5635_v47  ;;  %v2016_v41 = vadd.f32 %v5667_v34, %v5641_v33  ;;  %v2017_v32 = vadd.f32 %v5671_v54, %v5644_v53  ;;  %v5701_v24 = vld [vmem:[#allocation3 + $0x14] sm:$0x1]  ;;  %v5703_v23 = vld [vmem:[#allocation3 + $0x1c] sm:$0x1] }
 0x407   :  { %7261 = vst [vmem:[#allocation104_spill] sm:$0xff] %v5667_v34  ;;  %7262 = vst [vmem:[#allocation105_spill] sm:$0xff] %v5671_v54  ;;  %v2018_v15 = vadd.f32 %v5674_v38, %v5647_v39  ;;  %v2019_v50 = vadd.f32 %v5677_v5, %v5651_v61  ;;  %v2598_v48 = vrot.slane %v2013_v51, 7  ;;  %v2600_v19 = vrot.slane %v2014_v62, 6  ;;  %v5708_v39 = vld [vmem:[#allocation3 + $0x24] sm:$0x1] }
 0x408   :  { %7263 = vst [vmem:[#allocation106_spill] sm:$0xff] %v5674_v38  ;;  %7264 = vst [vmem:[#allocation107_spill] sm:$0xff] %v5677_v5  ;;  %v5706_v34 = vmul.f32 0.75, %v5519_v58  ;;  %v2602_v54 = vrot.slane %v2015_v36, 5  ;;  %v2604_v53 = vrot.slane %v2016_v41, 4  ;;  %v2606_v33 = vrot.slane %v2017_v32, 3 }
 0x409   :  { %v2608_v38 = vrot.slane %v2018_v15, 2  ;;  %v2599_v47 = vsel %vm1229_vm3, %v2598_v48, %v2012_v16  ;;  %v2610_v5 = vrot.slane %v2019_v50, 1  ;;  %v5711_v51 = vld [vmem:[#allocation3 + $0x2c] sm:$0x1]  ;;  %v5714_v62 = vmul.f32 0.75, %v5523_v18 }
 0x40a   :  { %7265 = vst [vmem:[#allocation108_spill] sm:$0xff] %v5706_v34  ;;  %v5717_v61 = vmul.f32 0.75, %v5525_v26  ;;  %v2601_v58 = vsel %vm2343_vm5, %v2600_v19, %v2599_v47  ;;  %v5720_v11 = vld [vmem:[#allocation3 + $0x34] sm:$0x1]  ;;  %v5723_v41 = vmul.f32 0.75, %v5527_v52  ;;  %v5726_v36 = vmul.f32 0.75, %v5532_v4 }
 0x40b   :  { %7266 = vst [vmem:[#allocation109_spill] sm:$0xff] %v5714_v62  ;;  %v5729_v50 = vmul.f32 0.75, %v5535_v46  ;;  %v2603_v48 = vsel %vm2346_vm6, %v2602_v54, %v2601_v58  ;;  %v5732_v18 = vld [vmem:[#allocation3 + $0x3c] sm:$0x1]  ;;  %v5735_v26 = vmul.f32 0.75, %v5544_v0  ;;  %v5738_v19 = vmul.f32 0.75, %v5556_v25 }
 0x40c   :  { %7267 = vst [vmem:[#allocation110_spill] sm:$0xff] %v5717_v61  ;;  %7268 = vst [vmem:[#allocation111_spill] sm:$0xff] %v5723_v41  ;;  %v5741_v47 = vmul.f32 0.25, %v5695_v1  ;;  %v2605_v52 = vsel %vm2349_vm7, %v2604_v53, %v2603_v48  ;;  %v5745_v4 = vmul.f32 0.25, %v5699_v13  ;;  %v5748_v46 = vmul.f32 0.25, %v5701_v24 }
 0x40d   :  { %7269 = vst [vmem:[#allocation112_spill] sm:$0xff] %v5726_v36  ;;  %7270 = vst [vmem:[#allocation113_spill] sm:$0xff] %v5729_v50  ;;  %v5751_v54 = vmul.f32 0.25, %v5703_v23  ;;  %v2607_v0 = vsel %vm2352_vm8, %v2606_v33, %v2605_v52  ;;  %v5755_v16 = vmul.f32 0.25, %v5708_v39  ;;  %v5758_v25 = vmul.f32 0.25, %v5711_v51 }
 0x40e   :  { %7271 = vst [vmem:[#allocation114_spill] sm:$0xff] %v5735_v26  ;;  %7272 = vst [vmem:[#allocation115_spill] sm:$0xff] %v5738_v19  ;;  %v5761_v32 = vmul.f32 0.25, %v5720_v11  ;;  %v2609_v53 = vsel %vm2355_vm9, %v2608_v38, %v2607_v0  ;;  %v5765_v15 = vmul.f32 0.25, %v5732_v18  ;;  %v2068_v58 = vadd.f32 %v5741_v47, %v5706_v34 }
 0x40f   :  { %7273 = vst [vmem:[#allocation116_spill] sm:$0xff] %v5741_v47  ;;  %7274 = vst [vmem:[#allocation117_spill] sm:$0xff] %v5745_v4  ;;  %v2069_v33 = vadd.f32 %v5745_v4, %v5714_v62  ;;  %v2611_v48 = vsel %vm2358_vm10, %v2610_v5, %v2609_v53  ;;  %v2070_v52 = vadd.f32 %v5748_v46, %v5717_v61  ;;  %v5785_v4 = vld [vmem:[#allocation3 + $0x44] sm:$0x1] }
 0x410   :  { %7275 = vst [vmem:[#allocation118_spill] sm:$0xff] %v5748_v46  ;;  %7276 = vst [vmem:[#allocation119_spill] sm:$0xff] %v5751_v54  ;;  %v2071_v60 = vadd.f32 %v5751_v54, %v5723_v41  ;;  %v2072_v38 = vadd.f32 %v5755_v16, %v5726_v36  ;;  %2614 = vrot.lane.b32.xlu1 %v2611_v48, %s4112_s16  ;;  %v2073_v0 = vadd.f32 %v5758_v25, %v5729_v50  ;;  %v5787_v46 = vld [vmem:[#allocation3 + $0x4c] sm:$0x1]  ;;  %v5791_v48 = vld [vmem:[#allocation3 + $0x5c] sm:$0x1] }
 0x411   :  { %7277 = vst [vmem:[#allocation120_spill] sm:$0xff] %v5755_v16  ;;  %7278 = vst [vmem:[#allocation121_spill] sm:$0xff] %v5758_v25  ;;  %v2074_v47 = vadd.f32 %v5761_v32, %v5735_v26  ;;  %v2075_v5 = vadd.f32 %v5765_v15, %v5738_v19  ;;  %v2680_v53 = vrot.slane %v2069_v33, 7  ;;  %v2682_v54 = vrot.slane %v2070_v52, 6  ;;  %v5789_v16 = vld [vmem:[#allocation3 + $0x54] sm:$0x1] }
 0x412   :  { %7279 = vst [vmem:[#allocation122_spill] sm:$0xff] %v5761_v32  ;;  %7280 = vst [vmem:[#allocation123_spill] sm:$0xff] %v5765_v15  ;;  %v2684_v34 = vrot.slane %v2071_v60, 5  ;;  %v2686_v41 = vrot.slane %v2072_v38, 4  ;;  %v5793_v36 = vld [vmem:[#allocation3 + $0x64] sm:$0x1] }
 0x413   :  { %v5796_v25 = vmul.f32 0.75, %v5609_v2  ;;  %v2681_v32 = vsel %vm1229_vm3, %v2680_v53, %v2068_v58  ;;  %v2688_v15 = vrot.slane %v2073_v0, 3  ;;  %v2690_v33 = vrot.slane %v2074_v47, 2  ;;  %v5799_v26 = vld [vmem:[#allocation3 + $0x6c] sm:$0x1] }
 0x414   :  { %v2692_v19 = vrot.slane %v2075_v5, 1  ;;  %v2683_v52 = vsel %vm2343_vm5, %v2682_v54, %v2681_v32  ;;  %v5802_v60 = vld [vmem:[#allocation3 + $0x74] sm:$0x1]  ;;  %v5805_v38 = vmul.f32 0.75, %v5611_v56  ;;  %v5808_v50 = vmul.f32 0.75, %v5613_v3 }
 0x415   :  { %7281 = vst [vmem:[#allocation124_spill] sm:$0xff] %v5796_v25  ;;  %v5811_v2 = vmul.f32 0.75, %v5615_v6  ;;  %v2685_v58 = vsel %vm2346_vm6, %v2684_v34, %v2683_v52  ;;  %v5814_v0 = vld [vmem:[#allocation3 + $0x7c] sm:$0x1]  ;;  %v5817_v47 = vmul.f32 0.75, %v5617_v28  ;;  %v5820_v54 = vmul.f32 0.75, %v5623_v8 }
 0x416   :  { %7282 = vst [vmem:[#allocation125_spill] sm:$0xff] %v5805_v38  ;;  %7283 = vst [vmem:[#allocation126_spill] sm:$0xff] %v5808_v50  ;;  %v5823_v32 = vmul.f32 0.75, %v5626_v9  ;;  %v2687_v56 = vsel %vm2349_vm7, %v2686_v41, %v2685_v58  ;;  %v5827_v3 = vmul.f32 0.75, %v5638_v17  ;;  %v5830_v6 = vmul.f32 0.25, %v5785_v4 }
 0x417   :  { %7284 = vst [vmem:[#allocation127_spill] sm:$0xff] %v5811_v2  ;;  %7285 = vst [vmem:[#allocation128_spill] sm:$0xff] %v5817_v47  ;;  %v5833_v34 = vmul.f32 0.25, %v5787_v46  ;;  %v2689_v28 = vsel %vm2352_vm8, %v2688_v15, %v2687_v56  ;;  %v5837_v5 = vmul.f32 0.25, %v5789_v16  ;;  %v5840_v8 = vmul.f32 0.25, %v5791_v48 }
 0x418   :  { %7286 = vst [vmem:[#allocation129_spill] sm:$0xff] %v5820_v54  ;;  %7287 = vst [vmem:[#allocation130_spill] sm:$0xff] %v5823_v32  ;;  %v5843_v9 = vmul.f32 0.25, %v5793_v36  ;;  %v2691_v17 = vsel %vm2355_vm9, %v2690_v33, %v2689_v28  ;;  %v5847_v41 = vmul.f32 0.25, %v5799_v26  ;;  %v5850_v53 = vmul.f32 0.25, %v5802_v60 }
 0x419   :  { %7288 = vst [vmem:[#allocation131_spill] sm:$0xff] %v5827_v3  ;;  %7289 = vst [vmem:[#allocation132_spill] sm:$0xff] %v5830_v6  ;;  %v5853_v52 = vmul.f32 0.25, %v5814_v0  ;;  %v2693_v15 = vsel %vm2358_vm10, %v2692_v19, %v2691_v17  ;;  %v2076_v58 = vadd.f32 %v5830_v6, %v5796_v25  ;;  %v2077_v56 = vadd.f32 %v5833_v34, %v5805_v38  ;;  %v5871_v6 = vld [vmem:[#allocation3 + $0x5] sm:$0x1] }
 0x41a   :  { %7290 = vst [vmem:[#allocation133_spill] sm:$0xff] %v5833_v34  ;;  %7291 = vst [vmem:[#allocation134_spill] sm:$0xff] %v5837_v5  ;;  %v2078_v33 = vadd.f32 %v5837_v5, %v5808_v50  ;;  %2708 = vrot.lane.b32.xlu0 %v2693_v15, %s4112_s16  ;;  %v2079_v28 = vadd.f32 %v5840_v8, %v5811_v2  ;;  %v2080_v61 = vadd.f32 %v5843_v9, %v5817_v47  ;;  %v5875_v15 = vld [vmem:[#allocation3 + $0xd] sm:$0x1]  ;;  %v5877_v50 = vld [vmem:[#allocation3 + $0x15] sm:$0x1] }
 0x41b   :  { %7292 = vst [vmem:[#allocation135_spill] sm:$0xff] %v5840_v8  ;;  %7293 = vst [vmem:[#allocation136_spill] sm:$0xff] %v5843_v9  ;;  %v2081_v19 = vadd.f32 %v5847_v41, %v5820_v54  ;;  %v2082_v17 = vadd.f32 %v5850_v53, %v5823_v32  ;;  %v2083_v34 = vadd.f32 %v5853_v52, %v5827_v3  ;;  %v2694_v5 = vrot.slane %v2077_v56, 7  ;;  %v5879_v8 = vld [vmem:[#allocation3 + $0x1d] sm:$0x1] }
 0x41c   :  { %7294 = vst [vmem:[#allocation137_spill] sm:$0xff] %v5847_v41  ;;  %7295 = vst [vmem:[#allocation138_spill] sm:$0xff] %v5850_v53  ;;  %v2696_v25 = vrot.slane %v2078_v33, 6  ;;  %v5882_v9 = vmul.f32 0.75, %v5695_v1  ;;  %v2698_v41 = vrot.slane %v2079_v28, 5  ;;  %v2700_v54 = vrot.slane %v2080_v61, 4 }
 0x41d   :  { %7296 = vst [vmem:[#allocation139_spill] sm:$0xff] %v5853_v52  ;;  %v2702_v47 = vrot.slane %v2081_v19, 3  ;;  %v2704_v53 = vrot.slane %v2082_v17, 2  ;;  %v5884_v32 = vld [vmem:[#allocation3 + $0x25] sm:$0x1]  ;;  %v2695_v2 = vsel %vm1229_vm3, %v2694_v5, %v2076_v58  ;;  %v2706_v52 = vrot.slane %v2083_v34, 1 }
 0x41e   :  { %7297 = vst [vmem:[#allocation140_spill] sm:$0xff] %v5882_v9  ;;  %v5887_v56 = vld [vmem:[#allocation3 + $0x2d] sm:$0x1]  ;;  %v5890_v33 = vmul.f32 0.75, %v5699_v13  ;;  %v5893_v3 = vmul.f32 0.75, %v5701_v24  ;;  %v2697_v1 = vsel %vm2343_vm5, %v2696_v25, %v2695_v2  ;;  %v5899_v61 = vmul.f32 0.75, %v5703_v23 }
 0x41f   :  { %v5896_v38 = vld [vmem:[#allocation3 + $0x35] sm:$0x1]  ;;  %v5902_v28 = vmul.f32 0.75, %v5708_v39  ;;  %v5905_v34 = vmul.f32 0.75, %v5711_v51  ;;  %v2699_v5 = vsel %vm2346_vm6, %v2698_v41, %v2697_v1  ;;  %v5908_v13 = vld [vmem:[#allocation3 + $0x3d] sm:$0x1] }
 0x420   :  { %7298 = vst [vmem:[#allocation141_spill] sm:$0xff] %v5890_v33  ;;  %7299 = vst [vmem:[#allocation142_spill] sm:$0xff] %v5893_v3  ;;  %v5911_v24 = vmul.f32 0.75, %v5720_v11  ;;  %v5914_v25 = vmul.f32 0.75, %v5732_v18  ;;  %v5917_v2 = vmul.f32 0.25, %v5871_v6  ;;  %v2701_v23 = vsel %vm2349_vm7, %v2700_v54, %v2699_v5 }
 0x421   :  { %7300 = vst [vmem:[#allocation143_spill] sm:$0xff] %v5899_v61  ;;  %7301 = vst [vmem:[#allocation144_spill] sm:$0xff] %v5902_v28  ;;  %v5921_v39 = vmul.f32 0.25, %v5875_v15  ;;  %v5924_v51 = vmul.f32 0.25, %v5877_v50  ;;  %v5927_v41 = vmul.f32 0.25, %v5879_v8  ;;  %v2703_v11 = vsel %vm2352_vm8, %v2702_v47, %v2701_v23 }
 0x422   :  { %7302 = vst [vmem:[#allocation145_spill] sm:$0xff] %v5905_v34  ;;  %7303 = vst [vmem:[#allocation146_spill] sm:$0xff] %v5911_v24  ;;  %v5931_v58 = vmul.f32 0.25, %v5884_v32  ;;  %v5934_v18 = vmul.f32 0.25, %v5887_v56  ;;  %v5937_v19 = vmul.f32 0.25, %v5896_v38  ;;  %v2705_v54 = vsel %vm2355_vm9, %v2704_v53, %v2703_v11 }
 0x423   :  { %7304 = vst [vmem:[#allocation147_spill] sm:$0xff] %v5914_v25  ;;  %7305 = vst [vmem:[#allocation148_spill] sm:$0xff] %v5917_v2  ;;  %v5941_v17 = vmul.f32 0.25, %v5908_v13  ;;  %v2132_v1 = vadd.f32 %v5917_v2, %v5882_v9  ;;  %v2133_v47 = vadd.f32 %v5921_v39, %v5890_v33  ;;  %v2707_v5 = vsel %vm2358_vm10, %v2706_v52, %v2705_v54 }
 0x424   :  { %7306 = vst [vmem:[#allocation149_spill] sm:$0xff] %v5921_v39  ;;  %7307 = vst [vmem:[#allocation150_spill] sm:$0xff] %v5924_v51  ;;  %v2134_v23 = vadd.f32 %v5924_v51, %v5893_v3  ;;  %v2135_v62 = vadd.f32 %v5927_v41, %v5899_v61  ;;  %v2136_v53 = vadd.f32 %v5931_v58, %v5902_v28  ;;  %2710 = vrot.lane.b32.xlu1 %v2707_v5, %s4112_s16  ;;  %v5961_v39 = vld [vmem:[#allocation3 + $0x45] sm:$0x1]  ;;  %v5963_v51 = vld [vmem:[#allocation3 + $0x4d] sm:$0x1] }
 0x425   :  { %7308 = vst [vmem:[#allocation151_spill] sm:$0xff] %v5927_v41  ;;  %7309 = vst [vmem:[#allocation152_spill] sm:$0xff] %v5931_v58  ;;  %v2137_v11 = vadd.f32 %v5934_v18, %v5905_v34  ;;  %v2138_v2 = vadd.f32 %v5937_v19, %v5911_v24  ;;  %v2139_v52 = vadd.f32 %v5941_v17, %v5914_v25  ;;  %v2776_v54 = vrot.slane %v2133_v47, 7  ;;  %v5965_v58 = vld [vmem:[#allocation3 + $0x55] sm:$0x1] }
 0x426   :  { %7310 = vst [vmem:[#allocation153_spill] sm:$0xff] %v5934_v18  ;;  %7311 = vst [vmem:[#allocation154_spill] sm:$0xff] %v5937_v19  ;;  %v2778_v41 = vrot.slane %v2134_v23, 6  ;;  %v2780_v9 = vrot.slane %v2135_v62, 5  ;;  %v2782_v61 = vrot.slane %v2136_v53, 4  ;;  %v5972_v18 = vmul.f32 0.75, %v5785_v4 }
 0x427   :  { %7312 = vst [vmem:[#allocation155_spill] sm:$0xff] %v5941_v17  ;;  %v5967_v5 = vld [vmem:[#allocation3 + $0x5d] sm:$0x1]  ;;  %v5969_v28 = vld [vmem:[#allocation3 + $0x65] sm:$0x1]  ;;  %v2777_v19 = vsel %vm1229_vm3, %v2776_v54, %v2132_v1  ;;  %v2784_v17 = vrot.slane %v2137_v11, 3 }
 0x428   :  { %7313 = vst [vmem:[#allocation156_spill] sm:$0xff] %v5972_v18  ;;  %v2786_v47 = vrot.slane %v2138_v2, 2  ;;  %v2788_v25 = vrot.slane %v2139_v52, 1  ;;  %v5975_v24 = vld [vmem:[#allocation3 + $0x6d] sm:$0x1]  ;;  %v2779_v23 = vsel %vm2343_vm5, %v2778_v41, %v2777_v19  ;;  %v5981_v53 = vmul.f32 0.75, %v5787_v46 }
 0x429   :  { %v5978_v62 = vld [vmem:[#allocation3 + $0x75] sm:$0x1]  ;;  %v5984_v34 = vmul.f32 0.75, %v5789_v16  ;;  %v5987_v4 = vmul.f32 0.75, %v5791_v48  ;;  %v2781_v1 = vsel %vm2346_vm6, %v2780_v9, %v2779_v23  ;;  %v5990_v11 = vld [vmem:[#allocation3 + $0x7d] sm:$0x1] }
 0x42a   :  { %7314 = vst [vmem:[#allocation157_spill] sm:$0xff] %v5981_v53  ;;  %v5993_v2 = vmul.f32 0.75, %v5793_v36  ;;  %v5996_v41 = vmul.f32 0.75, %v5799_v26  ;;  %v5999_v19 = vmul.f32 0.75, %v5802_v60  ;;  %v2783_v46 = vsel %vm2349_vm7, %v2782_v61, %v2781_v1 }
 0x42b   :  { %7315 = vst [vmem:[#allocation158_spill] sm:$0xff] %v5984_v34  ;;  %7316 = vst [vmem:[#allocation159_spill] sm:$0xff] %v5987_v4  ;;  %v6003_v16 = vmul.f32 0.75, %v5814_v0  ;;  %v6006_v48 = vmul.f32 0.25, %v5961_v39  ;;  %v6009_v9 = vmul.f32 0.25, %v5963_v51  ;;  %v2785_v36 = vsel %vm2352_vm8, %v2784_v17, %v2783_v46 }
 0x42c   :  { %7317 = vst [vmem:[#allocation160_spill] sm:$0xff] %v5993_v2  ;;  %7318 = vst [vmem:[#allocation161_spill] sm:$0xff] %v5996_v41  ;;  %v6013_v52 = vmul.f32 0.25, %v5965_v58  ;;  %v6016_v26 = vmul.f32 0.25, %v5967_v5  ;;  %v6019_v60 = vmul.f32 0.25, %v5969_v28  ;;  %v2787_v0 = vsel %vm2355_vm9, %v2786_v47, %v2785_v36 }
 0x42d   :  { %7319 = vst [vmem:[#allocation162_spill] sm:$0xff] %v5999_v19  ;;  %7320 = vst [vmem:[#allocation163_spill] sm:$0xff] %v6003_v16  ;;  %v6023_v61 = vmul.f32 0.25, %v5975_v24  ;;  %v6026_v54 = vmul.f32 0.25, %v5978_v62  ;;  %v6029_v23 = vmul.f32 0.25, %v5990_v11  ;;  %v2789_v17 = vsel %vm2358_vm10, %v2788_v25, %v2787_v0 }
 0x42e   :  { %7321 = vst [vmem:[#allocation164_spill] sm:$0xff] %v6006_v48  ;;  %7322 = vst [vmem:[#allocation165_spill] sm:$0xff] %v6009_v9  ;;  %v2140_v1 = vadd.f32 %v6006_v48, %v5972_v18  ;;  %v2141_v46 = vadd.f32 %v6009_v9, %v5981_v53  ;;  %v2142_v47 = vadd.f32 %v6013_v52, %v5984_v34  ;;  %2804 = vrot.lane.b32.xlu0 %v2789_v17, %s4112_s16  ;;  %v6047_v48 = vld [vmem:[#allocation3 + $0x6] sm:$0x1]  ;;  %v6051_v17 = vld [vmem:[#allocation3 + $0xe] sm:$0x1] }
 0x42f   :  { %7323 = vst [vmem:[#allocation166_spill] sm:$0xff] %v6013_v52  ;;  %7324 = vst [vmem:[#allocation167_spill] sm:$0xff] %v6016_v26  ;;  %v2143_v36 = vadd.f32 %v6016_v26, %v5987_v4  ;;  %v2144_v3 = vadd.f32 %v6019_v60, %v5993_v2  ;;  %v2145_v25 = vadd.f32 %v6023_v61, %v5996_v41  ;;  %v6053_v53 = vld [vmem:[#allocation3 + $0x16] sm:$0x1]  ;;  %v6055_v26 = vld [vmem:[#allocation3 + $0x1e] sm:$0x1] }
 0x430   :  { %7325 = vst [vmem:[#allocation168_spill] sm:$0xff] %v6019_v60  ;;  %7326 = vst [vmem:[#allocation169_spill] sm:$0xff] %v6023_v61  ;;  %v2146_v0 = vadd.f32 %v6026_v54, %v5999_v19  ;;  %v2147_v9 = vadd.f32 %v6029_v23, %v6003_v16  ;;  %v2790_v52 = vrot.slane %v2141_v46, 7  ;;  %v2792_v34 = vrot.slane %v2142_v47, 6  ;;  %v6060_v19 = vld [vmem:[#allocation3 + $0x26] sm:$0x1] }
 0x431   :  { %7327 = vst [vmem:[#allocation170_spill] sm:$0xff] %v6026_v54  ;;  %7328 = vst [vmem:[#allocation171_spill] sm:$0xff] %v6029_v23  ;;  %v6058_v60 = vmul.f32 0.75, %v5871_v6  ;;  %v2794_v61 = vrot.slane %v2143_v36, 5  ;;  %v2796_v41 = vrot.slane %v2144_v3, 4  ;;  %v2798_v2 = vrot.slane %v2145_v25, 3 }
 0x432   :  { %v2800_v54 = vrot.slane %v2146_v0, 2  ;;  %v2791_v4 = vsel %vm1229_vm3, %v2790_v52, %v2140_v1  ;;  %v2802_v23 = vrot.slane %v2147_v9, 1  ;;  %v6063_v46 = vld [vmem:[#allocation3 + $0x2e] sm:$0x1]  ;;  %v6066_v47 = vmul.f32 0.75, %v5875_v15 }
 0x433   :  { %7329 = vst [vmem:[#allocation172_spill] sm:$0xff] %v6058_v60  ;;  %v6069_v16 = vmul.f32 0.75, %v5877_v50  ;;  %v2793_v6 = vsel %vm2343_vm5, %v2792_v34, %v2791_v4  ;;  %v6072_v18 = vld [vmem:[#allocation3 + $0x36] sm:$0x1]  ;;  %v6075_v3 = vmul.f32 0.75, %v5879_v8  ;;  %v6078_v36 = vmul.f32 0.75, %v5884_v32 }
 0x434   :  { %7330 = vst [vmem:[#allocation173_spill] sm:$0xff] %v6066_v47  ;;  %v6081_v9 = vmul.f32 0.75, %v5887_v56  ;;  %v2795_v52 = vsel %vm2346_vm6, %v2794_v61, %v2793_v6  ;;  %v6084_v15 = vld [vmem:[#allocation3 + $0x3e] sm:$0x1]  ;;  %v6087_v50 = vmul.f32 0.75, %v5896_v38  ;;  %v6090_v34 = vmul.f32 0.75, %v5908_v13 }
 0x435   :  { %7331 = vst [vmem:[#allocation174_spill] sm:$0xff] %v6069_v16  ;;  %7332 = vst [vmem:[#allocation175_spill] sm:$0xff] %v6075_v3  ;;  %v6093_v4 = vmul.f32 0.25, %v6047_v48  ;;  %v2797_v8 = vsel %vm2349_vm7, %v2796_v41, %v2795_v52  ;;  %v6097_v32 = vmul.f32 0.25, %v6051_v17  ;;  %v6100_v56 = vmul.f32 0.25, %v6053_v53 }
 0x436   :  { %7333 = vst [vmem:[#allocation176_spill] sm:$0xff] %v6078_v36  ;;  %7334 = vst [vmem:[#allocation177_spill] sm:$0xff] %v6081_v9  ;;  %v6103_v61 = vmul.f32 0.25, %v6055_v26  ;;  %v2799_v38 = vsel %vm2352_vm8, %v2798_v2, %v2797_v8  ;;  %v6107_v1 = vmul.f32 0.25, %v6060_v19  ;;  %v6110_v13 = vmul.f32 0.25, %v6063_v46 }
 0x437   :  { %7335 = vst [vmem:[#allocation178_spill] sm:$0xff] %v6087_v50  ;;  %7336 = vst [vmem:[#allocation179_spill] sm:$0xff] %v6090_v34  ;;  %v6113_v25 = vmul.f32 0.25, %v6072_v18  ;;  %v2801_v41 = vsel %vm2355_vm9, %v2800_v54, %v2799_v38  ;;  %v6117_v0 = vmul.f32 0.25, %v6084_v15  ;;  %v2196_v6 = vadd.f32 %v6093_v4, %v6058_v60 }
 0x438   :  { %7337 = vst [vmem:[#allocation180_spill] sm:$0xff] %v6093_v4  ;;  %7338 = vst [vmem:[#allocation181_spill] sm:$0xff] %v6097_v32  ;;  %v2197_v2 = vadd.f32 %v6097_v32, %v6066_v47  ;;  %v2803_v52 = vsel %vm2358_vm10, %v2802_v23, %v2801_v41  ;;  %v2198_v8 = vadd.f32 %v6100_v56, %v6069_v16  ;;  %v6137_v32 = vld [vmem:[#allocation3 + $0x46] sm:$0x1] }
 0x439   :  { %7339 = vst [vmem:[#allocation182_spill] sm:$0xff] %v6100_v56  ;;  %7340 = vst [vmem:[#allocation183_spill] sm:$0xff] %v6103_v61  ;;  %v2199_v33 = vadd.f32 %v6103_v61, %v6075_v3  ;;  %v2200_v54 = vadd.f32 %v6107_v1, %v6078_v36  ;;  %2806 = vrot.lane.b32.xlu1 %v2803_v52, %s4112_s16  ;;  %v2201_v38 = vadd.f32 %v6110_v13, %v6081_v9  ;;  %v6139_v56 = vld [vmem:[#allocation3 + $0x4e] sm:$0x1]  ;;  %v6143_v52 = vld [vmem:[#allocation3 + $0x5e] sm:$0x1] }
 0x43a   :  { %7341 = vst [vmem:[#allocation184_spill] sm:$0xff] %v6107_v1  ;;  %7342 = vst [vmem:[#allocation185_spill] sm:$0xff] %v6110_v13  ;;  %v2202_v4 = vadd.f32 %v6113_v25, %v6087_v50  ;;  %v2203_v23 = vadd.f32 %v6117_v0, %v6090_v34  ;;  %v2872_v41 = vrot.slane %v2197_v2, 7  ;;  %v2874_v61 = vrot.slane %v2198_v8, 6  ;;  %v6141_v1 = vld [vmem:[#allocation3 + $0x56] sm:$0x1] }
 0x43b   :  { %7343 = vst [vmem:[#allocation186_spill] sm:$0xff] %v6113_v25  ;;  %7344 = vst [vmem:[#allocation187_spill] sm:$0xff] %v6117_v0  ;;  %v2876_v3 = vrot.slane %v2199_v33, 5  ;;  %v2878_v16 = vrot.slane %v2200_v54, 4  ;;  %v6145_v36 = vld [vmem:[#allocation3 + $0x66] sm:$0x1] }
 0x43c   :  { %v6148_v13 = vmul.f32 0.75, %v5961_v39  ;;  %v2873_v25 = vsel %vm1229_vm3, %v2872_v41, %v2196_v6  ;;  %v2880_v0 = vrot.slane %v2201_v38, 3  ;;  %v2882_v2 = vrot.slane %v2202_v4, 2  ;;  %v6151_v50 = vld [vmem:[#allocation3 + $0x6e] sm:$0x1] }
 0x43d   :  { %v2884_v34 = vrot.slane %v2203_v23, 1  ;;  %v2875_v8 = vsel %vm2343_vm5, %v2874_v61, %v2873_v25  ;;  %v6154_v33 = vld [vmem:[#allocation3 + $0x76] sm:$0x1]  ;;  %v6157_v54 = vmul.f32 0.75, %v5963_v51  ;;  %v6160_v9 = vmul.f32 0.75, %v5965_v58 }
 0x43e   :  { %7345 = vst [vmem:[#allocation188_spill] sm:$0xff] %v6148_v13  ;;  %v6163_v39 = vmul.f32 0.75, %v5967_v5  ;;  %v2877_v6 = vsel %vm2346_vm6, %v2876_v3, %v2875_v8  ;;  %v6166_v38 = vld [vmem:[#allocation3 + $0x7e] sm:$0x1]  ;;  %v6169_v4 = vmul.f32 0.75, %v5969_v28  ;;  %v6172_v61 = vmul.f32 0.75, %v5975_v24 }
 0x43f   :  { %7346 = vst [vmem:[#allocation189_spill] sm:$0xff] %v6157_v54  ;;  %7347 = vst [vmem:[#allocation190_spill] sm:$0xff] %v6160_v9  ;;  %v6175_v25 = vmul.f32 0.75, %v5978_v62  ;;  %v2879_v51 = vsel %vm2349_vm7, %v2878_v16, %v2877_v6  ;;  %v6179_v58 = vmul.f32 0.75, %v5990_v11  ;;  %v6182_v5 = vmul.f32 0.25, %v6137_v32 }
 0x440   :  { %7348 = vst [vmem:[#allocation191_spill] sm:$0xff] %v6163_v39  ;;  %7349 = vst [vmem:[#allocation192_spill] sm:$0xff] %v6169_v4  ;;  %v6185_v3 = vmul.f32 0.25, %v6139_v56  ;;  %v2881_v28 = vsel %vm2352_vm8, %v2880_v0, %v2879_v51  ;;  %v6189_v23 = vmul.f32 0.25, %v6141_v1  ;;  %v6192_v24 = vmul.f32 0.25, %v6143_v52 }
 0x441   :  { %7350 = vst [vmem:[#allocation193_spill] sm:$0xff] %v6172_v61  ;;  %7351 = vst [vmem:[#allocation194_spill] sm:$0xff] %v6175_v25  ;;  %v6195_v62 = vmul.f32 0.25, %v6145_v36  ;;  %v2883_v11 = vsel %vm2355_vm9, %v2882_v2, %v2881_v28  ;;  %v6199_v16 = vmul.f32 0.25, %v6151_v50  ;;  %v6202_v41 = vmul.f32 0.25, %v6154_v33 }
 0x442   :  { %7352 = vst [vmem:[#allocation195_spill] sm:$0xff] %v6179_v58  ;;  %7353 = vst [vmem:[#allocation196_spill] sm:$0xff] %v6182_v5  ;;  %v6205_v8 = vmul.f32 0.25, %v6166_v38  ;;  %v2885_v0 = vsel %vm2358_vm10, %v2884_v34, %v2883_v11  ;;  %v2204_v6 = vadd.f32 %v6182_v5, %v6148_v13  ;;  %v2205_v51 = vadd.f32 %v6185_v3, %v6157_v54  ;;  %v6223_v5 = vld [vmem:[#allocation3 + $0x7] sm:$0x1] }
 0x443   :  { %7354 = vst [vmem:[#allocation197_spill] sm:$0xff] %v6185_v3  ;;  %7355 = vst [vmem:[#allocation198_spill] sm:$0xff] %v6189_v23  ;;  %v2206_v2 = vadd.f32 %v6189_v23, %v6160_v9  ;;  %2900 = vrot.lane.b32.xlu0 %v2885_v0, %s4112_s16  ;;  %v2207_v28 = vadd.f32 %v6192_v24, %v6163_v39  ;;  %v2208_v47 = vadd.f32 %v6195_v62, %v6169_v4  ;;  %v6227_v0 = vld [vmem:[#allocation3 + $0xf] sm:$0x1]  ;;  %v6229_v54 = vld [vmem:[#allocation3 + $0x17] sm:$0x1] }
 0x444   :  { %7356 = vst [vmem:[#allocation199_spill] sm:$0xff] %v6192_v24  ;;  %7357 = vst [vmem:[#allocation200_spill] sm:$0xff] %v6195_v62  ;;  %v2209_v34 = vadd.f32 %v6199_v16, %v6172_v61  ;;  %v2210_v11 = vadd.f32 %v6202_v41, %v6175_v25  ;;  %v2211_v3 = vadd.f32 %v6205_v8, %v6179_v58  ;;  %v2886_v23 = vrot.slane %v2205_v51, 7  ;;  %v6231_v24 = vld [vmem:[#allocation3 + $0x1f] sm:$0x1] }
 0x445   :  { %7358 = vst [vmem:[#allocation201_spill] sm:$0xff] %v6199_v16  ;;  %7359 = vst [vmem:[#allocation202_spill] sm:$0xff] %v6202_v41  ;;  %v2888_v9 = vrot.slane %v2206_v2, 6  ;;  %v6234_v62 = vmul.f32 0.75, %v6047_v48  ;;  %v2890_v16 = vrot.slane %v2207_v28, 5  ;;  %v2892_v61 = vrot.slane %v2208_v47, 4 }
 0x446   :  { %7360 = vst [vmem:[#allocation203_spill] sm:$0xff] %v6205_v8  ;;  %v2894_v4 = vrot.slane %v2209_v34, 3  ;;  %v2896_v41 = vrot.slane %v2210_v11, 2  ;;  %v6236_v25 = vld [vmem:[#allocation3 + $0x27] sm:$0x1]  ;;  %v2887_v39 = vsel %vm1229_vm3, %v2886_v23, %v2204_v6  ;;  %v2898_v8 = vrot.slane %v2211_v3, 1 }
 0x447   :  { %7361 = vst [vmem:[#allocation204_spill] sm:$0xff] %v6234_v62  ;;  %v6239_v51 = vld [vmem:[#allocation3 + $0x2f] sm:$0x1]  ;;  %v6242_v2 = vmul.f32 0.75, %v6051_v17  ;;  %v6245_v58 = vmul.f32 0.75, %v6053_v53  ;;  %v2889_v48 = vsel %vm2343_vm5, %v2888_v9, %v2887_v39  ;;  %v6251_v47 = vmul.f32 0.75, %v6055_v26 }
 0x448   :  { %v6248_v13 = vld [vmem:[#allocation3 + $0x37] sm:$0x1]  ;;  %v6254_v28 = vmul.f32 0.75, %v6060_v19  ;;  %v6257_v3 = vmul.f32 0.75, %v6063_v46  ;;  %v2891_v23 = vsel %vm2346_vm6, %v2890_v16, %v2889_v48  ;;  %v6260_v17 = vld [vmem:[#allocation3 + $0x3f] sm:$0x1] }
 0x449   :  { %7362 = vst [vmem:[#allocation205_spill] sm:$0xff] %v6242_v2  ;;  %7363 = vst [vmem:[#allocation206_spill] sm:$0xff] %v6245_v58  ;;  %v6263_v53 = vmul.f32 0.75, %v6072_v18  ;;  %v6266_v9 = vmul.f32 0.75, %v6084_v15  ;;  %v6269_v39 = vmul.f32 0.25, %v6223_v5  ;;  %v2893_v26 = vsel %vm2349_vm7, %v2892_v61, %v2891_v23 }
 0x44a   :  { %7364 = vst [vmem:[#allocation207_spill] sm:$0xff] %v6251_v47  ;;  %7365 = vst [vmem:[#allocation208_spill] sm:$0xff] %v6254_v28  ;;  %v6273_v19 = vmul.f32 0.25, %v6227_v0  ;;  %v6276_v46 = vmul.f32 0.25, %v6229_v54  ;;  %v6279_v16 = vmul.f32 0.25, %v6231_v24  ;;  %v2895_v18 = vsel %vm2352_vm8, %v2894_v4, %v2893_v26 }
 0x44b   :  { %7366 = vst [vmem:[#allocation209_spill] sm:$0xff] %v6257_v3  ;;  %7367 = vst [vmem:[#allocation210_spill] sm:$0xff] %v6263_v53  ;;  %v6283_v6 = vmul.f32 0.25, %v6236_v25  ;;  %v6286_v15 = vmul.f32 0.25, %v6239_v51  ;;  %v6289_v34 = vmul.f32 0.25, %v6248_v13  ;;  %v2897_v61 = vsel %vm2355_vm9, %v2896_v41, %v2895_v18 }
 0x44c   :  { %7368 = vst [vmem:[#allocation211_spill] sm:$0xff] %v6266_v9  ;;  %v6293_v11 = vmul.f32 0.25, %v6260_v17  ;;  %v2260_v48 = vadd.f32 %v6269_v39, %v6234_v62  ;;  %v2261_v4 = vadd.f32 %v6273_v19, %v6242_v2  ;;  %v2899_v23 = vsel %vm2358_vm10, %v2898_v8, %v2897_v61  ;;  %v6313_v2 = vld [vmem:[#allocation3 + $0x47] sm:$0x1] }
 0x44d   :  { %v2262_v26 = vadd.f32 %v6276_v46, %v6245_v58  ;;  %v2263_v60 = vadd.f32 %v6279_v16, %v6251_v47  ;;  %v2264_v41 = vadd.f32 %v6283_v6, %v6254_v28  ;;  %2902 = vrot.lane.b32.xlu1 %v2899_v23, %s4112_s16  ;;  %v2265_v18 = vadd.f32 %v6286_v15, %v6257_v3  ;;  %v6315_v58 = vld [vmem:[#allocation3 + $0x4f] sm:$0x1]  ;;  %v6317_v28 = vld [vmem:[#allocation3 + $0x57] sm:$0x1]  ;;  %v6319_v23 = vld [vmem:[#allocation3 + $0x5f] sm:$0x1] }
 0x44e   :  { %v2266_v62 = vadd.f32 %v6289_v34, %v6263_v53  ;;  %v2267_v8 = vadd.f32 %v6293_v11, %v6266_v9  ;;  %v2968_v61 = vrot.slane %v2261_v4, 7  ;;  %v6324_v3 = vmul.f32 0.75, %v6137_v32 }
 0x44f   :  { %v2970_v47 = vrot.slane %v2262_v26, 6  ;;  %v2972_v21 = vrot.slane %v2263_v60, 5  ;;  %v2974_v49 = vrot.slane %v2264_v41, 4  ;;  %v2976_v9 = vrot.slane %v2265_v18, 3  ;;  %v6330_v60 = vld [vmem:[#allocation3 + $0x77] sm:$0x1] }
 0x450   :  { %7369 = vst [vmem:[#allocation212_spill] sm:$0xff] %v6324_v3  ;;  %v2969_v53 = vsel %vm1229_vm3, %v2968_v61, %v2260_v48  ;;  %v2978_v4 = vrot.slane %v2266_v62, 2  ;;  %v2980_v40 = vrot.slane %v2267_v8, 1  ;;  %v6333_v41 = vmul.f32 0.75, %v6139_v56  ;;  %v6342_v18 = vld [vmem:[#allocation3 + $0x7f] sm:$0x1] }
 0x451   :  { %v2971_v26 = vsel %vm2343_vm5, %v2970_v47, %v2969_v53  ;;  %v6336_v35 = vmul.f32 0.75, %v6141_v1  ;;  %v6339_v32 = vmul.f32 0.75, %v6143_v52  ;;  %v6345_v62 = vmul.f32 0.75, %v6145_v36 }
 0x452   :  { %7370 = vst [vmem:[#allocation213_spill] sm:$0xff] %v6333_v41  ;;  %v2973_v48 = vsel %vm2346_vm6, %v2972_v21, %v2971_v26  ;;  %v6348_v47 = vmul.f32 0.75, %v6151_v50  ;;  %v6351_v53 = vmul.f32 0.75, %v6154_v33  ;;  %v6355_v1 = vmul.f32 0.75, %v6166_v38 }
 0x453   :  { %7371 = vst [vmem:[#allocation214_spill] sm:$0xff] %v6336_v35  ;;  %7372 = vst [vmem:[#allocation215_spill] sm:$0xff] %v6339_v32  ;;  %v2975_v56 = vsel %vm2349_vm7, %v2974_v49, %v2973_v48  ;;  %v6358_v52 = vmul.f32 0.25, %v6313_v2  ;;  %v6361_v21 = vmul.f32 0.25, %v6315_v58  ;;  %v6365_v8 = vmul.f32 0.25, %v6317_v28 }
 0x454   :  { %7373 = vst [vmem:[#allocation216_spill] sm:$0xff] %v6345_v62  ;;  %7374 = vst [vmem:[#allocation217_spill] sm:$0xff] %v6348_v47  ;;  %v2977_v36 = vsel %vm2352_vm8, %v2976_v9, %v2975_v56  ;;  %v6368_v50 = vmul.f32 0.25, %v6319_v23  ;;  %v6371_v33 = vmul.f32 0.25, %v6321_v31  ;;  %v6375_v38 = vmul.f32 0.25, %v6327_v10 }
 0x455   :  { %7375 = vst [vmem:[#allocation218_spill] sm:$0xff] %v6351_v53  ;;  %7376 = vst [vmem:[#allocation219_spill] sm:$0xff] %v6355_v1  ;;  %v2979_v49 = vsel %vm2355_vm9, %v2978_v4, %v2977_v36  ;;  %v6378_v61 = vmul.f32 0.25, %v6330_v60  ;;  %v6381_v26 = vmul.f32 0.25, %v6342_v18  ;;  %v2268_v48 = vadd.f32 %v6358_v52, %v6324_v3 }
 0x456   :  { %v2981_v9 = vsel %vm2358_vm10, %v2980_v40, %v2979_v49  ;;  %v2269_v56 = vadd.f32 %v6361_v21, %v6333_v41  ;;  %v2270_v4 = vadd.f32 %v6365_v8, %v6336_v35  ;;  %v2271_v36 = vadd.f32 %v6368_v50, %v6339_v32 }
 0x457   :  { %2996 = vrot.lane.b32.xlu0 %v2981_v9, %s4112_s16  ;;  %v2272_v14 = vadd.f32 %v6371_v33, %v6345_v62  ;;  %v2273_v40 = vadd.f32 %v6375_v38, %v6348_v47  ;;  %v2274_v49 = vadd.f32 %v6378_v61, %v6351_v53  ;;  %v2275_v3 = vadd.f32 %v6381_v26, %v6355_v1 }
 0x458   :  { %v2982_v41 = vrot.slane %v2269_v56, 7  ;;  %v2984_v29 = vrot.slane %v2270_v4, 6  ;;  %v6402_v35 = vmul.f32 0.75, %v6223_v5  ;;  %v2986_v9 = vrot.slane %v2271_v36, 5 }
 0x459   :  { %v2988_v59 = vrot.slane %v2272_v14, 4  ;;  %v2990_v32 = vrot.slane %v2273_v40, 3  ;;  %v2992_v45 = vrot.slane %v2274_v49, 2  ;;  %v2994_v22 = vrot.slane %v2275_v3, 1 }
 0x45a   :  { %v2983_v62 = vsel %vm1229_vm3, %v2982_v41, %v2268_v48  ;;  %v6406_v47 = vmul.f32 0.75, %v6227_v0  ;;  %v6409_v53 = vmul.f32 0.75, %v6229_v54  ;;  %v6413_v56 = vmul.f32 0.75, %v6231_v24 }
 0x45b   :  { %v2985_v1 = vsel %vm2343_vm5, %v2984_v29, %v2983_v62  ;;  %v6416_v5 = vmul.f32 0.75, %v6236_v25  ;;  %v6419_v14 = vmul.f32 0.75, %v6239_v51  ;;  %v6423_v3 = vmul.f32 0.75, %v6248_v13 }
 0x45c   :  { %v2987_v41 = vsel %vm2346_vm6, %v2986_v9, %v2985_v1  ;;  %v6426_v0 = vmul.f32 0.75, %v6260_v17  ;;  %v2308_v29 = vadd.f32 %v6402_v35, %v6269_v39  ;;  %v2309_v25 = vadd.f32 %v6406_v47, %v6273_v19 }
 0x45d   :  { %v2989_v54 = vsel %vm2349_vm7, %v2988_v59, %v2987_v41  ;;  %v2310_v24 = vadd.f32 %v6409_v53, %v6276_v46  ;;  %v2311_v51 = vadd.f32 %v6413_v56, %v6279_v16  ;;  %v2312_v17 = vadd.f32 %v6416_v5, %v6283_v6 }
 0x45e   :  { %v2991_v13 = vsel %vm2352_vm8, %v2990_v32, %v2989_v54  ;;  %v2313_v62 = vadd.f32 %v6419_v14, %v6286_v15  ;;  %v2314_v59 = vadd.f32 %v6423_v3, %v6289_v34  ;;  %v2315_v19 = vadd.f32 %v6426_v0, %v6293_v11 }
 0x45f   :  { %v2993_v39 = vsel %vm2355_vm9, %v2992_v45, %v2991_v13  ;;  %v3064_v46 = vrot.slane %v2309_v25, 7  ;;  %v3066_v1 = vrot.slane %v2310_v24, 6  ;;  %v3068_v48 = vrot.slane %v2311_v51, 5 }
 0x460   :  { %v2995_v16 = vsel %vm2358_vm10, %v2994_v22, %v2993_v39  ;;  %v3070_v32 = vrot.slane %v2312_v17, 4  ;;  %v3072_v4 = vrot.slane %v2313_v62, 3  ;;  %v3074_v15 = vrot.slane %v2314_v59, 2 }
 0x461   :  { %2998 = vrot.lane.b32.xlu1 %v2995_v16, %s4112_s16  ;;  %v3065_v6 = vsel %vm1229_vm3, %v3064_v46, %v2308_v29  ;;  %v3076_v36 = vrot.slane %v2315_v19, 1  ;;  %v6451_v34 = vmul.f32 0.75, %v6313_v2  ;;  %v6455_v11 = vmul.f32 0.75, %v6315_v58 }
 0x462   :  { %v3067_v45 = vsel %vm2343_vm5, %v3066_v1, %v3065_v6  ;;  %v6458_v40 = vmul.f32 0.75, %v6317_v28  ;;  %v6461_v22 = vmul.f32 0.75, %v6319_v23  ;;  %v6465_v9 = vmul.f32 0.75, %v6321_v31 }
 0x463   :  { %v3069_v49 = vsel %vm2346_vm6, %v3068_v48, %v3067_v45  ;;  %v6468_v41 = vmul.f32 0.75, %v6327_v10  ;;  %v6471_v2 = vmul.f32 0.75, %v6330_v60  ;;  %v6475_v29 = vmul.f32 0.75, %v6342_v18  ;;  %v7380_v48 = vld [vmem:[#allocation19_spill] sm:$0xff] }
 0x464   :  { %v3071_v58 = vsel %vm2349_vm7, %v3070_v32, %v3069_v49  ;;  %v2316_v28 = vadd.f32 %v6451_v34, %v6358_v52  ;;  %v2317_v23 = vadd.f32 %v6455_v11, %v6361_v21  ;;  %v2318_v10 = vadd.f32 %v6458_v40, %v6365_v8 }
 0x465   :  { %7377 = vst [vmem:[#allocation220_spill] sm:$0xff] %v6471_v2  ;;  %7378 = vst [vmem:[#allocation221_spill] sm:$0xff] %v6475_v29  ;;  %v3073_v31 = vsel %vm2352_vm8, %v3072_v4, %v3071_v58  ;;  %v2319_v60 = vadd.f32 %v6461_v22, %v6368_v50  ;;  %v2320_v54 = vadd.f32 %v6465_v9, %v6371_v33  ;;  %v7382_v58 = vld [vmem:[#allocation10_spill] sm:$0xff] }
 0x466   :  { %v3075_v18 = vsel %vm2355_vm9, %v3074_v15, %v3073_v31  ;;  %v2321_v25 = vadd.f32 %v6468_v41, %v6375_v38  ;;  %v2322_v52 = vadd.f32 %v6471_v2, %v6378_v61  ;;  %v2323_v21 = vadd.f32 %v6475_v29, %v6381_v26  ;;  %v7384_v31 = vld [vmem:[#allocation29_spill] sm:$0xff] }
 0x467   :  { %v3077_v24 = vsel %vm2358_vm10, %v3076_v36, %v3075_v18  ;;  %v3078_v8 = vrot.slane %v2317_v23, 7  ;;  %v3080_v51 = vrot.slane %v2318_v10, 6  ;;  %v3082_v13 = vrot.slane %v2319_v60, 5  ;;  %v7383_v23 = vld [vmem:[#allocation21_spill] sm:$0xff]  ;;  %v7385_v60 = vld [vmem:[#allocation22_spill] sm:$0xff] }
 0x468   :  { %3092 = vrot.lane.b32.xlu0 %v3077_v24, %s4112_s16  ;;  %v3084_v50 = vrot.slane %v2320_v54, 4  ;;  %v3086_v33 = vrot.slane %v2321_v25, 3  ;;  %v3088_v17 = vrot.slane %v2322_v52, 2  ;;  %v3090_v62 = vrot.slane %v2323_v21, 1  ;;  %v7386_v54 = vld [vmem:[#allocation30_spill] sm:$0xff]  ;;  %v7387_v25 = vld [vmem:[#allocation23_spill] sm:$0xff] }
 0x469   :  { %v3079_v59 = vsel %vm1229_vm3, %v3078_v8, %v2316_v28  ;;  %v1845_v38 = vadd.f32 %v5195_v63, %v5175_v43  ;;  %v1846_v61 = vadd.f32 %v5197_v37, %v5179_v12  ;;  %v1847_v26 = vadd.f32 %v5199_v44, %v5181_v20  ;;  %v7379_v43 = vld [vmem:[#allocation9_spill] sm:$0xff]  ;;  %v7388_v52 = vld [vmem:[#allocation31_spill] sm:$0xff] }
 0x46a   :  { %v3081_v39 = vsel %vm2343_vm5, %v3080_v51, %v3079_v59  ;;  %v1848_v19 = vadd.f32 %v5201_v27, %v5183_v7  ;;  %v1849_v46 = vadd.f32 %v5203_v42, %v5185_v30  ;;  %v1850_v1 = vadd.f32 %v5229_v57, %v5189_v55  ;;  %v7381_v30 = vld [vmem:[#allocation8_spill] sm:$0xff]  ;;  %v7392_v59 = vld [vmem:[#allocation33_spill] sm:$0xff] }
 0x46b   :  { %v3083_v16 = vsel %vm2346_vm6, %v3082_v13, %v3081_v39  ;;  %v1851_v32 = vadd.f32 %v7380_v48, %v7379_v43  ;;  %v2340_v12 = vrot.slane %v1845_v38, 7  ;;  %v2342_v4 = vrot.slane %v1846_v61, 6  ;;  %v7389_v51 = vld [vmem:[#allocation24_spill] sm:$0xff]  ;;  %v7393_v61 = vld [vmem:[#allocation26_spill] sm:$0xff] }
 0x46c   :  { %v3085_v20 = vsel %vm2349_vm7, %v3084_v50, %v3083_v16  ;;  %v2345_v6 = vrot.slane %v1847_v26, 5  ;;  %v2348_v15 = vrot.slane %v1848_v19, 4  ;;  %v2351_v36 = vrot.slane %v1849_v46, 3  ;;  %v7390_v13 = vld [vmem:[#allocation32_spill] sm:$0xff]  ;;  %v7394_v26 = vld [vmem:[#allocation34_spill] sm:$0xff]  ;;  %v7395_v19 = vld [vmem:[#allocation27_spill] sm:$0xff] }
 0x46d   :  { %v3087_v7 = vsel %vm2352_vm8, %v3086_v33, %v3085_v20  ;;  %v2354_v45 = vrot.slane %v1850_v1, 2  ;;  %v2357_v49 = vrot.slane %v1851_v32, 1  ;;  %v1844_v28 = vadd.f32 %v7382_v58, %v7381_v30  ;;  %v7391_v33 = vld [vmem:[#allocation25_spill] sm:$0xff]  ;;  %v7396_v46 = vld [vmem:[#allocation35_spill] sm:$0xff] }
 0x46e   :  { %v3089_v55 = vsel %vm2355_vm9, %v3088_v17, %v3087_v7  ;;  %v1853_v10 = vadd.f32 %v7384_v31, %v7383_v23  ;;  %v1854_v18 = vadd.f32 %v7386_v54, %v7385_v60  ;;  %v1855_v21 = vadd.f32 %v7388_v52, %v7387_v25  ;;  %v7397_v23 = vld [vmem:[#allocation20_spill] sm:$0xff] }
 0x46f   :  { %v3091_v24 = vsel %vm2358_vm10, %v3090_v62, %v3089_v55  ;;  %v2341_v8 = vsel %vm1229_vm3, %v2340_v12, %v1844_v28  ;;  %v1856_v50 = vadd.f32 %v7390_v13, %v7389_v51  ;;  %v1857_v38 = vadd.f32 %v7392_v59, %v7391_v33  ;;  %v2421_v55 = vpop.permute.xlu0 %2420  ;;  %v7398_v60 = vld [vmem:[#allocation28_spill] sm:$0xff]  ;;  %v7402_v51 = vld [vmem:[#allocation47_spill] sm:$0xff] }
 0x470   :  { %3094 = vrot.lane.b32.xlu1 %v3091_v24, %s4112_s16  ;;  %v2344_v17 = vsel %vm2343_vm5, %v2342_v4, %v2341_v8  ;;  %v1858_v39 = vadd.f32 %v7394_v26, %v7393_v61  ;;  %v1859_v1 = vadd.f32 %v7396_v46, %v7395_v19  ;;  %v2360_v16 = vrot.slane %v1853_v10, 7  ;;  %v7399_v24 = vld [vmem:[#allocation44_spill] sm:$0xff]  ;;  %v7400_v10 = vld [vmem:[#allocation45_spill] sm:$0xff]  ;;  %v7406_v19 = vld [vmem:[#allocation51_spill] sm:$0xff] }
 0x471   :  { %v2347_v62 = vsel %vm2346_vm6, %v2345_v6, %v2344_v17  ;;  %v2362_v43 = vrot.slane %v1854_v18, 6  ;;  %v2364_v32 = vrot.slane %v1855_v21, 5  ;;  %v2366_v12 = vrot.slane %v1856_v50, 4  ;;  %v7401_v21 = vld [vmem:[#allocation46_spill] sm:$0xff]  ;;  %v7403_v33 = vld [vmem:[#allocation48_spill] sm:$0xff] }
 0x472   :  { %v2350_v20 = vsel %vm2349_vm7, %v2348_v15, %v2347_v62  ;;  %v2368_v7 = vrot.slane %v1857_v38, 3  ;;  %v2370_v30 = vrot.slane %v1858_v39, 2  ;;  %v2372_v28 = vrot.slane %v1859_v1, 1 }
 0x473   :  { %v2353_v4 = vsel %vm2352_vm8, %v2351_v36, %v2350_v20  ;;  %v1852_v25 = vadd.f32 %v7398_v60, %v7397_v23  ;;  %v1908_v8 = vadd.f32 %v7399_v24, %v7382_v58  ;;  %v1909_v6 = vadd.f32 %v7400_v10, %v5195_v63  ;;  %v7404_v58 = vld [vmem:[#allocation49_spill] sm:$0xff]  ;;  %v7405_v63 = vld [vmem:[#allocation50_spill] sm:$0xff]  ;;  %v2423_v23 = vpop.permute.xlu1 %2422 }
 0x474   :  { %v2356_v18 = vsel %vm2355_vm9, %v2354_v45, %v2353_v4  ;;  %v1910_v15 = vadd.f32 %v7401_v21, %v5197_v37  ;;  %v1911_v50 = vadd.f32 %v7402_v51, %v5199_v44  ;;  %v1912_v36 = vadd.f32 %v7403_v33, %v5201_v27 }
 0x475   :  { %v2359_v38 = vsel %vm2358_vm10, %v2357_v49, %v2356_v18  ;;  %v2361_v17 = vsel %vm1229_vm3, %v2360_v16, %v1852_v25  ;;  %v1913_v61 = vadd.f32 %v7404_v58, %v5203_v42  ;;  %v1914_v39 = vadd.f32 %v7405_v63, %v5229_v57  ;;  %v7414_v58 = vld [vmem:[#allocation67_spill] sm:$0xff] }
 0x476   :  { %v3098_v45 = vsel %vm24_vm0, %v2359_v38, %v2421_v55  ;;  %v2363_v37 = vsel %vm2343_vm5, %v2362_v43, %v2361_v17  ;;  %v1915_v44 = vadd.f32 %v7406_v19, %v7380_v48  ;;  %v2442_v1 = vrot.slane %v1909_v6, 7  ;;  %v7407_v48 = vld [vmem:[#allocation60_spill] sm:$0xff]  ;;  %v7408_v6 = vld [vmem:[#allocation61_spill] sm:$0xff] }
 0x477   :  { %3114 = vst [vmem:[#allocation4] sm:$0xff] %v3098_v45  ;;  %v2365_v27 = vsel %vm2346_vm6, %v2364_v32, %v2363_v37  ;;  %v2444_v49 = vrot.slane %v1910_v15, 6  ;;  %v2446_v62 = vrot.slane %v1911_v50, 5  ;;  %v2448_v16 = vrot.slane %v1912_v36, 4  ;;  %v7410_v15 = vld [vmem:[#allocation63_spill] sm:$0xff]  ;;  %v7411_v50 = vld [vmem:[#allocation64_spill] sm:$0xff]  ;;  %v2517_v36 = vpop.permute.xlu0 %2516 }
 0x478   :  { %v2367_v20 = vsel %vm2349_vm7, %v2366_v12, %v2365_v27  ;;  %v2443_v42 = vsel %vm1229_vm3, %v2442_v1, %v1908_v8  ;;  %v2450_v4 = vrot.slane %v1913_v61, 3  ;;  %v2452_v57 = vrot.slane %v1914_v39, 2  ;;  %v7409_v8 = vld [vmem:[#allocation62_spill] sm:$0xff]  ;;  %v7415_v27 = vld [vmem:[#allocation11_spill] sm:$0xff] }
 0x479   :  { %v2369_v55 = vsel %vm2352_vm8, %v2368_v7, %v2367_v20  ;;  %v2445_v43 = vsel %vm2343_vm5, %v2444_v49, %v2443_v42  ;;  %v2454_v25 = vrot.slane %v1915_v44, 1  ;;  %v1916_v24 = vadd.f32 %v7407_v48, %v7398_v60  ;;  %v7416_v49 = vld [vmem:[#allocation76_spill] sm:$0xff]  ;;  %v7419_v42 = vld [vmem:[#allocation13_spill] sm:$0xff]  ;;  %v7423_v48 = vld [vmem:[#allocation15_spill] sm:$0xff] }
 0x47a   :  { %v2371_v32 = vsel %vm2355_vm9, %v2370_v30, %v2369_v55  ;;  %v2447_v10 = vsel %vm2346_vm6, %v2446_v62, %v2445_v43  ;;  %v1917_v12 = vadd.f32 %v7408_v6, %v7384_v31  ;;  %v1918_v18 = vadd.f32 %v7409_v8, %v7386_v54  ;;  %v7412_v31 = vld [vmem:[#allocation65_spill] sm:$0xff]  ;;  %v7413_v54 = vld [vmem:[#allocation66_spill] sm:$0xff]  ;;  %v7422_v43 = vld [vmem:[#allocation79_spill] sm:$0xff] }
 0x47b   :  { %v2373_v21 = vsel %vm2358_vm10, %v2372_v28, %v2371_v32  ;;  %v2449_v7 = vsel %vm2349_vm7, %v2448_v16, %v2447_v10  ;;  %v1919_v51 = vadd.f32 %v7410_v15, %v7388_v52  ;;  %v1920_v60 = vadd.f32 %v7411_v50, %v7390_v13  ;;  %v7418_v16 = vld [vmem:[#allocation77_spill] sm:$0xff]  ;;  %v7421_v55 = vld [vmem:[#allocation14_spill] sm:$0xff]  ;;  %v7425_v10 = vld [vmem:[#allocation16_spill] sm:$0xff] }
 0x47c   :  { %v3099_v30 = vsel %vm24_vm0, %v2373_v21, %v2423_v23  ;;  %v2451_v33 = vsel %vm2352_vm8, %v2450_v4, %v2449_v7  ;;  %v1921_v38 = vadd.f32 %v7412_v31, %v7392_v59  ;;  %v1922_v17 = vadd.f32 %v7413_v54, %v7394_v26  ;;  %v7420_v4 = vld [vmem:[#allocation78_spill] sm:$0xff]  ;;  %v7426_v6 = vld [vmem:[#allocation81_spill] sm:$0xff] }
 0x47d   :  { %3122 = vst [vmem:[#allocation4 + $0x40] sm:$0xff] %v3099_v30  ;;  %v2453_v28 = vsel %vm2355_vm9, %v2452_v57, %v2451_v33  ;;  %v1923_v52 = vadd.f32 %v7414_v58, %v7396_v46  ;;  %v2456_v61 = vrot.slane %v1917_v12, 7  ;;  %v2458_v63 = vrot.slane %v1918_v18, 6  ;;  %v7417_v46 = vld [vmem:[#allocation12_spill] sm:$0xff]  ;;  %v7427_v18 = vld [vmem:[#allocation17_spill] sm:$0xff]  ;;  %v7428_v21 = vld [vmem:[#allocation82_spill] sm:$0xff]  ;;  %v2519_v33 = vpop.permute.xlu1 %2518 }
 0x47e   :  { %v2455_v13 = vsel %vm2358_vm10, %v2454_v25, %v2453_v28  ;;  %v2460_v39 = vrot.slane %v1919_v51, 5  ;;  %v2462_v45 = vrot.slane %v1920_v60, 4  ;;  %v2464_v37 = vrot.slane %v1921_v38, 3  ;;  %v7429_v15 = vld [vmem:[#allocation18_spill] sm:$0xff]  ;;  %v7430_v51 = vld [vmem:[#allocation83_spill] sm:$0xff] }
 0x47f   :  { %v3100_v19 = vsel %vm24_vm0, %v2455_v13, %v2517_v36  ;;  %v2457_v59 = vsel %vm1229_vm3, %v2456_v61, %v1916_v24  ;;  %v2466_v44 = vrot.slane %v1922_v17, 2  ;;  %v2468_v1 = vrot.slane %v1923_v52, 1  ;;  %v7424_v24 = vld [vmem:[#allocation80_spill] sm:$0xff] }
 0x480   :  { %3115 = vst [vmem:[#allocation4 + $0x8] sm:$0xff] %v3100_v19  ;;  %v2459_v26 = vsel %vm2343_vm5, %v2458_v63, %v2457_v59  ;;  %v1972_v62 = vadd.f32 %v7416_v49, %v7415_v27  ;;  %v1973_v20 = vadd.f32 %v7418_v16, %v7417_v46  ;;  %v1974_v57 = vadd.f32 %v7420_v4, %v7419_v42  ;;  %v7431_v13 = vld [vmem:[#allocation36_spill] sm:$0xff]  ;;  %v7433_v59 = vld [vmem:[#allocation37_spill] sm:$0xff]  ;;  %v7436_v49 = vld [vmem:[#allocation94_spill] sm:$0xff] }
 0x481   :  { %v2461_v23 = vsel %vm2346_vm6, %v2460_v39, %v2459_v26  ;;  %v1975_v25 = vadd.f32 %v7422_v43, %v7421_v55  ;;  %v1976_v32 = vadd.f32 %v7424_v24, %v7423_v48  ;;  %v1977_v12 = vadd.f32 %v7426_v6, %v7425_v10  ;;  %v7432_v39 = vld [vmem:[#allocation92_spill] sm:$0xff]  ;;  %v7434_v26 = vld [vmem:[#allocation93_spill] sm:$0xff]  ;;  %v7438_v16 = vld [vmem:[#allocation95_spill] sm:$0xff]  ;;  %v2613_v48 = vpop.permute.xlu0 %2612 }
 0x482   :  { %v2463_v8 = vsel %vm2349_vm7, %v2462_v45, %v2461_v23  ;;  %v1978_v7 = vadd.f32 %v7428_v21, %v7427_v18  ;;  %v1979_v50 = vadd.f32 %v7430_v51, %v7429_v15  ;;  %v2538_v60 = vrot.slane %v1973_v20, 7  ;;  %v7439_v42 = vld [vmem:[#allocation40_spill] sm:$0xff]  ;;  %v7441_v23 = vld [vmem:[#allocation41_spill] sm:$0xff]  ;;  %v7443_v24 = vld [vmem:[#allocation42_spill] sm:$0xff] }
 0x483   :  { %v2465_v30 = vsel %vm2352_vm8, %v2464_v37, %v2463_v8  ;;  %v2540_v36 = vrot.slane %v1974_v57, 6  ;;  %v2542_v31 = vrot.slane %v1975_v25, 5  ;;  %v2544_v38 = vrot.slane %v1976_v32, 4  ;;  %v7440_v4 = vld [vmem:[#allocation96_spill] sm:$0xff]  ;;  %v7442_v55 = vld [vmem:[#allocation97_spill] sm:$0xff]  ;;  %v7444_v32 = vld [vmem:[#allocation98_spill] sm:$0xff] }
 0x484   :  { %v2467_v54 = vsel %vm2355_vm9, %v2466_v44, %v2465_v30  ;;  %v2539_v17 = vsel %vm1229_vm3, %v2538_v60, %v1972_v62  ;;  %v2546_v28 = vrot.slane %v1977_v12, 3  ;;  %v2548_v58 = vrot.slane %v1978_v7, 2  ;;  %v7435_v44 = vld [vmem:[#allocation38_spill] sm:$0xff]  ;;  %v7445_v6 = vld [vmem:[#allocation43_spill] sm:$0xff] }
 0x485   :  { %v2469_v52 = vsel %vm2358_vm10, %v2468_v1, %v2467_v54  ;;  %v2541_v61 = vsel %vm2343_vm5, %v2540_v36, %v2539_v17  ;;  %v2550_v63 = vrot.slane %v1979_v50, 1  ;;  %v1980_v45 = vadd.f32 %v7432_v39, %v7431_v13  ;;  %v7437_v1 = vld [vmem:[#allocation39_spill] sm:$0xff]  ;;  %v7447_v17 = vld [vmem:[#allocation53_spill] sm:$0xff] }
 0x486   :  { %v3101_v37 = vsel %vm24_vm0, %v2469_v52, %v2519_v33  ;;  %v2543_v19 = vsel %vm2346_vm6, %v2542_v31, %v2541_v61  ;;  %v1981_v27 = vadd.f32 %v7434_v26, %v7433_v59  ;;  %v1982_v62 = vadd.f32 %v7436_v49, %v7435_v44  ;;  %v7446_v12 = vld [vmem:[#allocation99_spill] sm:$0xff]  ;;  %v7449_v52 = vld [vmem:[#allocation54_spill] sm:$0xff]  ;;  %v7454_v59 = vld [vmem:[#allocation112_spill] sm:$0xff] }
 0x487   :  { %3123 = vst [vmem:[#allocation4 + $0x48] sm:$0xff] %v3101_v37  ;;  %v2545_v46 = vsel %vm2349_vm7, %v2544_v38, %v2543_v19  ;;  %v1983_v20 = vadd.f32 %v7438_v16, %v7437_v1  ;;  %v1984_v57 = vadd.f32 %v7440_v4, %v7439_v42  ;;  %v1985_v43 = vadd.f32 %v7442_v55, %v7441_v23  ;;  %v7450_v61 = vld [vmem:[#allocation110_spill] sm:$0xff]  ;;  %v7452_v39 = vld [vmem:[#allocation111_spill] sm:$0xff]  ;;  %v7453_v19 = vld [vmem:[#allocation56_spill] sm:$0xff] }
 0x488   :  { %v2547_v25 = vsel %vm2352_vm8, %v2546_v28, %v2545_v46  ;;  %v1986_v10 = vadd.f32 %v7444_v32, %v7443_v24  ;;  %v1987_v8 = vadd.f32 %v7446_v12, %v7445_v6  ;;  %v2552_v18 = vrot.slane %v1981_v27, 7  ;;  %v7448_v28 = vld [vmem:[#allocation109_spill] sm:$0xff]  ;;  %v7458_v46 = vld [vmem:[#allocation114_spill] sm:$0xff]  ;;  %v7459_v42 = vld [vmem:[#allocation52_spill] sm:$0xff] }
 0x489   :  { %v2549_v21 = vsel %vm2355_vm9, %v2548_v58, %v2547_v25  ;;  %v2554_v7 = vrot.slane %v1982_v62, 6  ;;  %v2556_v15 = vrot.slane %v1983_v20, 5  ;;  %v2558_v60 = vrot.slane %v1984_v57, 4  ;;  %v7455_v27 = vld [vmem:[#allocation57_spill] sm:$0xff]  ;;  %v7457_v62 = vld [vmem:[#allocation58_spill] sm:$0xff]  ;;  %v2615_v20 = vpop.permute.xlu1 %2614  ;;  %v7460_v4 = vld [vmem:[#allocation108_spill] sm:$0xff] }
 0x48a   :  { %v2551_v51 = vsel %vm2358_vm10, %v2550_v63, %v2549_v21  ;;  %v2553_v50 = vsel %vm1229_vm3, %v2552_v18, %v1980_v45  ;;  %v2560_v30 = vrot.slane %v1985_v43, 3  ;;  %v2562_v31 = vrot.slane %v1986_v10, 2  ;;  %v7451_v63 = vld [vmem:[#allocation55_spill] sm:$0xff]  ;;  %v7456_v44 = vld [vmem:[#allocation113_spill] sm:$0xff] }
 0x48b   :  { %v3102_v33 = vsel %vm24_vm0, %v2551_v51, %v2613_v48  ;;  %v2555_v36 = vsel %vm2343_vm5, %v2554_v7, %v2553_v50  ;;  %v2564_v38 = vrot.slane %v1987_v8, 1  ;;  %v2037_v58 = vadd.f32 %v7448_v28, %v7447_v17  ;;  %v7461_v25 = vld [vmem:[#allocation59_spill] sm:$0xff]  ;;  %v7464_v51 = vld [vmem:[#allocation125_spill] sm:$0xff]  ;;  %v7469_v17 = vld [vmem:[#allocation72_spill] sm:$0xff] }
 0x48c   :  { %3116 = vst [vmem:[#allocation4 + $0x10] sm:$0xff] %v3102_v33  ;;  %v2557_v54 = vsel %vm2346_vm6, %v2556_v15, %v2555_v36  ;;  %v2038_v13 = vadd.f32 %v7450_v61, %v7449_v52  ;;  %v2039_v45 = vadd.f32 %v7452_v39, %v7451_v63  ;;  %v2040_v26 = vadd.f32 %v7454_v59, %v7453_v19  ;;  %v7462_v48 = vld [vmem:[#allocation115_spill] sm:$0xff]  ;;  %v7463_v15 = vld [vmem:[#allocation69_spill] sm:$0xff]  ;;  %v7466_v33 = vld [vmem:[#allocation126_spill] sm:$0xff] }
 0x48d   :  { %v2559_v37 = vsel %vm2349_vm7, %v2558_v60, %v2557_v54  ;;  %v2041_v49 = vadd.f32 %v7456_v44, %v7455_v27  ;;  %v2042_v1 = vadd.f32 %v7458_v46, %v7457_v62  ;;  %v2036_v57 = vadd.f32 %v7460_v4, %v7459_v42  ;;  %v7470_v28 = vld [vmem:[#allocation128_spill] sm:$0xff]  ;;  %v7475_v27 = vld [vmem:[#allocation74_spill] sm:$0xff] }
 0x48e   :  { %v2561_v16 = vsel %vm2352_vm8, %v2560_v30, %v2559_v37  ;;  %v2634_v23 = vrot.slane %v2037_v58, 7  ;;  %v2636_v55 = vrot.slane %v2038_v13, 6  ;;  %v2043_v24 = vadd.f32 %v7462_v48, %v7461_v25  ;;  %v7465_v30 = vld [vmem:[#allocation70_spill] sm:$0xff]  ;;  %v7471_v13 = vld [vmem:[#allocation68_spill] sm:$0xff]  ;;  %v7474_v37 = vld [vmem:[#allocation129_spill] sm:$0xff] }
 0x48f   :  { %v2563_v43 = vsel %vm2355_vm9, %v2562_v31, %v2561_v16  ;;  %v2638_v32 = vrot.slane %v2039_v45, 5  ;;  %v2640_v12 = vrot.slane %v2040_v26, 4  ;;  %v2642_v8 = vrot.slane %v2041_v49, 3  ;;  %v7467_v31 = vld [vmem:[#allocation71_spill] sm:$0xff]  ;;  %v7472_v63 = vld [vmem:[#allocation124_spill] sm:$0xff]  ;;  %v7473_v45 = vld [vmem:[#allocation73_spill] sm:$0xff]  ;;  %v2709_v26 = vpop.permute.xlu0 %2708 }
 0x490   :  { %v2565_v10 = vsel %vm2358_vm10, %v2564_v38, %v2563_v43  ;;  %v2635_v6 = vsel %vm1229_vm3, %v2634_v23, %v2036_v57  ;;  %v2644_v7 = vrot.slane %v2042_v1, 2  ;;  %v2045_v50 = vadd.f32 %v7464_v51, %v7463_v15  ;;  %v7468_v38 = vld [vmem:[#allocation127_spill] sm:$0xff]  ;;  %v7476_v44 = vld [vmem:[#allocation130_spill] sm:$0xff] }
 0x491   :  { %v3103_v18 = vsel %vm24_vm0, %v2565_v10, %v2615_v20  ;;  %v2637_v21 = vsel %vm2343_vm5, %v2636_v55, %v2635_v6  ;;  %v2046_v36 = vadd.f32 %v7466_v33, %v7465_v30  ;;  %v2047_v54 = vadd.f32 %v7468_v38, %v7467_v31  ;;  %v7477_v16 = vld [vmem:[#allocation75_spill] sm:$0xff]  ;;  %v7481_v6 = vld [vmem:[#allocation86_spill] sm:$0xff]  ;;  %v7488_v31 = vld [vmem:[#allocation140_spill] sm:$0xff] }
 0x492   :  { %3124 = vst [vmem:[#allocation4 + $0x50] sm:$0xff] %v3103_v18  ;;  %v2639_v60 = vsel %vm2346_vm6, %v2638_v32, %v2637_v21  ;;  %v2048_v58 = vadd.f32 %v7470_v28, %v7469_v17  ;;  %v2646_v61 = vrot.slane %v2043_v24, 1  ;;  %v2044_v39 = vadd.f32 %v7472_v63, %v7471_v13  ;;  %v7478_v20 = vld [vmem:[#allocation131_spill] sm:$0xff]  ;;  %v7479_v24 = vld [vmem:[#allocation85_spill] sm:$0xff]  ;;  %v7491_v63 = vld [vmem:[#allocation90_spill] sm:$0xff] }
 0x493   :  { %v2641_v52 = vsel %vm2349_vm7, %v2640_v12, %v2639_v60  ;;  %v2049_v19 = vadd.f32 %v7474_v37, %v7473_v45  ;;  %v2050_v49 = vadd.f32 %v7476_v44, %v7475_v27  ;;  %v2648_v62 = vrot.slane %v2045_v50, 7  ;;  %v7480_v32 = vld [vmem:[#allocation141_spill] sm:$0xff]  ;;  %v7482_v12 = vld [vmem:[#allocation142_spill] sm:$0xff]  ;;  %v7484_v15 = vld [vmem:[#allocation143_spill] sm:$0xff] }
 0x494   :  { %v2643_v59 = vsel %vm2352_vm8, %v2642_v8, %v2641_v52  ;;  %v2650_v46 = vrot.slane %v2046_v36, 6  ;;  %v2051_v42 = vadd.f32 %v7478_v20, %v7477_v16  ;;  %v2652_v4 = vrot.slane %v2047_v54, 5  ;;  %v7485_v50 = vld [vmem:[#allocation88_spill] sm:$0xff]  ;;  %v7489_v54 = vld [vmem:[#allocation89_spill] sm:$0xff] }
 0x495   :  { %v2645_v1 = vsel %vm2355_vm9, %v2644_v7, %v2643_v59  ;;  %v2649_v23 = vsel %vm1229_vm3, %v2648_v62, %v2044_v39  ;;  %v2654_v55 = vrot.slane %v2048_v58, 4  ;;  %v2656_v43 = vrot.slane %v2049_v19, 3  ;;  %v7483_v7 = vld [vmem:[#allocation87_spill] sm:$0xff]  ;;  %v7486_v60 = vld [vmem:[#allocation144_spill] sm:$0xff]  ;;  %v7490_v17 = vld [vmem:[#allocation145_spill] sm:$0xff] }
 0x496   :  { %v2647_v57 = vsel %vm2358_vm10, %v2646_v61, %v2645_v1  ;;  %v2651_v48 = vsel %vm2343_vm5, %v2650_v46, %v2649_v23  ;;  %v2101_v10 = vadd.f32 %v7480_v32, %v7479_v24  ;;  %v2102_v8 = vadd.f32 %v7482_v12, %v7481_v6  ;;  %v7487_v36 = vld [vmem:[#allocation84_spill] sm:$0xff]  ;;  %v2711_v13 = vpop.permute.xlu1 %2710  ;;  %v7492_v39 = vld [vmem:[#allocation146_spill] sm:$0xff]  ;;  %v7493_v46 = vld [vmem:[#allocation91_spill] sm:$0xff] }
 0x497   :  { %v3104_v25 = vsel %vm24_vm0, %v2647_v57, %v2709_v26  ;;  %v2653_v18 = vsel %vm2346_vm6, %v2652_v4, %v2651_v48  ;;  %v2658_v21 = vrot.slane %v2050_v49, 2  ;;  %v2103_v51 = vadd.f32 %v7484_v15, %v7483_v7  ;;  %v7494_v1 = vld [vmem:[#allocation147_spill] sm:$0xff]  ;;  %v7495_v32 = vld [vmem:[#allocation100_spill] sm:$0xff]  ;;  %v7497_v12 = vld [vmem:[#allocation101_spill] sm:$0xff] }
 0x498   :  { %3117 = vst [vmem:[#allocation4 + $0x18] sm:$0xff] %v3104_v25  ;;  %v2104_v30 = vadd.f32 %v7486_v60, %v7485_v50  ;;  %v2655_v33 = vsel %vm2349_vm7, %v2654_v55, %v2653_v18  ;;  %v2100_v38 = vadd.f32 %v7488_v31, %v7487_v36  ;;  %v2105_v28 = vadd.f32 %v7490_v17, %v7489_v54  ;;  %v7500_v7 = vld [vmem:[#allocation158_spill] sm:$0xff]  ;;  %v7502_v50 = vld [vmem:[#allocation159_spill] sm:$0xff]  ;;  %v7505_v31 = vld [vmem:[#allocation105_spill] sm:$0xff] }
 0x499   :  { %v2730_v58 = vrot.slane %v2101_v10, 7  ;;  %v2657_v52 = vsel %vm2352_vm8, %v2656_v43, %v2655_v33  ;;  %v2660_v61 = vrot.slane %v2051_v42, 1  ;;  %v2106_v45 = vadd.f32 %v7492_v39, %v7491_v63  ;;  %v7496_v10 = vld [vmem:[#allocation156_spill] sm:$0xff]  ;;  %v7507_v17 = vld [vmem:[#allocation106_spill] sm:$0xff] }
 0x49a   :  { %v2732_v37 = vrot.slane %v2102_v8, 6  ;;  %v2659_v19 = vsel %vm2355_vm9, %v2658_v21, %v2657_v52  ;;  %v2734_v26 = vrot.slane %v2103_v51, 5  ;;  %v2736_v49 = vrot.slane %v2104_v30, 4  ;;  %v7498_v8 = vld [vmem:[#allocation157_spill] sm:$0xff]  ;;  %v7499_v21 = vld [vmem:[#allocation102_spill] sm:$0xff]  ;;  %v7501_v51 = vld [vmem:[#allocation103_spill] sm:$0xff] }
 0x49b   :  { %v2731_v59 = vsel %vm1229_vm3, %v2730_v58, %v2100_v38  ;;  %v2661_v27 = vsel %vm2358_vm10, %v2660_v61, %v2659_v19  ;;  %v2107_v16 = vadd.f32 %v7494_v1, %v7493_v46  ;;  %v2738_v42 = vrot.slane %v2105_v28, 3  ;;  %v7503_v30 = vld [vmem:[#allocation104_spill] sm:$0xff]  ;;  %v7506_v38 = vld [vmem:[#allocation161_spill] sm:$0xff]  ;;  %v7508_v28 = vld [vmem:[#allocation162_spill] sm:$0xff] }
 0x49c   :  { %v2733_v44 = vsel %vm2343_vm5, %v2732_v37, %v2731_v59  ;;  %v3105_v62 = vsel %vm24_vm0, %v2661_v27, %v2711_v13  ;;  %v2740_v57 = vrot.slane %v2106_v45, 2  ;;  %v2108_v6 = vadd.f32 %v7496_v10, %v7495_v32  ;;  %v7504_v33 = vld [vmem:[#allocation160_spill] sm:$0xff]  ;;  %v7509_v52 = vld [vmem:[#allocation107_spill] sm:$0xff]  ;;  %v7513_v37 = vld [vmem:[#allocation117_spill] sm:$0xff] }
 0x49d   :  { %v2735_v20 = vsel %vm2346_vm6, %v2734_v26, %v2733_v44  ;;  %3125 = vst [vmem:[#allocation4 + $0x58] sm:$0xff] %v3105_v62  ;;  %v2742_v43 = vrot.slane %v2107_v16, 1  ;;  %v2109_v18 = vadd.f32 %v7498_v8, %v7497_v12  ;;  %v2110_v15 = vadd.f32 %v7500_v7, %v7499_v21  ;;  %v7510_v61 = vld [vmem:[#allocation163_spill] sm:$0xff]  ;;  %v7511_v63 = vld [vmem:[#allocation116_spill] sm:$0xff]  ;;  %v7514_v19 = vld [vmem:[#allocation173_spill] sm:$0xff] }
 0x49e   :  { %v2737_v4 = vsel %vm2349_vm7, %v2736_v49, %v2735_v20  ;;  %v2111_v60 = vadd.f32 %v7502_v50, %v7501_v51  ;;  %v2112_v36 = vadd.f32 %v7504_v33, %v7503_v30  ;;  %v2113_v54 = vadd.f32 %v7506_v38, %v7505_v31  ;;  %v7512_v39 = vld [vmem:[#allocation172_spill] sm:$0xff]  ;;  %v7515_v26 = vld [vmem:[#allocation118_spill] sm:$0xff]  ;;  %v7517_v49 = vld [vmem:[#allocation119_spill] sm:$0xff] }
 0x49f   :  { %v2739_v23 = vsel %vm2352_vm8, %v2738_v42, %v2737_v4  ;;  %v2114_v58 = vadd.f32 %v7508_v28, %v7507_v17  ;;  %v2115_v13 = vadd.f32 %v7510_v61, %v7509_v52  ;;  %v2164_v45 = vadd.f32 %v7512_v39, %v7511_v63  ;;  %v7516_v27 = vld [vmem:[#allocation174_spill] sm:$0xff]  ;;  %v7518_v62 = vld [vmem:[#allocation175_spill] sm:$0xff]  ;;  %v7519_v1 = vld [vmem:[#allocation120_spill] sm:$0xff] }
 0x4a0   :  { %v2741_v55 = vsel %vm2355_vm9, %v2740_v57, %v2739_v23  ;;  %v2805_v48 = vpop.permute.xlu0 %2804  ;;  %v2165_v59 = vadd.f32 %v7514_v19, %v7513_v37  ;;  %v2166_v44 = vadd.f32 %v7516_v27, %v7515_v26  ;;  %v2167_v46 = vadd.f32 %v7518_v62, %v7517_v49  ;;  %v7520_v16 = vld [vmem:[#allocation176_spill] sm:$0xff]  ;;  %v7521_v42 = vld [vmem:[#allocation121_spill] sm:$0xff]  ;;  %v7523_v23 = vld [vmem:[#allocation122_spill] sm:$0xff] }
 0x4a1   :  { %v2743_v25 = vsel %vm2358_vm10, %v2742_v43, %v2741_v55  ;;  %v2168_v20 = vadd.f32 %v7520_v16, %v7519_v1  ;;  %v7522_v4 = vld [vmem:[#allocation177_spill] sm:$0xff]  ;;  %v7524_v55 = vld [vmem:[#allocation178_spill] sm:$0xff]  ;;  %v7527_v32 = vld [vmem:[#allocation132_spill] sm:$0xff] }
 0x4a2   :  { %v3106_v24 = vsel %vm24_vm0, %v2743_v25, %v2805_v48  ;;  %v2169_v57 = vadd.f32 %v7522_v4, %v7521_v42  ;;  %v2170_v43 = vadd.f32 %v7524_v55, %v7523_v23  ;;  %v7525_v25 = vld [vmem:[#allocation123_spill] sm:$0xff]  ;;  %v7528_v10 = vld [vmem:[#allocation188_spill] sm:$0xff]  ;;  %v7529_v8 = vld [vmem:[#allocation133_spill] sm:$0xff] }
 0x4a3   :  { %3118 = vst [vmem:[#allocation4 + $0x20] sm:$0xff] %v3106_v24  ;;  %v7526_v48 = vld [vmem:[#allocation179_spill] sm:$0xff]  ;;  %v2172_v12 = vadd.f32 %v7528_v10, %v7527_v32  ;;  %v7530_v21 = vld [vmem:[#allocation189_spill] sm:$0xff]  ;;  %v7531_v51 = vld [vmem:[#allocation134_spill] sm:$0xff]  ;;  %v2832_v29 = vrot.slane %v2168_v20, 4 }
 0x4a4   :  { %v2171_v24 = vadd.f32 %v7526_v48, %v7525_v25  ;;  %v2173_v7 = vadd.f32 %v7530_v21, %v7529_v8  ;;  %v7532_v50 = vld [vmem:[#allocation190_spill] sm:$0xff]  ;;  %v7533_v33 = vld [vmem:[#allocation135_spill] sm:$0xff]  ;;  %v7535_v17 = vld [vmem:[#allocation136_spill] sm:$0xff]  ;;  %v2834_v2 = vrot.slane %v2169_v57, 3 }
 0x4a5   :  { %v2174_v30 = vadd.f32 %v7532_v50, %v7531_v51  ;;  %v7534_v31 = vld [vmem:[#allocation191_spill] sm:$0xff]  ;;  %v7536_v28 = vld [vmem:[#allocation192_spill] sm:$0xff]  ;;  %v7537_v61 = vld [vmem:[#allocation137_spill] sm:$0xff] }
 0x4a6   :  { %v2175_v38 = vadd.f32 %v7534_v31, %v7533_v33  ;;  %v2176_v52 = vadd.f32 %v7536_v28, %v7535_v17  ;;  %v7538_v63 = vld [vmem:[#allocation193_spill] sm:$0xff]  ;;  %v7539_v37 = vld [vmem:[#allocation138_spill] sm:$0xff]  ;;  %v7541_v27 = vld [vmem:[#allocation139_spill] sm:$0xff] }
 0x4a7   :  { %v2177_v39 = vadd.f32 %v7538_v63, %v7537_v61  ;;  %v7540_v19 = vld [vmem:[#allocation194_spill] sm:$0xff]  ;;  %v7542_v49 = vld [vmem:[#allocation195_spill] sm:$0xff]  ;;  %v7543_v1 = vld [vmem:[#allocation148_spill] sm:$0xff] }
 0x4a8   :  { %v2178_v26 = vadd.f32 %v7540_v19, %v7539_v37  ;;  %v6769_v62 = vadd.f32 %v7542_v49, %v7541_v27  ;;  %v7544_v16 = vld [vmem:[#allocation204_spill] sm:$0xff]  ;;  %v7545_v4 = vld [vmem:[#allocation149_spill] sm:$0xff]  ;;  %v7547_v25 = vld [vmem:[#allocation150_spill] sm:$0xff]  ;;  %v2846_v20 = vrot.slane %v2176_v52, 4 }
 0x4a9   :  { %v6773_v42 = vadd.f32 %v7544_v16, %v7543_v1  ;;  %v7546_v23 = vld [vmem:[#allocation205_spill] sm:$0xff]  ;;  %v7548_v48 = vld [vmem:[#allocation206_spill] sm:$0xff]  ;;  %v7549_v10 = vld [vmem:[#allocation151_spill] sm:$0xff] }
 0x4aa   :  { %v6777_v55 = vadd.f32 %v7546_v23, %v7545_v4  ;;  %v6781_v32 = vadd.f32 %v7548_v48, %v7547_v25  ;;  %v7550_v8 = vld [vmem:[#allocation207_spill] sm:$0xff]  ;;  %v7551_v51 = vld [vmem:[#allocation152_spill] sm:$0xff]  ;;  %v7553_v31 = vld [vmem:[#allocation153_spill] sm:$0xff]  ;;  %v2744_v23 = vrot.slane %v2109_v18, 7  ;;  %v2746_v25 = vrot.slane %v2110_v15, 6 }
 0x4ab   :  { %v6785_v21 = vadd.f32 %v7550_v8, %v7549_v10  ;;  %v7552_v50 = vld [vmem:[#allocation208_spill] sm:$0xff]  ;;  %v7554_v17 = vld [vmem:[#allocation209_spill] sm:$0xff]  ;;  %v7555_v61 = vld [vmem:[#allocation154_spill] sm:$0xff]  ;;  %v2748_v48 = vrot.slane %v2111_v60, 5  ;;  %v2750_v10 = vrot.slane %v2112_v36, 4  ;;  %v2752_v8 = vrot.slane %v2113_v54, 3 }
 0x4ac   :  { %v6789_v33 = vadd.f32 %v7552_v50, %v7551_v51  ;;  %v6793_v28 = vadd.f32 %v7554_v17, %v7553_v31  ;;  %v7556_v63 = vld [vmem:[#allocation210_spill] sm:$0xff]  ;;  %v7557_v19 = vld [vmem:[#allocation165_spill] sm:$0xff]  ;;  %v2754_v51 = vrot.slane %v2114_v58, 2  ;;  %v2756_v50 = vrot.slane %v2115_v13, 1  ;;  %v2807_v58 = vpop.permute.xlu1 %2806 }
 0x4ad   :  { %v6797_v37 = vadd.f32 %v7556_v63, %v7555_v61  ;;  %v7558_v27 = vld [vmem:[#allocation213_spill] sm:$0xff]  ;;  %v7559_v1 = vld [vmem:[#allocation166_spill] sm:$0xff]  ;;  %v2826_v31 = vrot.slane %v2165_v59, 7  ;;  %v2745_v17 = vsel %vm1229_vm3, %v2744_v23, %v2108_v6  ;;  %v2828_v61 = vrot.slane %v2166_v44, 6 }
 0x4ae   :  { %v6801_v49 = vadd.f32 %v7558_v27, %v7557_v19  ;;  %v7560_v16 = vld [vmem:[#allocation214_spill] sm:$0xff]  ;;  %v2830_v63 = vrot.slane %v2167_v46, 5  ;;  %v2747_v19 = vsel %vm2343_vm5, %v2746_v25, %v2745_v17  ;;  %v2838_v60 = vrot.slane %v2171_v24, 1 }
 0x4af   :  { %v6805_v4 = vadd.f32 %v7560_v16, %v7559_v1  ;;  %v2827_v27 = vsel %vm1229_vm3, %v2826_v31, %v2164_v45  ;;  %v2836_v1 = vrot.slane %v2170_v43, 2  ;;  %v2749_v18 = vsel %vm2346_vm6, %v2748_v48, %v2747_v19  ;;  %v7562_v31 = vld [vmem:[#allocation212_spill] sm:$0xff] }
 0x4b0   :  { %v2829_v15 = vsel %vm2343_vm5, %v2828_v61, %v2827_v27  ;;  %v2840_v36 = vrot.slane %v2173_v7, 7  ;;  %v2751_v54 = vsel %vm2349_vm7, %v2750_v10, %v2749_v18  ;;  %v2842_v13 = vrot.slane %v2174_v30, 6  ;;  %v7563_v61 = vld [vmem:[#allocation167_spill] sm:$0xff] }
 0x4b1   :  { %v2831_v6 = vsel %vm2346_vm6, %v2830_v63, %v2829_v15  ;;  %v2844_v59 = vrot.slane %v2175_v38, 5  ;;  %v2753_v44 = vsel %vm2352_vm8, %v2752_v8, %v2751_v54  ;;  %v2848_v16 = vrot.slane %v2177_v39, 3  ;;  %v7564_v63 = vld [vmem:[#allocation215_spill] sm:$0xff] }
 0x4b2   :  { %v2833_v46 = vsel %vm2349_vm7, %v2832_v29, %v2831_v6  ;;  %v2841_v45 = vsel %vm1229_vm3, %v2840_v36, %v2172_v12  ;;  %v2755_v57 = vsel %vm2355_vm9, %v2754_v51, %v2753_v44  ;;  %v2850_v25 = vrot.slane %v2178_v26, 2 }
 0x4b3   :  { %v2835_v43 = vsel %vm2352_vm8, %v2834_v2, %v2833_v46  ;;  %v2843_v7 = vsel %vm2343_vm5, %v2842_v13, %v2841_v45  ;;  %v2757_v23 = vsel %vm2358_vm10, %v2756_v50, %v2755_v57  ;;  %v2852_v48 = vrot.slane %v6769_v62, 1  ;;  %v7561_v50 = vld [vmem:[#allocation164_spill] sm:$0xff]  ;;  %v7565_v62 = vld [vmem:[#allocation181_spill] sm:$0xff] }
 0x4b4   :  { %v2837_v30 = vsel %vm2355_vm9, %v2836_v1, %v2835_v43  ;;  %v2845_v38 = vsel %vm2346_vm6, %v2844_v59, %v2843_v7  ;;  %v3107_v29 = vsel %vm24_vm0, %v2757_v23, %v2807_v58  ;;  %v2922_v10 = vrot.slane %v6777_v55, 7  ;;  %v7566_v58 = vld [vmem:[#allocation155_spill] sm:$0xff]  ;;  %v7568_v59 = vld [vmem:[#allocation182_spill] sm:$0xff]  ;;  %v7569_v46 = vld [vmem:[#allocation168_spill] sm:$0xff] }
 0x4b5   :  { %v2901_v24 = vpop.permute.xlu0 %2900  ;;  %v2839_v12 = vsel %vm2358_vm10, %v2838_v60, %v2837_v30  ;;  %v2847_v52 = vsel %vm2349_vm7, %v2846_v20, %v2845_v38  ;;  %3126 = vst [vmem:[#allocation4 + $0x60] sm:$0xff] %v3107_v29  ;;  %v2924_v8 = vrot.slane %v6781_v32, 6  ;;  %v2236_v17 = vadd.f32 %v7562_v31, %v7561_v50  ;;  %v7570_v45 = vld [vmem:[#allocation216_spill] sm:$0xff]  ;;  %v7572_v23 = vld [vmem:[#allocation169_spill] sm:$0xff] }
 0x4b6   :  { %v3108_v2 = vsel %vm24_vm0, %v2839_v12, %v2901_v24  ;;  %v2849_v39 = vsel %vm2352_vm8, %v2848_v16, %v2847_v52  ;;  %v2239_v19 = vadd.f32 %v7564_v63, %v7563_v61  ;;  %v2293_v27 = vadd.f32 %v6406_v47, %v7565_v62  ;;  %v7567_v47 = vld [vmem:[#allocation211_spill] sm:$0xff]  ;;  %v7571_v7 = vld [vmem:[#allocation180_spill] sm:$0xff]  ;;  %v7573_v30 = vld [vmem:[#allocation217_spill] sm:$0xff] }
 0x4b7   :  { %3119 = vst [vmem:[#allocation4 + $0x28] sm:$0xff] %v3108_v2  ;;  %v2851_v26 = vsel %vm2355_vm9, %v2850_v25, %v2849_v39  ;;  %v2923_v55 = vsel %vm1229_vm3, %v2922_v10, %v6773_v42  ;;  %v2926_v32 = vrot.slane %v6785_v21, 5  ;;  %v2928_v18 = vrot.slane %v6789_v33, 4  ;;  %v7574_v12 = vld [vmem:[#allocation183_spill] sm:$0xff]  ;;  %v7575_v2 = vld [vmem:[#allocation197_spill] sm:$0xff]  ;;  %v7578_v61 = vld [vmem:[#allocation184_spill] sm:$0xff] }
 0x4b8   :  { %v2853_v1 = vsel %vm2358_vm10, %v2852_v48, %v2851_v26  ;;  %v2925_v60 = vsel %vm2343_vm5, %v2924_v8, %v2923_v55  ;;  %v2936_v36 = vrot.slane %v6801_v49, 7  ;;  %v2938_v54 = vrot.slane %v6805_v4, 6  ;;  %v7576_v26 = vld [vmem:[#allocation170_spill] sm:$0xff]  ;;  %v7581_v55 = vld [vmem:[#allocation219_spill] sm:$0xff] }
 0x4b9   :  { %v2235_v6 = vadd.f32 %v7567_v47, %v7566_v58  ;;  %v2927_v13 = vsel %vm2346_vm6, %v2926_v32, %v2925_v60  ;;  %v2930_v42 = vrot.slane %v6793_v28, 3  ;;  %v2294_v21 = vadd.f32 %v6409_v53, %v7568_v59  ;;  %v7582_v60 = vld [vmem:[#allocation185_spill] sm:$0xff]  ;;  %v7583_v58 = vld [vmem:[#allocation196_spill] sm:$0xff] }
 0x4ba   :  { %v2929_v33 = vsel %vm2349_vm7, %v2928_v18, %v2927_v13  ;;  %v2932_v44 = vrot.slane %v6797_v37, 2  ;;  %v2240_v49 = vadd.f32 %v7570_v45, %v7569_v46  ;;  %v2937_v4 = vsel %vm1229_vm3, %v2936_v36, %v2236_v17  ;;  %v7584_v13 = vld [vmem:[#allocation199_spill] sm:$0xff] }
 0x4bb   :  { %v2931_v20 = vsel %vm2352_vm8, %v2930_v42, %v2929_v33  ;;  %v2939_v57 = vsel %vm2343_vm5, %v2938_v54, %v2937_v4  ;;  %v2940_v43 = vrot.slane %v2239_v19, 5  ;;  %v3018_v24 = vrot.slane %v2293_v27, 7  ;;  %v7579_v19 = vld [vmem:[#allocation198_spill] sm:$0xff] }
 0x4bc   :  { %v2933_v28 = vsel %vm2355_vm9, %v2932_v44, %v2931_v20  ;;  %v2292_v53 = vadd.f32 %v6402_v35, %v7571_v7  ;;  %v2934_v16 = vrot.slane %v2235_v6, 1  ;;  %v2241_v37 = vadd.f32 %v7573_v30, %v7572_v23  ;;  %v7585_v33 = vld [vmem:[#allocation186_spill] sm:$0xff]  ;;  %v7588_v7 = vld [vmem:[#allocation201_spill] sm:$0xff] }
 0x4bd   :  { %v2941_v38 = vsel %vm2346_vm6, %v2940_v43, %v2939_v57  ;;  %v3020_v25 = vrot.slane %v2294_v21, 6  ;;  %v2942_v29 = vrot.slane %v2240_v49, 4  ;;  %v2295_v52 = vadd.f32 %v6413_v56, %v7574_v12 }
 0x4be   :  { %v3019_v48 = vsel %vm1229_vm3, %v3018_v24, %v2292_v53  ;;  %v2301_v39 = vadd.f32 %v6455_v11, %v7575_v2  ;;  %v2935_v10 = vsel %vm2358_vm10, %v2934_v16, %v2933_v28  ;;  %v2944_v17 = vrot.slane %v2241_v37, 3  ;;  %v7589_v37 = vld [vmem:[#allocation202_spill] sm:$0xff]  ;;  %v7591_v2 = vld [vmem:[#allocation203_spill] sm:$0xff] }
 0x4bf   :  { %v2903_v51 = vpop.permute.xlu1 %2902  ;;  %v2943_v31 = vsel %vm2349_vm7, %v2942_v29, %v2941_v38  ;;  %v2296_v56 = vadd.f32 %v6416_v5, %v7578_v61  ;;  %v3021_v63 = vsel %vm2343_vm5, %v3020_v25, %v3019_v48  ;;  %v2302_v11 = vadd.f32 %v6458_v40, %v7579_v19  ;;  %v7590_v38 = vld [vmem:[#allocation220_spill] sm:$0xff] }
 0x4c0   :  { %v3109_v15 = vsel %vm24_vm0, %v2853_v1, %v2903_v51  ;;  %v7577_v51 = vld [vmem:[#allocation218_spill] sm:$0xff]  ;;  %v3022_v62 = vrot.slane %v2295_v52, 5  ;;  %v3032_v27 = vrot.slane %v2301_v39, 7  ;;  %v7580_v1 = vld [vmem:[#allocation171_spill] sm:$0xff]  ;;  %v2945_v18 = vsel %vm2352_vm8, %v2944_v17, %v2943_v31 }
 0x4c1   :  { %3127 = vst [vmem:[#allocation4 + $0x68] sm:$0xff] %v3109_v15  ;;  %v2242_v50 = vadd.f32 %v7577_v51, %v7576_v26  ;;  %v2243_v32 = vadd.f32 %v7581_v55, %v7580_v1  ;;  %v2297_v36 = vadd.f32 %v6419_v14, %v7582_v60  ;;  %v2300_v5 = vadd.f32 %v6451_v34, %v7583_v58  ;;  %v7586_v34 = vld [vmem:[#allocation200_spill] sm:$0xff] }
 0x4c2   :  { %v3023_v54 = vsel %vm2346_vm6, %v3022_v62, %v3021_v63  ;;  %v3024_v47 = vrot.slane %v2296_v56, 4  ;;  %v3034_v6 = vrot.slane %v2302_v11, 6  ;;  %v2303_v42 = vadd.f32 %v6461_v22, %v7584_v13  ;;  %v7587_v22 = vld [vmem:[#allocation187_spill] sm:$0xff] }
 0x4c3   :  { %v2946_v15 = vrot.slane %v2242_v50, 2  ;;  %v3033_v59 = vsel %vm1229_vm3, %v3032_v27, %v2300_v5  ;;  %v2948_v21 = vrot.slane %v2243_v32, 1  ;;  %v2298_v44 = vadd.f32 %v6423_v3, %v7585_v33  ;;  %v3130_v51 = vld [vmem:[#allocation4] ss:$8 sm:$0xf] }
 0x4c4   :  { %v3025_v14 = vsel %vm2349_vm7, %v3024_v47, %v3023_v54  ;;  %v3026_v46 = vrot.slane %v2297_v36, 3  ;;  %v2304_v4 = vadd.f32 %v6465_v9, %v7586_v34  ;;  %v3035_v20 = vsel %vm2343_vm5, %v3034_v6, %v3033_v59  ;;  %v3138_v50 = vld [vmem:[#allocation4 + $0x1] ss:$8 sm:$0xf] }
 0x4c5   :  { %v2947_v40 = vsel %vm2355_vm9, %v2946_v15, %v2945_v18  ;;  %v2299_v43 = vadd.f32 %v6426_v0, %v7587_v22  ;;  %v3036_v28 = vrot.slane %v2303_v42, 5  ;;  %v3028_v3 = vrot.slane %v2298_v44, 2  ;;  %v3166_v31 = vld [vmem:[#allocation4 + $0x1] ss:$8 sm:$0xf] }
 0x4c6   :  { %v2949_v45 = vsel %vm2358_vm10, %v2948_v21, %v2947_v40  ;;  %v3027_v24 = vsel %vm2352_vm8, %v3026_v46, %v3025_v14  ;;  %v2305_v53 = vadd.f32 %v6468_v41, %v7588_v7  ;;  %v3038_v9 = vrot.slane %v2304_v4, 4  ;;  %v7592_v41 = vld [vmem:[#allocation221_spill] sm:$0xff] }
 0x4c7   :  { %v3037_v16 = vsel %vm2346_vm6, %v3036_v28, %v3035_v20  ;;  %v3029_v23 = vsel %vm2355_vm9, %v3028_v3, %v3027_v24  ;;  %v3030_v30 = vrot.slane %v2299_v43, 1  ;;  %v2306_v25 = vadd.f32 %v7590_v38, %v7589_v37  ;;  %v3172_v17 = vld [vmem:[#allocation4] ss:$8 sm:$0xf] }
 0x4c8   :  { %v3039_v29 = vsel %vm2349_vm7, %v3038_v9, %v3037_v16  ;;  %v3040_v52 = vrot.slane %v2305_v53, 3  ;;  %v2307_v39 = vadd.f32 %v7592_v41, %v7591_v2  ;;  %v3179_v63 = vld [vmem:[#allocation4 + $0x2] ss:$8 sm:$0xf] }
 0x4c9   :  { %v2997_v8 = vpop.permute.xlu0 %2996  ;;  %v3031_v0 = vsel %vm2358_vm10, %v3030_v30, %v3029_v23  ;;  %v3208_v27 = vld [vmem:[#allocation4 + $0x2] ss:$8 sm:$0xf]  ;;  %v3214_v1 = vld [vmem:[#allocation4 + $0x1] ss:$8 sm:$0xf] }
 0x4ca   :  { %v3110_v35 = vsel %vm24_vm0, %v2935_v10, %v2997_v8  ;;  %v3041_v10 = vsel %vm2352_vm8, %v3040_v52, %v3039_v29  ;;  %v3042_v8 = vrot.slane %v2306_v25, 2  ;;  %v3044_v26 = vrot.slane %v2307_v39, 1  ;;  %v3221_v60 = vld [vmem:[#allocation4 + $0x3] ss:$8 sm:$0xf] }
 0x4cb   :  { %3120 = vst [vmem:[#allocation4 + $0x30] sm:$0xff] %v3110_v35  ;;  %v3250_v47 = vld [vmem:[#allocation4 + $0x3] ss:$8 sm:$0xf] }
 0x4cc   :  { %v3043_v35 = vsel %vm2355_vm9, %v3042_v8, %v3041_v10  ;;  %v3256_v21 = vld [vmem:[#allocation4 + $0x2] ss:$8 sm:$0xf]  ;;  %v3292_v43 = vld [vmem:[#allocation4 + $0x4] ss:$8 sm:$0xf] }
 0x4cd   :  { %v3045_v61 = vsel %vm2358_vm10, %v3044_v26, %v3043_v35  ;;  %v3298_v16 = vld [vmem:[#allocation4 + $0x3] ss:$8 sm:$0xf]  ;;  %v3305_v38 = vld [vmem:[#allocation4 + $0x5] ss:$8 sm:$0xf] }
 0x4ce   :  { %v3334_v52 = vld [vmem:[#allocation4 + $0x5] ss:$8 sm:$0xf]  ;;  %v3340_v10 = vld [vmem:[#allocation4 + $0x4] ss:$8 sm:$0xf] }
 0x4d3   :  { %v2999_v49 = vpop.permute.xlu1 %2998 }
 0x4d4   :  { %v3111_v57 = vsel %vm24_vm0, %v2949_v45, %v2999_v49  ;;  %v3263_v49 = vld [vmem:[#allocation4 + $0x4] ss:$8 sm:$0xf] }
 0x4d5   :  { %3128 = vst [vmem:[#allocation4 + $0x70] sm:$0xff] %v3111_v57 }
 0x4da   :  { %v3093_v12 = vpop.permute.xlu0 %3092 }
 0x4db   :  { %v3112_v48 = vsel %vm24_vm0, %v3031_v0, %v3093_v12 }
 0x4dc   :  { %3121 = vst [vmem:[#allocation4 + $0x38] sm:$0xff] %v3112_v48 }
 0x4e2   :  { %v3095_v56 = vpop.permute.xlu1 %3094 }
 0x4e3   :  { %v3131_v19 = vld [vmem:[#allocation4] ss:$8 sm:$0xf0]  ;;  %v3139_v11 = vld [vmem:[#allocation4 + $0x1] ss:$8 sm:$0xf0]  ;;  %v3113_v62 = vsel %vm24_vm0, %v3045_v61, %v3095_v56 }
 0x4e4   :  { %v3132_v55 = vor.u32 %v3131_v19, %v3130_v51  ;;  %v3140_v32 = vor.u32 %v3139_v11, %v3138_v50  ;;  %v3167_v18 = vld [vmem:[#allocation4 + $0x1] ss:$8 sm:$0xf0]  ;;  %v3173_v15 = vld [vmem:[#allocation4] ss:$8 sm:$0xf0] }
 0x4e5   :  { %3129 = vst [vmem:[#allocation4 + $0x78] sm:$0xff] %v3113_v62  ;;  %v3168_v36 = vor.u32 %v3167_v18, %v3166_v31  ;;  %v3174_v54 = vor.u32 %v3173_v15, %v3172_v17  ;;  %v3180_v58 = vld [vmem:[#allocation4 + $0x2] ss:$8 sm:$0xf0] }
 0x4e6   :  { %v3209_v5 = vld [vmem:[#allocation4 + $0x2] ss:$8 sm:$0xf0]  ;;  %v3145_v6 = vmul.f32 0.75, %v3132_v55  ;;  %v3147_v40 = vmul.f32 0.25, %v3132_v55  ;;  %v3156_v13 = vmul.f32 0.25, %v3140_v32  ;;  %v3181_v42 = vor.u32 %v3180_v58, %v3179_v63 }
 0x4e7   :  { %v3215_v59 = vld [vmem:[#allocation4 + $0x1] ss:$8 sm:$0xf0]  ;;  %v3186_v33 = vmul.f32 0.75, %v3168_v36  ;;  %v3188_v44 = vmul.f32 0.25, %v3174_v54  ;;  %v3210_v14 = vor.u32 %v3209_v5, %v3208_v27 }
 0x4e8   :  { %v3216_v46 = vor.u32 %v3215_v59, %v3214_v1  ;;  %v3222_v45 = vld [vmem:[#allocation4 + $0x3] ss:$8 sm:$0xf0]  ;;  %v3149_v34 = vadd.f32 %v3147_v40, %v3145_v6  ;;  %v3158_v4 = vadd.f32 %v3156_v13, %v3145_v6  ;;  %v3198_v20 = vmul.f32 0.25, %v3181_v42 }
 0x4e9   :  { %v3223_v57 = vor.u32 %v3222_v45, %v3221_v60  ;;  %v3251_v22 = vld [vmem:[#allocation4 + $0x3] ss:$8 sm:$0xf0]  ;;  %v3190_v24 = vadd.f32 %v3188_v44, %v3186_v33  ;;  %v3228_v28 = vmul.f32 0.75, %v3210_v14 }
 0x4ea   :  { %v3230_v3 = vmul.f32 0.25, %v3216_v46  ;;  %v3252_v7 = vor.u32 %v3251_v22, %v3250_v47  ;;  %v3257_v53 = vld [vmem:[#allocation4 + $0x2] ss:$8 sm:$0xf0]  ;;  %v3200_v23 = vadd.f32 %v3198_v20, %v3186_v33 }
 0x4eb   :  { %3151 = vst [vmem:[#allocation5] ss:$8 sm:$0xf] %v3149_v34  ;;  %3152 = vst [vmem:[#allocation5] ss:$8 sm:$0xf0] %v3149_v34  ;;  %v3258_v30 = vor.u32 %v3257_v53, %v3256_v21 }
 0x4ec   :  { %3161 = vst [vmem:[#allocation5 + $0x1] ss:$8 sm:$0xf] %v3158_v4  ;;  %3162 = vst [vmem:[#allocation5 + $0x1] ss:$8 sm:$0xf0] %v3158_v4  ;;  %v3232_v25 = vadd.f32 %v3230_v3, %v3228_v28 }
 0x4ed   :  { %v3240_v9 = vmul.f32 0.25, %v3223_v57  ;;  %v3264_v37 = vld [vmem:[#allocation4 + $0x4] ss:$8 sm:$0xf0]  ;;  %v3270_v0 = vmul.f32 0.75, %v3252_v7  ;;  %v3272_v2 = vmul.f32 0.25, %v3258_v30 }
 0x4ee   :  { %3193 = vst [vmem:[#allocation5 + $0x2] ss:$8 sm:$0xf] %v3190_v24  ;;  %3194 = vst [vmem:[#allocation5 + $0x2] ss:$8 sm:$0xf0] %v3190_v24  ;;  %v3265_v29 = vor.u32 %v3264_v37, %v3263_v49 }
 0x4ef   :  { %v3293_v12 = vld [vmem:[#allocation4 + $0x4] ss:$8 sm:$0xf0]  ;;  %3203 = vst [vmem:[#allocation5 + $0x3] ss:$8 sm:$0xf] %v3200_v23  ;;  %v3242_v48 = vadd.f32 %v3240_v9, %v3228_v28  ;;  %v3274_v50 = vadd.f32 %v3272_v2, %v3270_v0 }
 0x4f0   :  { %3204 = vst [vmem:[#allocation5 + $0x3] ss:$8 sm:$0xf0] %v3200_v23  ;;  %v3294_v41 = vor.u32 %v3293_v12, %v3292_v43  ;;  %v3299_v39 = vld [vmem:[#allocation4 + $0x3] ss:$8 sm:$0xf0] }
 0x4f1   :  { %3235 = vst [vmem:[#allocation5 + $0x4] ss:$8 sm:$0xf] %v3232_v25  ;;  %3236 = vst [vmem:[#allocation5 + $0x4] ss:$8 sm:$0xf0] %v3232_v25  ;;  %v3300_v35 = vor.u32 %v3299_v39, %v3298_v16 }
 0x4f2   :  { %v3282_v8 = vmul.f32 0.25, %v3265_v29  ;;  %v3306_v26 = vld [vmem:[#allocation4 + $0x5] ss:$8 sm:$0xf0]  ;;  %v3312_v17 = vmul.f32 0.75, %v3294_v41 }
 0x4f3   :  { %v3347_v51 = vld [vmem:[#allocation4 + $0x6] ss:$8 sm:$0xf]  ;;  %3245 = vst [vmem:[#allocation5 + $0x5] ss:$8 sm:$0xf] %v3242_v48  ;;  %v3307_v31 = vor.u32 %v3306_v26, %v3305_v38 }
 0x4f4   :  { %3246 = vst [vmem:[#allocation5 + $0x5] ss:$8 sm:$0xf0] %v3242_v48  ;;  %v3335_v61 = vld [vmem:[#allocation4 + $0x5] ss:$8 sm:$0xf0]  ;;  %v3284_v63 = vadd.f32 %v3282_v8, %v3270_v0 }
 0x4f5   :  { %v3376_v56 = vld [vmem:[#allocation4 + $0x6] ss:$8 sm:$0xf]  ;;  %v3314_v19 = vmul.f32 0.25, %v3300_v35  ;;  %v3336_v11 = vor.u32 %v3335_v61, %v3334_v52  ;;  %v3324_v1 = vmul.f32 0.25, %v3307_v31 }
 0x4f6   :  { %v3341_v62 = vld [vmem:[#allocation4 + $0x4] ss:$8 sm:$0xf0]  ;;  %v3382_v27 = vld [vmem:[#allocation4 + $0x5] ss:$8 sm:$0xf] }
 0x4f7   :  { %3277 = vst [vmem:[#allocation5 + $0x6] ss:$8 sm:$0xf] %v3274_v50  ;;  %3278 = vst [vmem:[#allocation5 + $0x6] ss:$8 sm:$0xf0] %v3274_v50  ;;  %v3342_v55 = vor.u32 %v3341_v62, %v3340_v10  ;;  %v3316_v15 = vadd.f32 %v3314_v19, %v3312_v17  ;;  %v3326_v5 = vadd.f32 %v3324_v1, %v3312_v17 }
 0x4f8   :  { %v3348_v32 = vld [vmem:[#allocation4 + $0x6] ss:$8 sm:$0xf0]  ;;  %v3389_v18 = vld [vmem:[#allocation4 + $0x7] ss:$8 sm:$0xf] }
 0x4f9   :  { %3287 = vst [vmem:[#allocation5 + $0x7] ss:$8 sm:$0xf] %v3284_v63  ;;  %3288 = vst [vmem:[#allocation5 + $0x7] ss:$8 sm:$0xf0] %v3284_v63  ;;  %v3349_v60 = vor.u32 %v3348_v32, %v3347_v51 }
 0x4fa   :  { %v3354_v36 = vmul.f32 0.75, %v3336_v11  ;;  %v3377_v54 = vld [vmem:[#allocation4 + $0x6] ss:$8 sm:$0xf0]  ;;  %v3356_v47 = vmul.f32 0.25, %v3342_v55 }
 0x4fb   :  { %v3418_v58 = vld [vmem:[#allocation4 + $0x7] ss:$8 sm:$0xf]  ;;  %v3378_v6 = vor.u32 %v3377_v54, %v3376_v56  ;;  %v3383_v40 = vld [vmem:[#allocation4 + $0x5] ss:$8 sm:$0xf0] }
 0x4fc   :  { %v3424_v13 = vld [vmem:[#allocation4 + $0x6] ss:$8 sm:$0xf]  ;;  %3319 = vst [vmem:[#allocation5 + $0x40] ss:$8 sm:$0xf] %v3316_v15  ;;  %v3384_v59 = vor.u32 %v3383_v40, %v3382_v27  ;;  %v3358_v44 = vadd.f32 %v3356_v47, %v3354_v36 }
 0x4fd   :  { %3320 = vst [vmem:[#allocation5 + $0x40] ss:$8 sm:$0xf0] %v3316_v15  ;;  %v3366_v42 = vmul.f32 0.25, %v3349_v60  ;;  %v3396_v46 = vmul.f32 0.75, %v3378_v6 }
 0x4fe   :  { %v3390_v21 = vld [vmem:[#allocation4 + $0x7] ss:$8 sm:$0xf0]  ;;  %v3134_v33 = vld [vmem:[#allocation4 + $0x40] ss:$8 sm:$0xf] }
 0x4ff   :  { %3329 = vst [vmem:[#allocation5 + $0x41] ss:$8 sm:$0xf] %v3326_v5  ;;  %3330 = vst [vmem:[#allocation5 + $0x41] ss:$8 sm:$0xf0] %v3326_v5  ;;  %v3391_v14 = vor.u32 %v3390_v21, %v3389_v18  ;;  %v3368_v34 = vadd.f32 %v3366_v42, %v3354_v36 }
 0x500   :  { %v3419_v45 = vld [vmem:[#allocation4 + $0x7] ss:$8 sm:$0xf0]  ;;  %v3142_v49 = vld [vmem:[#allocation4 + $0x41] ss:$8 sm:$0xf] }
 0x501   :  { %v3398_v4 = vmul.f32 0.25, %v3384_v59  ;;  %v3420_v20 = vor.u32 %v3419_v45, %v3418_v58  ;;  %v3425_v57 = vld [vmem:[#allocation4 + $0x6] ss:$8 sm:$0xf0]  ;;  %v3408_v43 = vmul.f32 0.25, %v3391_v14 }
 0x502   :  { %v3169_v22 = vld [vmem:[#allocation4 + $0x41] ss:$8 sm:$0xf]  ;;  %3361 = vst [vmem:[#allocation5 + $0x42] ss:$8 sm:$0xf] %v3358_v44  ;;  %v3426_v24 = vor.u32 %v3425_v57, %v3424_v13 }
 0x503   :  { %3362 = vst [vmem:[#allocation5 + $0x42] ss:$8 sm:$0xf0] %v3358_v44  ;;  %v3135_v28 = vld [vmem:[#allocation4 + $0x40] ss:$8 sm:$0xf0]  ;;  %v3400_v7 = vadd.f32 %v3398_v4, %v3396_v46  ;;  %v3410_v37 = vadd.f32 %v3408_v43, %v3396_v46 }
 0x504   :  { %v3175_v3 = vld [vmem:[#allocation4 + $0x40] ss:$8 sm:$0xf]  ;;  %3371 = vst [vmem:[#allocation5 + $0x43] ss:$8 sm:$0xf] %v3368_v34  ;;  %v3136_v23 = vor.u32 %v3135_v28, %v3134_v33 }
 0x505   :  { %3372 = vst [vmem:[#allocation5 + $0x43] ss:$8 sm:$0xf0] %v3368_v34  ;;  %v3430_v53 = vmul.f32 0.75, %v3420_v20  ;;  %v3442_v16 = vmul.f32 0.25, %v3420_v20  ;;  %v3432_v38 = vmul.f32 0.25, %v3426_v24 }
 0x506   :  { %v3143_v9 = vld [vmem:[#allocation4 + $0x41] ss:$8 sm:$0xf0]  ;;  %v3183_v30 = vld [vmem:[#allocation4 + $0x42] ss:$8 sm:$0xf] }
 0x507   :  { %v3144_v25 = vor.u32 %v3143_v9, %v3142_v49  ;;  %v3170_v29 = vld [vmem:[#allocation4 + $0x41] ss:$8 sm:$0xf0]  ;;  %v3211_v0 = vld [vmem:[#allocation4 + $0x42] ss:$8 sm:$0xf]  ;;  %v3444_v12 = vadd.f32 %v3442_v16, %v3430_v53  ;;  %v3434_v10 = vadd.f32 %v3432_v38, %v3430_v53 }
 0x508   :  { %3403 = vst [vmem:[#allocation5 + $0x44] ss:$8 sm:$0xf] %v3400_v7  ;;  %3404 = vst [vmem:[#allocation5 + $0x44] ss:$8 sm:$0xf0] %v3400_v7  ;;  %v3171_v2 = vor.u32 %v3170_v29, %v3169_v22 }
 0x509   :  { %v3146_v52 = vmul.f32 0.75, %v3136_v23  ;;  %v3148_v48 = vmul.f32 0.25, %v3136_v23  ;;  %v3176_v41 = vld [vmem:[#allocation4 + $0x40] ss:$8 sm:$0xf0]  ;;  %v3157_v8 = vmul.f32 0.25, %v3144_v25 }
 0x50a   :  { %v3217_v39 = vld [vmem:[#allocation4 + $0x41] ss:$8 sm:$0xf]  ;;  %3413 = vst [vmem:[#allocation5 + $0x45] ss:$8 sm:$0xf] %v3410_v37  ;;  %v3177_v35 = vor.u32 %v3176_v41, %v3175_v3 }
 0x50b   :  { %3414 = vst [vmem:[#allocation5 + $0x45] ss:$8 sm:$0xf0] %v3410_v37  ;;  %v3184_v26 = vld [vmem:[#allocation4 + $0x42] ss:$8 sm:$0xf0]  ;;  %v3150_v50 = vadd.f32 %v3148_v48, %v3146_v52  ;;  %v3159_v63 = vadd.f32 %v3157_v8, %v3146_v52 }
 0x50c   :  { %v3225_v51 = vld [vmem:[#allocation4 + $0x43] ss:$8 sm:$0xf]  ;;  %3447 = vst [vmem:[#allocation5 + $0x47] ss:$8 sm:$0xf] %v3444_v12  ;;  %v3185_v31 = vor.u32 %v3184_v26, %v3183_v30 }
 0x50d   :  { %3448 = vst [vmem:[#allocation5 + $0x47] ss:$8 sm:$0xf0] %v3444_v12  ;;  %v3187_v17 = vmul.f32 0.75, %v3171_v2  ;;  %v3189_v19 = vmul.f32 0.25, %v3177_v35 }
 0x50e   :  { %v3212_v61 = vld [vmem:[#allocation4 + $0x42] ss:$8 sm:$0xf0]  ;;  %v3253_v56 = vld [vmem:[#allocation4 + $0x43] ss:$8 sm:$0xf] }
 0x50f   :  { %3437 = vst [vmem:[#allocation5 + $0x46] ss:$8 sm:$0xf] %v3434_v10  ;;  %3438 = vst [vmem:[#allocation5 + $0x46] ss:$8 sm:$0xf0] %v3434_v10  ;;  %v3213_v11 = vor.u32 %v3212_v61, %v3211_v0  ;;  %v3191_v15 = vadd.f32 %v3189_v19, %v3187_v17 }
 0x510   :  { %v3218_v62 = vld [vmem:[#allocation4 + $0x41] ss:$8 sm:$0xf0]  ;;  %v3259_v27 = vld [vmem:[#allocation4 + $0x42] ss:$8 sm:$0xf] }
 0x511   :  { %3154 = vst [vmem:[#allocation5 + $0x80] ss:$8 sm:$0xf] %v3150_v50  ;;  %3155 = vst [vmem:[#allocation5 + $0x80] ss:$8 sm:$0xf0] %v3150_v50  ;;  %v3219_v55 = vor.u32 %v3218_v62, %v3217_v39 }
 0x512   :  { %v3199_v1 = vmul.f32 0.25, %v3185_v31  ;;  %v3226_v32 = vld [vmem:[#allocation4 + $0x43] ss:$8 sm:$0xf0]  ;;  %v3229_v36 = vmul.f32 0.75, %v3213_v11 }
 0x513   :  { %v3267_v18 = vld [vmem:[#allocation4 + $0x44] ss:$8 sm:$0xf]  ;;  %3164 = vst [vmem:[#allocation5 + $0x81] ss:$8 sm:$0xf] %v3159_v63  ;;  %v3227_v60 = vor.u32 %v3226_v32, %v3225_v51 }
 0x514   :  { %3165 = vst [vmem:[#allocation5 + $0x81] ss:$8 sm:$0xf0] %v3159_v63  ;;  %v3254_v54 = vld [vmem:[#allocation4 + $0x43] ss:$8 sm:$0xf0]  ;;  %v3201_v5 = vadd.f32 %v3199_v1, %v3187_v17 }
 0x515   :  { %v3295_v58 = vld [vmem:[#allocation4 + $0x44] ss:$8 sm:$0xf]  ;;  %v3231_v47 = vmul.f32 0.25, %v3219_v55  ;;  %v3255_v6 = vor.u32 %v3254_v54, %v3253_v56  ;;  %v3241_v42 = vmul.f32 0.25, %v3227_v60 }
 0x516   :  { %v3260_v40 = vld [vmem:[#allocation4 + $0x42] ss:$8 sm:$0xf0]  ;;  %v3301_v13 = vld [vmem:[#allocation4 + $0x43] ss:$8 sm:$0xf] }
 0x517   :  { %3196 = vst [vmem:[#allocation5 + $0x82] ss:$8 sm:$0xf] %v3191_v15  ;;  %3197 = vst [vmem:[#allocation5 + $0x82] ss:$8 sm:$0xf0] %v3191_v15  ;;  %v3261_v59 = vor.u32 %v3260_v40, %v3259_v27  ;;  %v3233_v44 = vadd.f32 %v3231_v47, %v3229_v36  ;;  %v3243_v34 = vadd.f32 %v3241_v42, %v3229_v36 }
 0x518   :  { %v3268_v21 = vld [vmem:[#allocation4 + $0x44] ss:$8 sm:$0xf0]  ;;  %v3309_v33 = vld [vmem:[#allocation4 + $0x45] ss:$8 sm:$0xf] }
 0x519   :  { %3206 = vst [vmem:[#allocation5 + $0x83] ss:$8 sm:$0xf] %v3201_v5  ;;  %3207 = vst [vmem:[#allocation5 + $0x83] ss:$8 sm:$0xf0] %v3201_v5  ;;  %v3269_v14 = vor.u32 %v3268_v21, %v3267_v18 }
 0x51a   :  { %v3271_v46 = vmul.f32 0.75, %v3255_v6  ;;  %v3296_v45 = vld [vmem:[#allocation4 + $0x44] ss:$8 sm:$0xf0]  ;;  %v3273_v4 = vmul.f32 0.25, %v3261_v59 }
 0x51b   :  { %v3337_v49 = vld [vmem:[#allocation4 + $0x45] ss:$8 sm:$0xf]  ;;  %v3297_v20 = vor.u32 %v3296_v45, %v3295_v58  ;;  %v3302_v57 = vld [vmem:[#allocation4 + $0x43] ss:$8 sm:$0xf0] }
 0x51c   :  { %v3343_v22 = vld [vmem:[#allocation4 + $0x44] ss:$8 sm:$0xf]  ;;  %3238 = vst [vmem:[#allocation5 + $0x84] ss:$8 sm:$0xf] %v3233_v44  ;;  %v3303_v24 = vor.u32 %v3302_v57, %v3301_v13  ;;  %v3275_v7 = vadd.f32 %v3273_v4, %v3271_v46 }
 0x51d   :  { %3239 = vst [vmem:[#allocation5 + $0x84] ss:$8 sm:$0xf0] %v3233_v44  ;;  %v3283_v43 = vmul.f32 0.25, %v3269_v14  ;;  %v3313_v16 = vmul.f32 0.75, %v3297_v20 }
 0x51e   :  { %v3310_v28 = vld [vmem:[#allocation4 + $0x45] ss:$8 sm:$0xf0]  ;;  %v3351_v3 = vld [vmem:[#allocation4 + $0x46] ss:$8 sm:$0xf] }
 0x51f   :  { %3248 = vst [vmem:[#allocation5 + $0x85] ss:$8 sm:$0xf] %v3243_v34  ;;  %3249 = vst [vmem:[#allocation5 + $0x85] ss:$8 sm:$0xf0] %v3243_v34  ;;  %v3311_v53 = vor.u32 %v3310_v28, %v3309_v33  ;;  %v3285_v30 = vadd.f32 %v3283_v43, %v3271_v46 }
 0x520   :  { %v3338_v23 = vld [vmem:[#allocation4 + $0x45] ss:$8 sm:$0xf0]  ;;  %v3379_v9 = vld [vmem:[#allocation4 + $0x46] ss:$8 sm:$0xf] }
 0x521   :  { %v3315_v37 = vmul.f32 0.25, %v3303_v24  ;;  %v3339_v38 = vor.u32 %v3338_v23, %v3337_v49  ;;  %v3344_v25 = vld [vmem:[#allocation4 + $0x44] ss:$8 sm:$0xf0]  ;;  %v3325_v0 = vmul.f32 0.25, %v3311_v53 }
 0x522   :  { %v3385_v29 = vld [vmem:[#allocation4 + $0x45] ss:$8 sm:$0xf]  ;;  %3280 = vst [vmem:[#allocation5 + $0x86] ss:$8 sm:$0xf] %v3275_v7  ;;  %v3345_v12 = vor.u32 %v3344_v25, %v3343_v22 }
 0x523   :  { %3281 = vst [vmem:[#allocation5 + $0x86] ss:$8 sm:$0xf0] %v3275_v7  ;;  %v3352_v52 = vld [vmem:[#allocation4 + $0x46] ss:$8 sm:$0xf0]  ;;  %v3317_v2 = vadd.f32 %v3315_v37, %v3313_v16  ;;  %v3327_v35 = vadd.f32 %v3325_v0, %v3313_v16 }
 0x524   :  { %v3393_v48 = vld [vmem:[#allocation4 + $0x47] ss:$8 sm:$0xf]  ;;  %3290 = vst [vmem:[#allocation5 + $0x87] ss:$8 sm:$0xf] %v3285_v30  ;;  %v3353_v41 = vor.u32 %v3352_v52, %v3351_v3 }
 0x525   :  { %3291 = vst [vmem:[#allocation5 + $0x87] ss:$8 sm:$0xf0] %v3285_v30  ;;  %v3355_v39 = vmul.f32 0.75, %v3339_v38  ;;  %v3357_v26 = vmul.f32 0.25, %v3345_v12 }
 0x526   :  { %v3380_v10 = vld [vmem:[#allocation4 + $0x46] ss:$8 sm:$0xf0]  ;;  %v3421_v8 = vld [vmem:[#allocation4 + $0x47] ss:$8 sm:$0xf] }
 0x527   :  { %v3381_v51 = vor.u32 %v3380_v10, %v3379_v9  ;;  %v3386_v50 = vld [vmem:[#allocation4 + $0x45] ss:$8 sm:$0xf0]  ;;  %v3427_v31 = vld [vmem:[#allocation4 + $0x46] ss:$8 sm:$0xf]  ;;  %v3359_v63 = vadd.f32 %v3357_v26, %v3355_v39 }
 0x528   :  { %3322 = vst [vmem:[#allocation5 + $0xc0] ss:$8 sm:$0xf] %v3317_v2  ;;  %3323 = vst [vmem:[#allocation5 + $0xc0] ss:$8 sm:$0xf0] %v3317_v2  ;;  %v3387_v61 = vor.u32 %v3386_v50, %v3385_v29 }
 0x529   :  { %v3367_v17 = vmul.f32 0.25, %v3353_v41  ;;  %v3394_v56 = vld [vmem:[#allocation4 + $0x47] ss:$8 sm:$0xf0]  ;;  %v3397_v11 = vmul.f32 0.75, %v3381_v51 }
 0x52a   :  { %3332 = vst [vmem:[#allocation5 + $0xc1] ss:$8 sm:$0xf] %v3327_v35  ;;  %3333 = vst [vmem:[#allocation5 + $0xc1] ss:$8 sm:$0xf0] %v3327_v35  ;;  %v3395_v19 = vor.u32 %v3394_v56, %v3393_v48 }
 0x52b   :  { %v3422_v62 = vld [vmem:[#allocation4 + $0x47] ss:$8 sm:$0xf0]  ;;  %v3369_v27 = vadd.f32 %v3367_v17, %v3355_v39  ;;  %v3399_v1 = vmul.f32 0.25, %v3387_v61 }
 0x52c   :  { %v3423_v55 = vor.u32 %v3422_v62, %v3421_v8  ;;  %v3428_v32 = vld [vmem:[#allocation4 + $0x46] ss:$8 sm:$0xf0]  ;;  %3364 = vst [vmem:[#allocation5 + $0xc2] ss:$8 sm:$0xf] %v3359_v63 }
 0x52d   :  { %3365 = vst [vmem:[#allocation5 + $0xc2] ss:$8 sm:$0xf0] %v3359_v63  ;;  %v3409_v18 = vmul.f32 0.25, %v3395_v19  ;;  %v3429_v15 = vor.u32 %v3428_v32, %v3427_v31  ;;  %v3401_v60 = vadd.f32 %v3399_v1, %v3397_v11 }
 0x52e   :  { %3374 = vst [vmem:[#allocation5 + $0xc3] ss:$8 sm:$0xf] %v3369_v27  ;;  %3375 = vst [vmem:[#allocation5 + $0xc3] ss:$8 sm:$0xf0] %v3369_v27 }
 0x52f   :  { %v3431_v36 = vmul.f32 0.75, %v3423_v55  ;;  %v3443_v54 = vmul.f32 0.25, %v3423_v55  ;;  %v3411_v58 = vadd.f32 %v3409_v18, %v3397_v11  ;;  %v3433_v5 = vmul.f32 0.25, %v3429_v15  ;;  %3406 = vst [vmem:[#allocation5 + $0xc4] ss:$8 sm:$0xf] %v3401_v60 }
 0x530   :  { %3407 = vst [vmem:[#allocation5 + $0xc4] ss:$8 sm:$0xf0] %v3401_v60 }
 0x531   :  { %v3445_v47 = vadd.f32 %v3443_v54, %v3431_v36  ;;  %3416 = vst [vmem:[#allocation5 + $0xc5] ss:$8 sm:$0xf] %v3411_v58  ;;  %3417 = vst [vmem:[#allocation5 + $0xc5] ss:$8 sm:$0xf0] %v3411_v58  ;;  %v3435_v6 = vadd.f32 %v3433_v5, %v3431_v36 }
 0x533   :  { %3450 = vst [vmem:[#allocation5 + $0xc7] ss:$8 sm:$0xf] %v3445_v47  ;;  %3451 = vst [vmem:[#allocation5 + $0xc7] ss:$8 sm:$0xf0] %v3445_v47 }
 0x534   :  { %3440 = vst [vmem:[#allocation5 + $0xc6] ss:$8 sm:$0xf] %v3435_v6  ;;  %3441 = vst [vmem:[#allocation5 + $0xc6] ss:$8 sm:$0xf0] %v3435_v6 }
 0x535   :  { %4098 = shalt.err (!%p4095_p4)
}
 0x536   :  { %s4099_s8 = scalar_lea.hbm %s6938_s6, 4096 }
 0x537   :  { %p4100_p5 = scmp.ne.s32.totalorder %s6938_s6, %s4099_s8  ;;  %p4103_p6 = scmp.lt.u32.totalorder %s4099_s8, %s6938_s6 }
 0x539   :  { %p4105_p7 = pnand %p4103_p6, %p4100_p5 }
 0x53b   :  { %4108 = shalt.err (!%p4105_p7)
}
 0x53c   :  { %s4117_s0 = smov 1024  }
 0x53d   :  { %3463 = dma.vmem_to_hbm [thread:$0]  %s3458_s3, 4096, %s6938_s6, [#allocation6], %s4117_s0, %s4117_s0, %s4112_s16  }
 0x53e   :  { %4109 = dma.done.wait [#allocation6], 4096  }
 0x53f   :  { %4110 = vsyncadd [#allocation6], 4294963200 }
 0x540   :  { %3467 = vsyncpa [#allocation6], 1 }

</bundles_post_ra>
